<compile_context>
chip_gen: v7x
topology: tpu7x:2x2x1
jax: 0.10.0
libtpu: 0.0.40
codegen_flags: <defaults>
</compile_context>

<pallas_src>
import math

import jax
import jax.numpy as jnp
from jax.experimental import pallas as pl
from jax.experimental.pallas import tpu as pltpu


def _make_decoder_layer_kernel(n_heads: int, eps: float = 1e-6):
    """Builds the per-batch-block decoder-layer kernel body."""

    def _layer_norm(x, a_ref, b_ref):
        mean = jnp.mean(x, axis=-1, keepdims=True)
        var = jnp.mean(jnp.square(x - mean), axis=-1, keepdims=True)  # unbiased=False
        nx = (x - mean) * jax.lax.rsqrt(var + eps)                    # EUP rsqrt
        # torch alpha/beta are (1, d_model, 1): broadcast along the seq axis.
        return a_ref[...] * nx + b_ref[...]

    def _linear2d(x_bf16, w_ref, b_ref):
        # y = x @ W + b.  W stored [in, out] in bf16 (== torch Linear W.T), f32 acc.
        return (jnp.dot(x_bf16, w_ref[...], preferred_element_type=jnp.float32)
                + b_ref[...])

    def _mha(q_in, kv_in, wq, bq, wk, bk, wv, bv, wo, bo, mask0):
        # q_in/kv_in: (Bt, S, D) f32.  Weights pre-split per head by the wrapper:
        #   wq/wk/wv: (H, D, d_k) bf16, bq/bk/bv: (H, 1, d_k) f32,
        #   wo: (H, d_k, D) bf16, bo: (1, D) f32.  mask0: (Bt, S, S) bool.
        Bt, S, D = q_in.shape
        d_k = D // n_heads
        scale = 1.0 / math.sqrt(d_k)
        q2 = q_in.reshape(Bt * S, D).astype(jnp.bfloat16)
        kv2 = kv_in.reshape(Bt * S, D).astype(jnp.bfloat16)
        out = jnp.zeros((Bt * S, D), jnp.float32)
        for h in range(n_heads):  # static unroll; no lane slicing / concat needed
            # Per-head projections from leading-dim-indexed weight slabs.
            qh = (jnp.dot(q2, wq[h], preferred_element_type=jnp.float32) + bq[h]) * scale
            kh = jnp.dot(kv2, wk[h], preferred_element_type=jnp.float32) + bk[h]
            vh = jnp.dot(kv2, wv[h], preferred_element_type=jnp.float32) + bv[h]
            qh = qh.astype(jnp.bfloat16).reshape(Bt, S, d_k)
            kh = kh.astype(jnp.bfloat16).reshape(Bt, S, d_k)
            vh = vh.astype(jnp.bfloat16).reshape(Bt, S, d_k)
            # QK^T: contraction over last dims (transpose absorbed into the matmul).
            s = jnp.einsum("bqd,bkd->bqk", qh, kh,
                           preferred_element_type=jnp.float32)
            # torch: masked_fill(mask == 0, 1e-09) applied BEFORE softmax (not -inf).
            s = jnp.where(mask0, 1e-9, s)
            s = s - jnp.max(s, axis=-1, keepdims=True)
            e = jnp.exp(s)
            p = e * pl.reciprocal(jnp.sum(e, axis=-1, keepdims=True), approx=True)
            hv = jnp.einsum("bqk,bkd->bqd", p.astype(jnp.bfloat16), vh,
                            preferred_element_type=jnp.float32)
            # Output projection folded per head: concat_h(head_h) @ Wo == sum_h head_h @ Wo_h.
            out = out + jnp.dot(hv.reshape(Bt * S, d_k).astype(jnp.bfloat16), wo[h],
                                preferred_element_type=jnp.float32)
        return (out + bo[...]).reshape(Bt, S, D)

    def kernel(tmask_ref, smask_ref, dec_ref, enc_ref,
               sa_wq, sa_bq, sa_wk, sa_bk, sa_wv, sa_bv, sa_wo, sa_bo,
               n1_a, n1_b,
               ca_wq, ca_bq, ca_wk, ca_bk, ca_wv, ca_bv, ca_wo, ca_bo,
               n2_a, n2_b,
               ff_w1, ff_b1, ff_w2, ff_b2,
               n3_a, n3_b,
               out_ref):
        dec = dec_ref[...].astype(jnp.float32)
        enc = enc_ref[...].astype(jnp.float32)
        Bt, S, D = dec.shape
        # Hoisted mask compares (shared by every head of the corresponding attn).
        tmask0 = tmask_ref[...] == 0
        smask0 = smask_ref[...] == 0

        # --- self-attention + residual + norm1 (dropout == identity) ---
        sa = _mha(dec, dec, sa_wq, sa_bq, sa_wk, sa_bk, sa_wv, sa_bv,
                  sa_wo, sa_bo, tmask0)
        x = _layer_norm(sa + dec, n1_a, n1_b)

        # --- cross-attention block: q = q + cross(q, enc); norm2(q + prev) ---
        ca = _mha(x, enc, ca_wq, ca_bq, ca_wk, ca_bk, ca_wv, ca_bv,
                  ca_wo, ca_bo, smask0)
        y = _layer_norm((x + ca) + x, n2_a, n2_b)

        # --- position-wise feed-forward: q = q + FFN(q); norm3(q + prev) ---
        y2 = y.reshape(Bt * S, D).astype(jnp.bfloat16)
        hid = jnp.maximum(_linear2d(y2, ff_w1, ff_b1), 0.0)  # ReLU in f32
        f = _linear2d(hid.astype(jnp.bfloat16), ff_w2, ff_b2).reshape(Bt, S, D)
        z = _layer_norm((y + f) + y, n3_a, n3_b)

        out_ref[...] = z.astype(out_ref.dtype)

    return kernel


_WEIGHT_ORDER = (
    "sa_wq", "sa_bq", "sa_wk", "sa_bk", "sa_wv", "sa_bv", "sa_wo", "sa_bo",
    "n1_a", "n1_b",
    "ca_wq", "ca_bq", "ca_wk", "ca_bk", "ca_wv", "ca_bv", "ca_wo", "ca_bo",
    "n2_a", "n2_b",
    "ff_w1", "ff_b1", "ff_w2", "ff_b2",
    "n3_a", "n3_b",
)


def _prep_params(params, n_heads):
    """Cast matmul weights to bf16 and pre-split attention weights per head."""
    D = params["sa_wq"].shape[0]
    dk = D // n_heads
    bf16 = jnp.bfloat16
    out = {}
    for pref in ("sa", "ca"):
        for nm in ("q", "k", "v"):
            w = params[f"{pref}_w{nm}"]                       # (D, H*dk)
            b = params[f"{pref}_b{nm}"]                       # (1, H*dk)
            out[f"{pref}_w{nm}"] = jnp.transpose(
                w.reshape(D, n_heads, dk), (1, 0, 2)).astype(bf16)       # (H, D, dk)
            out[f"{pref}_b{nm}"] = b.reshape(n_heads, 1, dk).astype(jnp.float32)
        out[f"{pref}_wo"] = params[f"{pref}_wo"].reshape(n_heads, dk, D).astype(bf16)
        out[f"{pref}_bo"] = params[f"{pref}_bo"].astype(jnp.float32)
    for i in (1, 2, 3):
        out[f"n{i}_a"] = params[f"n{i}_a"].astype(jnp.float32)
        out[f"n{i}_b"] = params[f"n{i}_b"].astype(jnp.float32)
    out["ff_w1"] = params["ff_w1"].astype(bf16)
    out["ff_b1"] = params["ff_b1"].astype(jnp.float32)
    out["ff_w2"] = params["ff_w2"].astype(bf16)
    out["ff_b2"] = params["ff_b2"].astype(jnp.float32)
    return out


def _pick_block_b(B, S, target_rows=256):
    """Largest divisor of B with ~target_rows matmul rows per grid step."""
    bb = max(1, min(B, target_rows // max(S, 1)))
    while B % bb:
        bb -= 1
    return bb


def decoder_layer(dec, enc, t_mask, s_mask, params, *, n_heads, block_b=None):
    B, S, D = dec.shape
    assert S == D, "torch LayerNorm(1,d,1) broadcast requires seq_len == d_model"
    assert D % n_heads == 0
    if block_b is None:
        block_b = _pick_block_b(B, S)

    prep = _prep_params(params, n_heads)
    weights = [prep[k] for k in _WEIGHT_ORDER]

    # bf16 masks: halves mask DMA bytes; 0/1 values are exact in bf16.
    t_mask = t_mask.astype(jnp.bfloat16)
    s_mask = s_mask.astype(jnp.bfloat16)

    def full_spec(arr):
        nd = arr.ndim
        return pl.BlockSpec(arr.shape, lambda b, _nd=nd: (0,) * _nd)

    in_specs = [
        pl.BlockSpec((block_b, None, S, S), lambda b: (b, 0, 0, 0)),  # t_mask
        pl.BlockSpec((block_b, None, S, S), lambda b: (b, 0, 0, 0)),  # s_mask
        pl.BlockSpec((block_b, S, D), lambda b: (b, 0, 0)),           # dec
        pl.BlockSpec((block_b, S, D), lambda b: (b, 0, 0)),           # enc
    ] + [full_spec(w) for w in weights]

    out_spec = pl.BlockSpec((block_b, S, D), lambda b: (b, 0, 0))

    return pl.pallas_call(
        _make_decoder_layer_kernel(n_heads),
        out_shape=jax.ShapeDtypeStruct((B, S, D), dec.dtype),
        grid=(B // block_b,),
        in_specs=in_specs,
        out_specs=out_spec,
        compiler_params=pltpu.CompilerParams(
            dimension_semantics=("parallel",),          # shards across TCs on v7x
            vmem_limit_bytes=64 * 1024 * 1024),
    )(t_mask, s_mask, dec, enc, *weights)


def init_params(key, d_model, d_ff):
    """Deterministic synthetic parameter init (shapes follow the torch module)."""
    counter = [0]

    def nrm(shape, scale=0.05):
        counter[0] += 1
        k = jax.random.fold_in(key, counter[0])
        return scale * jax.random.normal(k, shape, jnp.float32)

    p = {}
    for pref in ("sa", "ca"):                       # self_attn / cross_attn Linears
        for nm in ("q", "k", "v", "o"):
            p[f"{pref}_w{nm}"] = nrm((d_model, d_model))
            p[f"{pref}_b{nm}"] = nrm((1, d_model))
    for i in (1, 2, 3):                             # LayerNorm alpha=ones, beta=zeros
        p[f"n{i}_a"] = jnp.ones((1, d_model, 1), jnp.float32)
        p[f"n{i}_b"] = jnp.zeros((1, d_model, 1), jnp.float32)
    p["ff_w1"] = nrm((d_model, d_ff))
    p["ff_b1"] = nrm((1, d_ff))
    p["ff_w2"] = nrm((d_ff, d_model))
    p["ff_b2"] = nrm((1, d_model))
    return p


if __name__ == "__main__":
    # NOTE: seq_len == d_model is required by the torch LayerNorm (1,d,1) broadcast.
    B, S, D, H, D_FF = 2, 16, 16, 4, 32

    key = jax.random.PRNGKey(0)
    kd, ke, kp = jax.random.split(key, 3)
    dec = jax.random.normal(kd, (B, S, D), jnp.float32)
    enc = jax.random.normal(ke, (B, S, D), jnp.float32)

    causal = jnp.tril(jnp.ones((S, S), jnp.float32))
    t_mask = jnp.broadcast_to(causal, (B, 1, S, S)).astype(jnp.float32)  # self-attn mask
    s_mask = jnp.ones((B, 1, S, S), jnp.float32)                          # cross-attn mask

    params = init_params(kp, D, D_FF)

    out = decoder_layer(dec, enc, t_mask, s_mask, params, n_heads=H)
    jax.block_until_ready(out)
    assert out.shape == (B, S, D) and out.dtype == jnp.float32
    print("KERNEL_OK")
</pallas_src>

<mosaic_0001>
module attributes {stable_mosaic.version = 11 : i64} {
  func.func @kernel(%arg0: i32, %arg1: memref<2x1x16x16xbf16, #tpu.memory_space<vmem>>, %arg2: memref<2x1x16x16xbf16, #tpu.memory_space<vmem>>, %arg3: memref<2x16x16xf32, #tpu.memory_space<vmem>>, %arg4: memref<2x16x16xf32, #tpu.memory_space<vmem>>, %arg5: memref<4x16x4xbf16, #tpu.memory_space<vmem>>, %arg6: memref<4x1x4xf32, #tpu.memory_space<vmem>>, %arg7: memref<4x16x4xbf16, #tpu.memory_space<vmem>>, %arg8: memref<4x1x4xf32, #tpu.memory_space<vmem>>, %arg9: memref<4x16x4xbf16, #tpu.memory_space<vmem>>, %arg10: memref<4x1x4xf32, #tpu.memory_space<vmem>>, %arg11: memref<4x4x16xbf16, #tpu.memory_space<vmem>>, %arg12: memref<1x16xf32, #tpu.memory_space<vmem>>, %arg13: memref<1x16x1xf32, #tpu.memory_space<vmem>>, %arg14: memref<1x16x1xf32, #tpu.memory_space<vmem>>, %arg15: memref<4x16x4xbf16, #tpu.memory_space<vmem>>, %arg16: memref<4x1x4xf32, #tpu.memory_space<vmem>>, %arg17: memref<4x16x4xbf16, #tpu.memory_space<vmem>>, %arg18: memref<4x1x4xf32, #tpu.memory_space<vmem>>, %arg19: memref<4x16x4xbf16, #tpu.memory_space<vmem>>, %arg20: memref<4x1x4xf32, #tpu.memory_space<vmem>>, %arg21: memref<4x4x16xbf16, #tpu.memory_space<vmem>>, %arg22: memref<1x16xf32, #tpu.memory_space<vmem>>, %arg23: memref<1x16x1xf32, #tpu.memory_space<vmem>>, %arg24: memref<1x16x1xf32, #tpu.memory_space<vmem>>, %arg25: memref<16x32xbf16, #tpu.memory_space<vmem>>, %arg26: memref<1x32xf32, #tpu.memory_space<vmem>>, %arg27: memref<32x16xbf16, #tpu.memory_space<vmem>>, %arg28: memref<1x16xf32, #tpu.memory_space<vmem>>, %arg29: memref<1x16x1xf32, #tpu.memory_space<vmem>>, %arg30: memref<1x16x1xf32, #tpu.memory_space<vmem>>, %arg31: memref<2x16x16xf32, #tpu.memory_space<vmem>>) attributes {dimension_semantics = [#tpu.dimension_semantics<parallel>], iteration_bounds = array<i64: 1>, scalar_prefetch = 0 : i64, scratch_operands = 0 : i64, tpu.core_type = #tpu.core_type<tc>, window_params = [{transform_indices = @transform_0, window_bounds = array<i64: 2, 1, 16, 16>}, {transform_indices = @transform_1, window_bounds = array<i64: 2, 1, 16, 16>}, {transform_indices = @transform_2, window_bounds = array<i64: 2, 16, 16>}, {transform_indices = @transform_3, window_bounds = array<i64: 2, 16, 16>}, {pipeline_mode = #tpu.pipeline_mode<synchronous>, transform_indices = @transform_4, window_bounds = array<i64: 4, 16, 4>}, {pipeline_mode = #tpu.pipeline_mode<synchronous>, transform_indices = @transform_5, window_bounds = array<i64: 4, 1, 4>}, {pipeline_mode = #tpu.pipeline_mode<synchronous>, transform_indices = @transform_6, window_bounds = array<i64: 4, 16, 4>}, {pipeline_mode = #tpu.pipeline_mode<synchronous>, transform_indices = @transform_7, window_bounds = array<i64: 4, 1, 4>}, {pipeline_mode = #tpu.pipeline_mode<synchronous>, transform_indices = @transform_8, window_bounds = array<i64: 4, 16, 4>}, {pipeline_mode = #tpu.pipeline_mode<synchronous>, transform_indices = @transform_9, window_bounds = array<i64: 4, 1, 4>}, {pipeline_mode = #tpu.pipeline_mode<synchronous>, transform_indices = @transform_10, window_bounds = array<i64: 4, 4, 16>}, {pipeline_mode = #tpu.pipeline_mode<synchronous>, transform_indices = @transform_11, window_bounds = array<i64: 1, 16>}, {pipeline_mode = #tpu.pipeline_mode<synchronous>, transform_indices = @transform_12, window_bounds = array<i64: 1, 16, 1>}, {pipeline_mode = #tpu.pipeline_mode<synchronous>, transform_indices = @transform_13, window_bounds = array<i64: 1, 16, 1>}, {pipeline_mode = #tpu.pipeline_mode<synchronous>, transform_indices = @transform_14, window_bounds = array<i64: 4, 16, 4>}, {pipeline_mode = #tpu.pipeline_mode<synchronous>, transform_indices = @transform_15, window_bounds = array<i64: 4, 1, 4>}, {pipeline_mode = #tpu.pipeline_mode<synchronous>, transform_indices = @transform_16, window_bounds = array<i64: 4, 16, 4>}, {pipeline_mode = #tpu.pipeline_mode<synchronous>, transform_indices = @transform_17, window_bounds = array<i64: 4, 1, 4>}, {pipeline_mode = #tpu.pipeline_mode<synchronous>, transform_indices = @transform_18, window_bounds = array<i64: 4, 16, 4>}, {pipeline_mode = #tpu.pipeline_mode<synchronous>, transform_indices = @transform_19, window_bounds = array<i64: 4, 1, 4>}, {pipeline_mode = #tpu.pipeline_mode<synchronous>, transform_indices = @transform_20, window_bounds = array<i64: 4, 4, 16>}, {pipeline_mode = #tpu.pipeline_mode<synchronous>, transform_indices = @transform_21, window_bounds = array<i64: 1, 16>}, {pipeline_mode = #tpu.pipeline_mode<synchronous>, transform_indices = @transform_22, window_bounds = array<i64: 1, 16, 1>}, {pipeline_mode = #tpu.pipeline_mode<synchronous>, transform_indices = @transform_23, window_bounds = array<i64: 1, 16, 1>}, {pipeline_mode = #tpu.pipeline_mode<synchronous>, transform_indices = @transform_24, window_bounds = array<i64: 16, 32>}, {pipeline_mode = #tpu.pipeline_mode<synchronous>, transform_indices = @transform_25, window_bounds = array<i64: 1, 32>}, {pipeline_mode = #tpu.pipeline_mode<synchronous>, transform_indices = @transform_26, window_bounds = array<i64: 32, 16>}, {pipeline_mode = #tpu.pipeline_mode<synchronous>, transform_indices = @transform_27, window_bounds = array<i64: 1, 16>}, {pipeline_mode = #tpu.pipeline_mode<synchronous>, transform_indices = @transform_28, window_bounds = array<i64: 1, 16, 1>}, {pipeline_mode = #tpu.pipeline_mode<synchronous>, transform_indices = @transform_29, window_bounds = array<i64: 1, 16, 1>}, {transform_indices = @transform_30, window_bounds = array<i64: 2, 16, 16>}]} {
    %c0 = arith.constant 0 : index
    %c0_0 = arith.constant 0 : index
    %c0_1 = arith.constant 0 : index
    %0 = vector.load %arg3[%c0, %c0_0, %c0_1] : memref<2x16x16xf32, #tpu.memory_space<vmem>>, vector<2x16x16xf32>
    %c0_2 = arith.constant 0 : index
    %c0_3 = arith.constant 0 : index
    %c0_4 = arith.constant 0 : index
    %1 = vector.load %arg4[%c0_2, %c0_3, %c0_4] : memref<2x16x16xf32, #tpu.memory_space<vmem>>, vector<2x16x16xf32>
    %c0_5 = arith.constant 0 : index
    %c0_6 = arith.constant 0 : index
    %c0_7 = arith.constant 0 : index
    %c0_8 = arith.constant 0 : index
    %2 = vector.load %arg1[%c0_5, %c0_6, %c0_7, %c0_8] : memref<2x1x16x16xbf16, #tpu.memory_space<vmem>>, vector<2x1x16x16xbf16>
    %3 = vector.shape_cast %2 : vector<2x1x16x16xbf16> to vector<2x16x16xbf16>
    %cst = arith.constant 0.000000e+00 : bf16
    %4 = vector.broadcast %cst : bf16 to vector<2x16x16xbf16>
    %5 = arith.cmpf oeq, %3, %4 : vector<2x16x16xbf16>
    %c0_9 = arith.constant 0 : index
    %c0_10 = arith.constant 0 : index
    %c0_11 = arith.constant 0 : index
    %c0_12 = arith.constant 0 : index
    %6 = vector.load %arg2[%c0_9, %c0_10, %c0_11, %c0_12] : memref<2x1x16x16xbf16, #tpu.memory_space<vmem>>, vector<2x1x16x16xbf16>
    %7 = vector.shape_cast %6 : vector<2x1x16x16xbf16> to vector<2x16x16xbf16>
    %cst_13 = arith.constant 0.000000e+00 : bf16
    %8 = vector.broadcast %cst_13 : bf16 to vector<2x16x16xbf16>
    %9 = arith.cmpf oeq, %7, %8 : vector<2x16x16xbf16>
    %10 = vector.shape_cast %0 : vector<2x16x16xf32> to vector<32x16xf32>
    %11 = arith.truncf %10 : vector<32x16xf32> to vector<32x16xbf16>
    %12 = vector.shape_cast %0 : vector<2x16x16xf32> to vector<32x16xf32>
    %13 = arith.truncf %12 : vector<32x16xf32> to vector<32x16xbf16>
    %cst_14 = arith.constant 0.000000e+00 : f32
    %14 = vector.broadcast %cst_14 : f32 to vector<32x16xf32>
    %c0_15 = arith.constant 0 : index
    %c0_16 = arith.constant 0 : index
    %c0_17 = arith.constant 0 : index
    %15 = vector.load %arg5[%c0_15, %c0_16, %c0_17] : memref<4x16x4xbf16, #tpu.memory_space<vmem>>, vector<1x16x4xbf16>
    %16 = vector.shape_cast %15 : vector<1x16x4xbf16> to vector<16x4xbf16>
    %cst_18 = arith.constant dense<0.000000e+00> : vector<32x4xf32>
    %17 = tpu.matmul %11, %16, %cst_18 {dimension_numbers = #tpu.dot_dimension_numbers<[1], [0], [0], [1], [0, 0, 1, 1], [], []>} : vector<32x16xbf16>, vector<16x4xbf16>, vector<32x4xf32> -> vector<32x4xf32>
    %c0_19 = arith.constant 0 : index
    %c0_20 = arith.constant 0 : index
    %c0_21 = arith.constant 0 : index
    %18 = vector.load %arg6[%c0_19, %c0_20, %c0_21] : memref<4x1x4xf32, #tpu.memory_space<vmem>>, vector<1x1x4xf32>
    %19 = vector.shape_cast %18 : vector<1x1x4xf32> to vector<1x4xf32>
    %20 = vector.broadcast %19 : vector<1x4xf32> to vector<32x4xf32>
    %21 = arith.addf %17, %20 : vector<32x4xf32>
    %cst_22 = arith.constant 5.000000e-01 : f32
    %22 = vector.broadcast %cst_22 : f32 to vector<32x4xf32>
    %23 = arith.mulf %21, %22 : vector<32x4xf32>
    %c0_23 = arith.constant 0 : index
    %c0_24 = arith.constant 0 : index
    %c0_25 = arith.constant 0 : index
    %24 = vector.load %arg7[%c0_23, %c0_24, %c0_25] : memref<4x16x4xbf16, #tpu.memory_space<vmem>>, vector<1x16x4xbf16>
    %25 = vector.shape_cast %24 : vector<1x16x4xbf16> to vector<16x4xbf16>
    %cst_26 = arith.constant dense<0.000000e+00> : vector<32x4xf32>
    %26 = tpu.matmul %13, %25, %cst_26 {dimension_numbers = #tpu.dot_dimension_numbers<[1], [0], [0], [1], [0, 0, 1, 1], [], []>} : vector<32x16xbf16>, vector<16x4xbf16>, vector<32x4xf32> -> vector<32x4xf32>
    %c0_27 = arith.constant 0 : index
    %c0_28 = arith.constant 0 : index
    %c0_29 = arith.constant 0 : index
    %27 = vector.load %arg8[%c0_27, %c0_28, %c0_29] : memref<4x1x4xf32, #tpu.memory_space<vmem>>, vector<1x1x4xf32>
    %28 = vector.shape_cast %27 : vector<1x1x4xf32> to vector<1x4xf32>
    %29 = vector.broadcast %28 : vector<1x4xf32> to vector<32x4xf32>
    %30 = arith.addf %26, %29 : vector<32x4xf32>
    %c0_30 = arith.constant 0 : index
    %c0_31 = arith.constant 0 : index
    %c0_32 = arith.constant 0 : index
    %31 = vector.load %arg9[%c0_30, %c0_31, %c0_32] : memref<4x16x4xbf16, #tpu.memory_space<vmem>>, vector<1x16x4xbf16>
    %32 = vector.shape_cast %31 : vector<1x16x4xbf16> to vector<16x4xbf16>
    %cst_33 = arith.constant dense<0.000000e+00> : vector<32x4xf32>
    %33 = tpu.matmul %13, %32, %cst_33 {dimension_numbers = #tpu.dot_dimension_numbers<[1], [0], [0], [1], [0, 0, 1, 1], [], []>} : vector<32x16xbf16>, vector<16x4xbf16>, vector<32x4xf32> -> vector<32x4xf32>
    %c0_34 = arith.constant 0 : index
    %c0_35 = arith.constant 0 : index
    %c0_36 = arith.constant 0 : index
    %34 = vector.load %arg10[%c0_34, %c0_35, %c0_36] : memref<4x1x4xf32, #tpu.memory_space<vmem>>, vector<1x1x4xf32>
    %35 = vector.shape_cast %34 : vector<1x1x4xf32> to vector<1x4xf32>
    %36 = vector.broadcast %35 : vector<1x4xf32> to vector<32x4xf32>
    %37 = arith.addf %33, %36 : vector<32x4xf32>
    %38 = arith.truncf %23 : vector<32x4xf32> to vector<32x4xbf16>
    %39 = vector.shape_cast %38 : vector<32x4xbf16> to vector<2x16x4xbf16>
    %40 = arith.truncf %30 : vector<32x4xf32> to vector<32x4xbf16>
    %41 = vector.shape_cast %40 : vector<32x4xbf16> to vector<2x16x4xbf16>
    %42 = arith.truncf %37 : vector<32x4xf32> to vector<32x4xbf16>
    %43 = vector.shape_cast %42 : vector<32x4xbf16> to vector<2x16x4xbf16>
    "tpu.trace_start"() <{level = 10 : i32, message = "bqd,bkd->bqk"}> : () -> ()
    %cst_37 = arith.constant dense<0.000000e+00> : vector<2x16x16xf32>
    %44 = tpu.matmul %39, %41, %cst_37 {dimension_numbers = #tpu.dot_dimension_numbers<[2], [2], [1], [1], [0, 0, 0, 1, 1, 1], [0], [0]>} : vector<2x16x4xbf16>, vector<2x16x4xbf16>, vector<2x16x16xf32> -> vector<2x16x16xf32>
    %cst_38 = arith.constant 9.99999971E-10 : f32
    "tpu.trace_stop"() : () -> ()
    %45 = vector.broadcast %cst_38 : f32 to vector<2x16x16xf32>
    %46 = arith.select %5, %45, %44 : vector<2x16x16xi1>, vector<2x16x16xf32>
    %cst_39 = arith.constant dense<0xFF800000> : vector<2x16xf32>
    %47 = vector.multi_reduction <maximumf>, %46, %cst_39 [2] : vector<2x16x16xf32> to vector<2x16xf32>
    %48 = vector.shape_cast %47 : vector<2x16xf32> to vector<2x16x1xf32>
    %49 = vector.broadcast %48 : vector<2x16x1xf32> to vector<2x16x16xf32>
    %50 = arith.subf %46, %49 : vector<2x16x16xf32>
    %51 = math.exp %50 : vector<2x16x16xf32>
    %cst_40 = arith.constant dense<0.000000e+00> : vector<2x16xf32>
    %52 = vector.multi_reduction <add>, %51, %cst_40 [2] : vector<2x16x16xf32> to vector<2x16xf32>
    %53 = vector.shape_cast %52 : vector<2x16xf32> to vector<2x16x1xf32>
    %54 = tpu.reciprocal %53 {approx = true} : vector<2x16x1xf32> -> vector<2x16x1xf32>
    %55 = vector.broadcast %54 : vector<2x16x1xf32> to vector<2x16x16xf32>
    %56 = arith.mulf %51, %55 : vector<2x16x16xf32>
    %57 = arith.truncf %56 : vector<2x16x16xf32> to vector<2x16x16xbf16>
    "tpu.trace_start"() <{level = 10 : i32, message = "bqk,bkd->bqd"}> : () -> ()
    %cst_41 = arith.constant dense<0.000000e+00> : vector<2x16x4xf32>
    %58 = tpu.matmul %57, %43, %cst_41 {dimension_numbers = #tpu.dot_dimension_numbers<[2], [1], [1], [2], [0, 0, 0, 1, 1, 2], [0], [0]>} : vector<2x16x16xbf16>, vector<2x16x4xbf16>, vector<2x16x4xf32> -> vector<2x16x4xf32>
    "tpu.trace_stop"() : () -> ()
    %59 = vector.shape_cast %58 : vector<2x16x4xf32> to vector<32x4xf32>
    %60 = arith.truncf %59 : vector<32x4xf32> to vector<32x4xbf16>
    %c0_42 = arith.constant 0 : index
    %c0_43 = arith.constant 0 : index
    %c0_44 = arith.constant 0 : index
    %61 = vector.load %arg11[%c0_42, %c0_43, %c0_44] : memref<4x4x16xbf16, #tpu.memory_space<vmem>>, vector<1x4x16xbf16>
    %62 = vector.shape_cast %61 : vector<1x4x16xbf16> to vector<4x16xbf16>
    %cst_45 = arith.constant dense<0.000000e+00> : vector<32x16xf32>
    %63 = tpu.matmul %60, %62, %cst_45 {dimension_numbers = #tpu.dot_dimension_numbers<[1], [0], [0], [1], [0, 0, 1, 1], [], []>} : vector<32x4xbf16>, vector<4x16xbf16>, vector<32x16xf32> -> vector<32x16xf32>
    %64 = arith.addf %14, %63 : vector<32x16xf32>
    %c1 = arith.constant 1 : index
    %c0_46 = arith.constant 0 : index
    %c0_47 = arith.constant 0 : index
    %65 = vector.load %arg5[%c1, %c0_46, %c0_47] : memref<4x16x4xbf16, #tpu.memory_space<vmem>>, vector<1x16x4xbf16>
    %66 = vector.shape_cast %65 : vector<1x16x4xbf16> to vector<16x4xbf16>
    %cst_48 = arith.constant dense<0.000000e+00> : vector<32x4xf32>
    %67 = tpu.matmul %11, %66, %cst_48 {dimension_numbers = #tpu.dot_dimension_numbers<[1], [0], [0], [1], [0, 0, 1, 1], [], []>} : vector<32x16xbf16>, vector<16x4xbf16>, vector<32x4xf32> -> vector<32x4xf32>
    %c1_49 = arith.constant 1 : index
    %c0_50 = arith.constant 0 : index
    %c0_51 = arith.constant 0 : index
    %68 = vector.load %arg6[%c1_49, %c0_50, %c0_51] : memref<4x1x4xf32, #tpu.memory_space<vmem>>, vector<1x1x4xf32>
    %69 = vector.shape_cast %68 : vector<1x1x4xf32> to vector<1x4xf32>
    %70 = vector.broadcast %69 : vector<1x4xf32> to vector<32x4xf32>
    %71 = arith.addf %67, %70 : vector<32x4xf32>
    %cst_52 = arith.constant 5.000000e-01 : f32
    %72 = vector.broadcast %cst_52 : f32 to vector<32x4xf32>
    %73 = arith.mulf %71, %72 : vector<32x4xf32>
    %c1_53 = arith.constant 1 : index
    %c0_54 = arith.constant 0 : index
    %c0_55 = arith.constant 0 : index
    %74 = vector.load %arg7[%c1_53, %c0_54, %c0_55] : memref<4x16x4xbf16, #tpu.memory_space<vmem>>, vector<1x16x4xbf16>
    %75 = vector.shape_cast %74 : vector<1x16x4xbf16> to vector<16x4xbf16>
    %cst_56 = arith.constant dense<0.000000e+00> : vector<32x4xf32>
    %76 = tpu.matmul %13, %75, %cst_56 {dimension_numbers = #tpu.dot_dimension_numbers<[1], [0], [0], [1], [0, 0, 1, 1], [], []>} : vector<32x16xbf16>, vector<16x4xbf16>, vector<32x4xf32> -> vector<32x4xf32>
    %c1_57 = arith.constant 1 : index
    %c0_58 = arith.constant 0 : index
    %c0_59 = arith.constant 0 : index
    %77 = vector.load %arg8[%c1_57, %c0_58, %c0_59] : memref<4x1x4xf32, #tpu.memory_space<vmem>>, vector<1x1x4xf32>
    %78 = vector.shape_cast %77 : vector<1x1x4xf32> to vector<1x4xf32>
    %79 = vector.broadcast %78 : vector<1x4xf32> to vector<32x4xf32>
    %80 = arith.addf %76, %79 : vector<32x4xf32>
    %c1_60 = arith.constant 1 : index
    %c0_61 = arith.constant 0 : index
    %c0_62 = arith.constant 0 : index
    %81 = vector.load %arg9[%c1_60, %c0_61, %c0_62] : memref<4x16x4xbf16, #tpu.memory_space<vmem>>, vector<1x16x4xbf16>
    %82 = vector.shape_cast %81 : vector<1x16x4xbf16> to vector<16x4xbf16>
    %cst_63 = arith.constant dense<0.000000e+00> : vector<32x4xf32>
    %83 = tpu.matmul %13, %82, %cst_63 {dimension_numbers = #tpu.dot_dimension_numbers<[1], [0], [0], [1], [0, 0, 1, 1], [], []>} : vector<32x16xbf16>, vector<16x4xbf16>, vector<32x4xf32> -> vector<32x4xf32>
    %c1_64 = arith.constant 1 : index
    %c0_65 = arith.constant 0 : index
    %c0_66 = arith.constant 0 : index
    %84 = vector.load %arg10[%c1_64, %c0_65, %c0_66] : memref<4x1x4xf32, #tpu.memory_space<vmem>>, vector<1x1x4xf32>
    %85 = vector.shape_cast %84 : vector<1x1x4xf32> to vector<1x4xf32>
    %86 = vector.broadcast %85 : vector<1x4xf32> to vector<32x4xf32>
    %87 = arith.addf %83, %86 : vector<32x4xf32>
    %88 = arith.truncf %73 : vector<32x4xf32> to vector<32x4xbf16>
    %89 = vector.shape_cast %88 : vector<32x4xbf16> to vector<2x16x4xbf16>
    %90 = arith.truncf %80 : vector<32x4xf32> to vector<32x4xbf16>
    %91 = vector.shape_cast %90 : vector<32x4xbf16> to vector<2x16x4xbf16>
    %92 = arith.truncf %87 : vector<32x4xf32> to vector<32x4xbf16>
    %93 = vector.shape_cast %92 : vector<32x4xbf16> to vector<2x16x4xbf16>
    "tpu.trace_start"() <{level = 10 : i32, message = "bqd,bkd->bqk"}> : () -> ()
    %cst_67 = arith.constant dense<0.000000e+00> : vector<2x16x16xf32>
    %94 = tpu.matmul %89, %91, %cst_67 {dimension_numbers = #tpu.dot_dimension_numbers<[2], [2], [1], [1], [0, 0, 0, 1, 1, 1], [0], [0]>} : vector<2x16x4xbf16>, vector<2x16x4xbf16>, vector<2x16x16xf32> -> vector<2x16x16xf32>
    %cst_68 = arith.constant 9.99999971E-10 : f32
    "tpu.trace_stop"() : () -> ()
    %95 = vector.broadcast %cst_68 : f32 to vector<2x16x16xf32>
    %96 = arith.select %5, %95, %94 : vector<2x16x16xi1>, vector<2x16x16xf32>
    %cst_69 = arith.constant dense<0xFF800000> : vector<2x16xf32>
    %97 = vector.multi_reduction <maximumf>, %96, %cst_69 [2] : vector<2x16x16xf32> to vector<2x16xf32>
    %98 = vector.shape_cast %97 : vector<2x16xf32> to vector<2x16x1xf32>
    %99 = vector.broadcast %98 : vector<2x16x1xf32> to vector<2x16x16xf32>
    %100 = arith.subf %96, %99 : vector<2x16x16xf32>
    %101 = math.exp %100 : vector<2x16x16xf32>
    %cst_70 = arith.constant dense<0.000000e+00> : vector<2x16xf32>
    %102 = vector.multi_reduction <add>, %101, %cst_70 [2] : vector<2x16x16xf32> to vector<2x16xf32>
    %103 = vector.shape_cast %102 : vector<2x16xf32> to vector<2x16x1xf32>
    %104 = tpu.reciprocal %103 {approx = true} : vector<2x16x1xf32> -> vector<2x16x1xf32>
    %105 = vector.broadcast %104 : vector<2x16x1xf32> to vector<2x16x16xf32>
    %106 = arith.mulf %101, %105 : vector<2x16x16xf32>
    %107 = arith.truncf %106 : vector<2x16x16xf32> to vector<2x16x16xbf16>
    "tpu.trace_start"() <{level = 10 : i32, message = "bqk,bkd->bqd"}> : () -> ()
    %cst_71 = arith.constant dense<0.000000e+00> : vector<2x16x4xf32>
    %108 = tpu.matmul %107, %93, %cst_71 {dimension_numbers = #tpu.dot_dimension_numbers<[2], [1], [1], [2], [0, 0, 0, 1, 1, 2], [0], [0]>} : vector<2x16x16xbf16>, vector<2x16x4xbf16>, vector<2x16x4xf32> -> vector<2x16x4xf32>
    "tpu.trace_stop"() : () -> ()
    %109 = vector.shape_cast %108 : vector<2x16x4xf32> to vector<32x4xf32>
    %110 = arith.truncf %109 : vector<32x4xf32> to vector<32x4xbf16>
    %c1_72 = arith.constant 1 : index
    %c0_73 = arith.constant 0 : index
    %c0_74 = arith.constant 0 : index
    %111 = vector.load %arg11[%c1_72, %c0_73, %c0_74] : memref<4x4x16xbf16, #tpu.memory_space<vmem>>, vector<1x4x16xbf16>
    %112 = vector.shape_cast %111 : vector<1x4x16xbf16> to vector<4x16xbf16>
    %cst_75 = arith.constant dense<0.000000e+00> : vector<32x16xf32>
    %113 = tpu.matmul %110, %112, %cst_75 {dimension_numbers = #tpu.dot_dimension_numbers<[1], [0], [0], [1], [0, 0, 1, 1], [], []>} : vector<32x4xbf16>, vector<4x16xbf16>, vector<32x16xf32> -> vector<32x16xf32>
    %114 = arith.addf %64, %113 : vector<32x16xf32>
    %c2 = arith.constant 2 : index
    %c0_76 = arith.constant 0 : index
    %c0_77 = arith.constant 0 : index
    %115 = vector.load %arg5[%c2, %c0_76, %c0_77] : memref<4x16x4xbf16, #tpu.memory_space<vmem>>, vector<1x16x4xbf16>
    %116 = vector.shape_cast %115 : vector<1x16x4xbf16> to vector<16x4xbf16>
    %cst_78 = arith.constant dense<0.000000e+00> : vector<32x4xf32>
    %117 = tpu.matmul %11, %116, %cst_78 {dimension_numbers = #tpu.dot_dimension_numbers<[1], [0], [0], [1], [0, 0, 1, 1], [], []>} : vector<32x16xbf16>, vector<16x4xbf16>, vector<32x4xf32> -> vector<32x4xf32>
    %c2_79 = arith.constant 2 : index
    %c0_80 = arith.constant 0 : index
    %c0_81 = arith.constant 0 : index
    %118 = vector.load %arg6[%c2_79, %c0_80, %c0_81] : memref<4x1x4xf32, #tpu.memory_space<vmem>>, vector<1x1x4xf32>
    %119 = vector.shape_cast %118 : vector<1x1x4xf32> to vector<1x4xf32>
    %120 = vector.broadcast %119 : vector<1x4xf32> to vector<32x4xf32>
    %121 = arith.addf %117, %120 : vector<32x4xf32>
    %cst_82 = arith.constant 5.000000e-01 : f32
    %122 = vector.broadcast %cst_82 : f32 to vector<32x4xf32>
    %123 = arith.mulf %121, %122 : vector<32x4xf32>
    %c2_83 = arith.constant 2 : index
    %c0_84 = arith.constant 0 : index
    %c0_85 = arith.constant 0 : index
    %124 = vector.load %arg7[%c2_83, %c0_84, %c0_85] : memref<4x16x4xbf16, #tpu.memory_space<vmem>>, vector<1x16x4xbf16>
    %125 = vector.shape_cast %124 : vector<1x16x4xbf16> to vector<16x4xbf16>
    %cst_86 = arith.constant dense<0.000000e+00> : vector<32x4xf32>
    %126 = tpu.matmul %13, %125, %cst_86 {dimension_numbers = #tpu.dot_dimension_numbers<[1], [0], [0], [1], [0, 0, 1, 1], [], []>} : vector<32x16xbf16>, vector<16x4xbf16>, vector<32x4xf32> -> vector<32x4xf32>
    %c2_87 = arith.constant 2 : index
    %c0_88 = arith.constant 0 : index
    %c0_89 = arith.constant 0 : index
    %127 = vector.load %arg8[%c2_87, %c0_88, %c0_89] : memref<4x1x4xf32, #tpu.memory_space<vmem>>, vector<1x1x4xf32>
    %128 = vector.shape_cast %127 : vector<1x1x4xf32> to vector<1x4xf32>
    %129 = vector.broadcast %128 : vector<1x4xf32> to vector<32x4xf32>
    %130 = arith.addf %126, %129 : vector<32x4xf32>
    %c2_90 = arith.constant 2 : index
    %c0_91 = arith.constant 0 : index
    %c0_92 = arith.constant 0 : index
    %131 = vector.load %arg9[%c2_90, %c0_91, %c0_92] : memref<4x16x4xbf16, #tpu.memory_space<vmem>>, vector<1x16x4xbf16>
    %132 = vector.shape_cast %131 : vector<1x16x4xbf16> to vector<16x4xbf16>
    %cst_93 = arith.constant dense<0.000000e+00> : vector<32x4xf32>
    %133 = tpu.matmul %13, %132, %cst_93 {dimension_numbers = #tpu.dot_dimension_numbers<[1], [0], [0], [1], [0, 0, 1, 1], [], []>} : vector<32x16xbf16>, vector<16x4xbf16>, vector<32x4xf32> -> vector<32x4xf32>
    %c2_94 = arith.constant 2 : index
    %c0_95 = arith.constant 0 : index
    %c0_96 = arith.constant 0 : index
    %134 = vector.load %arg10[%c2_94, %c0_95, %c0_96] : memref<4x1x4xf32, #tpu.memory_space<vmem>>, vector<1x1x4xf32>
    %135 = vector.shape_cast %134 : vector<1x1x4xf32> to vector<1x4xf32>
    %136 = vector.broadcast %135 : vector<1x4xf32> to vector<32x4xf32>
    %137 = arith.addf %133, %136 : vector<32x4xf32>
    %138 = arith.truncf %123 : vector<32x4xf32> to vector<32x4xbf16>
    %139 = vector.shape_cast %138 : vector<32x4xbf16> to vector<2x16x4xbf16>
    %140 = arith.truncf %130 : vector<32x4xf32> to vector<32x4xbf16>
    %141 = vector.shape_cast %140 : vector<32x4xbf16> to vector<2x16x4xbf16>
    %142 = arith.truncf %137 : vector<32x4xf32> to vector<32x4xbf16>
    %143 = vector.shape_cast %142 : vector<32x4xbf16> to vector<2x16x4xbf16>
    "tpu.trace_start"() <{level = 10 : i32, message = "bqd,bkd->bqk"}> : () -> ()
    %cst_97 = arith.constant dense<0.000000e+00> : vector<2x16x16xf32>
    %144 = tpu.matmul %139, %141, %cst_97 {dimension_numbers = #tpu.dot_dimension_numbers<[2], [2], [1], [1], [0, 0, 0, 1, 1, 1], [0], [0]>} : vector<2x16x4xbf16>, vector<2x16x4xbf16>, vector<2x16x16xf32> -> vector<2x16x16xf32>
    %cst_98 = arith.constant 9.99999971E-10 : f32
    "tpu.trace_stop"() : () -> ()
    %145 = vector.broadcast %cst_98 : f32 to vector<2x16x16xf32>
    %146 = arith.select %5, %145, %144 : vector<2x16x16xi1>, vector<2x16x16xf32>
    %cst_99 = arith.constant dense<0xFF800000> : vector<2x16xf32>
    %147 = vector.multi_reduction <maximumf>, %146, %cst_99 [2] : vector<2x16x16xf32> to vector<2x16xf32>
    %148 = vector.shape_cast %147 : vector<2x16xf32> to vector<2x16x1xf32>
    %149 = vector.broadcast %148 : vector<2x16x1xf32> to vector<2x16x16xf32>
    %150 = arith.subf %146, %149 : vector<2x16x16xf32>
    %151 = math.exp %150 : vector<2x16x16xf32>
    %cst_100 = arith.constant dense<0.000000e+00> : vector<2x16xf32>
    %152 = vector.multi_reduction <add>, %151, %cst_100 [2] : vector<2x16x16xf32> to vector<2x16xf32>
    %153 = vector.shape_cast %152 : vector<2x16xf32> to vector<2x16x1xf32>
    %154 = tpu.reciprocal %153 {approx = true} : vector<2x16x1xf32> -> vector<2x16x1xf32>
    %155 = vector.broadcast %154 : vector<2x16x1xf32> to vector<2x16x16xf32>
    %156 = arith.mulf %151, %155 : vector<2x16x16xf32>
    %157 = arith.truncf %156 : vector<2x16x16xf32> to vector<2x16x16xbf16>
    "tpu.trace_start"() <{level = 10 : i32, message = "bqk,bkd->bqd"}> : () -> ()
    %cst_101 = arith.constant dense<0.000000e+00> : vector<2x16x4xf32>
    %158 = tpu.matmul %157, %143, %cst_101 {dimension_numbers = #tpu.dot_dimension_numbers<[2], [1], [1], [2], [0, 0, 0, 1, 1, 2], [0], [0]>} : vector<2x16x16xbf16>, vector<2x16x4xbf16>, vector<2x16x4xf32> -> vector<2x16x4xf32>
    "tpu.trace_stop"() : () -> ()
    %159 = vector.shape_cast %158 : vector<2x16x4xf32> to vector<32x4xf32>
    %160 = arith.truncf %159 : vector<32x4xf32> to vector<32x4xbf16>
    %c2_102 = arith.constant 2 : index
    %c0_103 = arith.constant 0 : index
    %c0_104 = arith.constant 0 : index
    %161 = vector.load %arg11[%c2_102, %c0_103, %c0_104] : memref<4x4x16xbf16, #tpu.memory_space<vmem>>, vector<1x4x16xbf16>
    %162 = vector.shape_cast %161 : vector<1x4x16xbf16> to vector<4x16xbf16>
    %cst_105 = arith.constant dense<0.000000e+00> : vector<32x16xf32>
    %163 = tpu.matmul %160, %162, %cst_105 {dimension_numbers = #tpu.dot_dimension_numbers<[1], [0], [0], [1], [0, 0, 1, 1], [], []>} : vector<32x4xbf16>, vector<4x16xbf16>, vector<32x16xf32> -> vector<32x16xf32>
    %164 = arith.addf %114, %163 : vector<32x16xf32>
    %c3 = arith.constant 3 : index
    %c0_106 = arith.constant 0 : index
    %c0_107 = arith.constant 0 : index
    %165 = vector.load %arg5[%c3, %c0_106, %c0_107] : memref<4x16x4xbf16, #tpu.memory_space<vmem>>, vector<1x16x4xbf16>
    %166 = vector.shape_cast %165 : vector<1x16x4xbf16> to vector<16x4xbf16>
    %cst_108 = arith.constant dense<0.000000e+00> : vector<32x4xf32>
    %167 = tpu.matmul %11, %166, %cst_108 {dimension_numbers = #tpu.dot_dimension_numbers<[1], [0], [0], [1], [0, 0, 1, 1], [], []>} : vector<32x16xbf16>, vector<16x4xbf16>, vector<32x4xf32> -> vector<32x4xf32>
    %c3_109 = arith.constant 3 : index
    %c0_110 = arith.constant 0 : index
    %c0_111 = arith.constant 0 : index
    %168 = vector.load %arg6[%c3_109, %c0_110, %c0_111] : memref<4x1x4xf32, #tpu.memory_space<vmem>>, vector<1x1x4xf32>
    %169 = vector.shape_cast %168 : vector<1x1x4xf32> to vector<1x4xf32>
    %170 = vector.broadcast %169 : vector<1x4xf32> to vector<32x4xf32>
    %171 = arith.addf %167, %170 : vector<32x4xf32>
    %cst_112 = arith.constant 5.000000e-01 : f32
    %172 = vector.broadcast %cst_112 : f32 to vector<32x4xf32>
    %173 = arith.mulf %171, %172 : vector<32x4xf32>
    %c3_113 = arith.constant 3 : index
    %c0_114 = arith.constant 0 : index
    %c0_115 = arith.constant 0 : index
    %174 = vector.load %arg7[%c3_113, %c0_114, %c0_115] : memref<4x16x4xbf16, #tpu.memory_space<vmem>>, vector<1x16x4xbf16>
    %175 = vector.shape_cast %174 : vector<1x16x4xbf16> to vector<16x4xbf16>
    %cst_116 = arith.constant dense<0.000000e+00> : vector<32x4xf32>
    %176 = tpu.matmul %13, %175, %cst_116 {dimension_numbers = #tpu.dot_dimension_numbers<[1], [0], [0], [1], [0, 0, 1, 1], [], []>} : vector<32x16xbf16>, vector<16x4xbf16>, vector<32x4xf32> -> vector<32x4xf32>
    %c3_117 = arith.constant 3 : index
    %c0_118 = arith.constant 0 : index
    %c0_119 = arith.constant 0 : index
    %177 = vector.load %arg8[%c3_117, %c0_118, %c0_119] : memref<4x1x4xf32, #tpu.memory_space<vmem>>, vector<1x1x4xf32>
    %178 = vector.shape_cast %177 : vector<1x1x4xf32> to vector<1x4xf32>
    %179 = vector.broadcast %178 : vector<1x4xf32> to vector<32x4xf32>
    %180 = arith.addf %176, %179 : vector<32x4xf32>
    %c3_120 = arith.constant 3 : index
    %c0_121 = arith.constant 0 : index
    %c0_122 = arith.constant 0 : index
    %181 = vector.load %arg9[%c3_120, %c0_121, %c0_122] : memref<4x16x4xbf16, #tpu.memory_space<vmem>>, vector<1x16x4xbf16>
    %182 = vector.shape_cast %181 : vector<1x16x4xbf16> to vector<16x4xbf16>
    %cst_123 = arith.constant dense<0.000000e+00> : vector<32x4xf32>
    %183 = tpu.matmul %13, %182, %cst_123 {dimension_numbers = #tpu.dot_dimension_numbers<[1], [0], [0], [1], [0, 0, 1, 1], [], []>} : vector<32x16xbf16>, vector<16x4xbf16>, vector<32x4xf32> -> vector<32x4xf32>
    %c3_124 = arith.constant 3 : index
    %c0_125 = arith.constant 0 : index
    %c0_126 = arith.constant 0 : index
    %184 = vector.load %arg10[%c3_124, %c0_125, %c0_126] : memref<4x1x4xf32, #tpu.memory_space<vmem>>, vector<1x1x4xf32>
    %185 = vector.shape_cast %184 : vector<1x1x4xf32> to vector<1x4xf32>
    %186 = vector.broadcast %185 : vector<1x4xf32> to vector<32x4xf32>
    %187 = arith.addf %183, %186 : vector<32x4xf32>
    %188 = arith.truncf %173 : vector<32x4xf32> to vector<32x4xbf16>
    %189 = vector.shape_cast %188 : vector<32x4xbf16> to vector<2x16x4xbf16>
    %190 = arith.truncf %180 : vector<32x4xf32> to vector<32x4xbf16>
    %191 = vector.shape_cast %190 : vector<32x4xbf16> to vector<2x16x4xbf16>
    %192 = arith.truncf %187 : vector<32x4xf32> to vector<32x4xbf16>
    %193 = vector.shape_cast %192 : vector<32x4xbf16> to vector<2x16x4xbf16>
    "tpu.trace_start"() <{level = 10 : i32, message = "bqd,bkd->bqk"}> : () -> ()
    %cst_127 = arith.constant dense<0.000000e+00> : vector<2x16x16xf32>
    %194 = tpu.matmul %189, %191, %cst_127 {dimension_numbers = #tpu.dot_dimension_numbers<[2], [2], [1], [1], [0, 0, 0, 1, 1, 1], [0], [0]>} : vector<2x16x4xbf16>, vector<2x16x4xbf16>, vector<2x16x16xf32> -> vector<2x16x16xf32>
    %cst_128 = arith.constant 9.99999971E-10 : f32
    "tpu.trace_stop"() : () -> ()
    %195 = vector.broadcast %cst_128 : f32 to vector<2x16x16xf32>
    %196 = arith.select %5, %195, %194 : vector<2x16x16xi1>, vector<2x16x16xf32>
    %cst_129 = arith.constant dense<0xFF800000> : vector<2x16xf32>
    %197 = vector.multi_reduction <maximumf>, %196, %cst_129 [2] : vector<2x16x16xf32> to vector<2x16xf32>
    %198 = vector.shape_cast %197 : vector<2x16xf32> to vector<2x16x1xf32>
    %199 = vector.broadcast %198 : vector<2x16x1xf32> to vector<2x16x16xf32>
    %200 = arith.subf %196, %199 : vector<2x16x16xf32>
    %201 = math.exp %200 : vector<2x16x16xf32>
    %cst_130 = arith.constant dense<0.000000e+00> : vector<2x16xf32>
    %202 = vector.multi_reduction <add>, %201, %cst_130 [2] : vector<2x16x16xf32> to vector<2x16xf32>
    %203 = vector.shape_cast %202 : vector<2x16xf32> to vector<2x16x1xf32>
    %204 = tpu.reciprocal %203 {approx = true} : vector<2x16x1xf32> -> vector<2x16x1xf32>
    %205 = vector.broadcast %204 : vector<2x16x1xf32> to vector<2x16x16xf32>
    %206 = arith.mulf %201, %205 : vector<2x16x16xf32>
    %207 = arith.truncf %206 : vector<2x16x16xf32> to vector<2x16x16xbf16>
    "tpu.trace_start"() <{level = 10 : i32, message = "bqk,bkd->bqd"}> : () -> ()
    %cst_131 = arith.constant dense<0.000000e+00> : vector<2x16x4xf32>
    %208 = tpu.matmul %207, %193, %cst_131 {dimension_numbers = #tpu.dot_dimension_numbers<[2], [1], [1], [2], [0, 0, 0, 1, 1, 2], [0], [0]>} : vector<2x16x16xbf16>, vector<2x16x4xbf16>, vector<2x16x4xf32> -> vector<2x16x4xf32>
    "tpu.trace_stop"() : () -> ()
    %209 = vector.shape_cast %208 : vector<2x16x4xf32> to vector<32x4xf32>
    %210 = arith.truncf %209 : vector<32x4xf32> to vector<32x4xbf16>
    %c3_132 = arith.constant 3 : index
    %c0_133 = arith.constant 0 : index
    %c0_134 = arith.constant 0 : index
    %211 = vector.load %arg11[%c3_132, %c0_133, %c0_134] : memref<4x4x16xbf16, #tpu.memory_space<vmem>>, vector<1x4x16xbf16>
    %212 = vector.shape_cast %211 : vector<1x4x16xbf16> to vector<4x16xbf16>
    %cst_135 = arith.constant dense<0.000000e+00> : vector<32x16xf32>
    %213 = tpu.matmul %210, %212, %cst_135 {dimension_numbers = #tpu.dot_dimension_numbers<[1], [0], [0], [1], [0, 0, 1, 1], [], []>} : vector<32x4xbf16>, vector<4x16xbf16>, vector<32x16xf32> -> vector<32x16xf32>
    %214 = arith.addf %164, %213 : vector<32x16xf32>
    %c0_136 = arith.constant 0 : index
    %c0_137 = arith.constant 0 : index
    %215 = vector.load %arg12[%c0_136, %c0_137] : memref<1x16xf32, #tpu.memory_space<vmem>>, vector<1x16xf32>
    %216 = vector.broadcast %215 : vector<1x16xf32> to vector<32x16xf32>
    %217 = arith.addf %214, %216 : vector<32x16xf32>
    %218 = vector.shape_cast %217 : vector<32x16xf32> to vector<2x16x16xf32>
    %219 = arith.addf %218, %0 : vector<2x16x16xf32>
    %cst_138 = arith.constant dense<0.000000e+00> : vector<2x16xf32>
    %220 = vector.multi_reduction <add>, %219, %cst_138 [2] : vector<2x16x16xf32> to vector<2x16xf32>
    %221 = vector.shape_cast %220 : vector<2x16xf32> to vector<2x16x1xf32>
    %cst_139 = arith.constant 1.600000e+01 : f32
    %222 = vector.broadcast %cst_139 : f32 to vector<2x16x1xf32>
    %223 = arith.divf %221, %222 : vector<2x16x1xf32>
    %224 = vector.broadcast %223 : vector<2x16x1xf32> to vector<2x16x16xf32>
    %225 = arith.subf %219, %224 : vector<2x16x16xf32>
    %226 = arith.mulf %225, %225 : vector<2x16x16xf32>
    %cst_140 = arith.constant dense<0.000000e+00> : vector<2x16xf32>
    %227 = vector.multi_reduction <add>, %226, %cst_140 [2] : vector<2x16x16xf32> to vector<2x16xf32>
    %228 = vector.shape_cast %227 : vector<2x16xf32> to vector<2x16x1xf32>
    %cst_141 = arith.constant 1.600000e+01 : f32
    %229 = vector.broadcast %cst_141 : f32 to vector<2x16x1xf32>
    %230 = arith.divf %228, %229 : vector<2x16x1xf32>
    %231 = vector.broadcast %223 : vector<2x16x1xf32> to vector<2x16x16xf32>
    %232 = arith.subf %219, %231 : vector<2x16x16xf32>
    %cst_142 = arith.constant 9.99999997E-7 : f32
    %233 = vector.broadcast %cst_142 : f32 to vector<2x16x1xf32>
    %234 = arith.addf %230, %233 : vector<2x16x1xf32>
    %235 = math.rsqrt %234 : vector<2x16x1xf32>
    %236 = vector.broadcast %235 : vector<2x16x1xf32> to vector<2x16x16xf32>
    %237 = arith.mulf %232, %236 : vector<2x16x16xf32>
    %c0_143 = arith.constant 0 : index
    %c0_144 = arith.constant 0 : index
    %c0_145 = arith.constant 0 : index
    %238 = vector.load %arg13[%c0_143, %c0_144, %c0_145] : memref<1x16x1xf32, #tpu.memory_space<vmem>>, vector<1x16x1xf32>
    %239 = vector.broadcast %238 : vector<1x16x1xf32> to vector<2x16x16xf32>
    %240 = arith.mulf %239, %237 : vector<2x16x16xf32>
    %c0_146 = arith.constant 0 : index
    %c0_147 = arith.constant 0 : index
    %c0_148 = arith.constant 0 : index
    %241 = vector.load %arg14[%c0_146, %c0_147, %c0_148] : memref<1x16x1xf32, #tpu.memory_space<vmem>>, vector<1x16x1xf32>
    %242 = vector.broadcast %241 : vector<1x16x1xf32> to vector<2x16x16xf32>
    %243 = arith.addf %240, %242 : vector<2x16x16xf32>
    %244 = vector.shape_cast %243 : vector<2x16x16xf32> to vector<32x16xf32>
    %245 = arith.truncf %244 : vector<32x16xf32> to vector<32x16xbf16>
    %246 = vector.shape_cast %1 : vector<2x16x16xf32> to vector<32x16xf32>
    %247 = arith.truncf %246 : vector<32x16xf32> to vector<32x16xbf16>
    %cst_149 = arith.constant 0.000000e+00 : f32
    %248 = vector.broadcast %cst_149 : f32 to vector<32x16xf32>
    %c0_150 = arith.constant 0 : index
    %c0_151 = arith.constant 0 : index
    %c0_152 = arith.constant 0 : index
    %249 = vector.load %arg15[%c0_150, %c0_151, %c0_152] : memref<4x16x4xbf16, #tpu.memory_space<vmem>>, vector<1x16x4xbf16>
    %250 = vector.shape_cast %249 : vector<1x16x4xbf16> to vector<16x4xbf16>
    %cst_153 = arith.constant dense<0.000000e+00> : vector<32x4xf32>
    %251 = tpu.matmul %245, %250, %cst_153 {dimension_numbers = #tpu.dot_dimension_numbers<[1], [0], [0], [1], [0, 0, 1, 1], [], []>} : vector<32x16xbf16>, vector<16x4xbf16>, vector<32x4xf32> -> vector<32x4xf32>
    %c0_154 = arith.constant 0 : index
    %c0_155 = arith.constant 0 : index
    %c0_156 = arith.constant 0 : index
    %252 = vector.load %arg16[%c0_154, %c0_155, %c0_156] : memref<4x1x4xf32, #tpu.memory_space<vmem>>, vector<1x1x4xf32>
    %253 = vector.shape_cast %252 : vector<1x1x4xf32> to vector<1x4xf32>
    %254 = vector.broadcast %253 : vector<1x4xf32> to vector<32x4xf32>
    %255 = arith.addf %251, %254 : vector<32x4xf32>
    %cst_157 = arith.constant 5.000000e-01 : f32
    %256 = vector.broadcast %cst_157 : f32 to vector<32x4xf32>
    %257 = arith.mulf %255, %256 : vector<32x4xf32>
    %c0_158 = arith.constant 0 : index
    %c0_159 = arith.constant 0 : index
    %c0_160 = arith.constant 0 : index
    %258 = vector.load %arg17[%c0_158, %c0_159, %c0_160] : memref<4x16x4xbf16, #tpu.memory_space<vmem>>, vector<1x16x4xbf16>
    %259 = vector.shape_cast %258 : vector<1x16x4xbf16> to vector<16x4xbf16>
    %cst_161 = arith.constant dense<0.000000e+00> : vector<32x4xf32>
    %260 = tpu.matmul %247, %259, %cst_161 {dimension_numbers = #tpu.dot_dimension_numbers<[1], [0], [0], [1], [0, 0, 1, 1], [], []>} : vector<32x16xbf16>, vector<16x4xbf16>, vector<32x4xf32> -> vector<32x4xf32>
    %c0_162 = arith.constant 0 : index
    %c0_163 = arith.constant 0 : index
    %c0_164 = arith.constant 0 : index
    %261 = vector.load %arg18[%c0_162, %c0_163, %c0_164] : memref<4x1x4xf32, #tpu.memory_space<vmem>>, vector<1x1x4xf32>
    %262 = vector.shape_cast %261 : vector<1x1x4xf32> to vector<1x4xf32>
    %263 = vector.broadcast %262 : vector<1x4xf32> to vector<32x4xf32>
    %264 = arith.addf %260, %263 : vector<32x4xf32>
    %c0_165 = arith.constant 0 : index
    %c0_166 = arith.constant 0 : index
    %c0_167 = arith.constant 0 : index
    %265 = vector.load %arg19[%c0_165, %c0_166, %c0_167] : memref<4x16x4xbf16, #tpu.memory_space<vmem>>, vector<1x16x4xbf16>
    %266 = vector.shape_cast %265 : vector<1x16x4xbf16> to vector<16x4xbf16>
    %cst_168 = arith.constant dense<0.000000e+00> : vector<32x4xf32>
    %267 = tpu.matmul %247, %266, %cst_168 {dimension_numbers = #tpu.dot_dimension_numbers<[1], [0], [0], [1], [0, 0, 1, 1], [], []>} : vector<32x16xbf16>, vector<16x4xbf16>, vector<32x4xf32> -> vector<32x4xf32>
    %c0_169 = arith.constant 0 : index
    %c0_170 = arith.constant 0 : index
    %c0_171 = arith.constant 0 : index
    %268 = vector.load %arg20[%c0_169, %c0_170, %c0_171] : memref<4x1x4xf32, #tpu.memory_space<vmem>>, vector<1x1x4xf32>
    %269 = vector.shape_cast %268 : vector<1x1x4xf32> to vector<1x4xf32>
    %270 = vector.broadcast %269 : vector<1x4xf32> to vector<32x4xf32>
    %271 = arith.addf %267, %270 : vector<32x4xf32>
    %272 = arith.truncf %257 : vector<32x4xf32> to vector<32x4xbf16>
    %273 = vector.shape_cast %272 : vector<32x4xbf16> to vector<2x16x4xbf16>
    %274 = arith.truncf %264 : vector<32x4xf32> to vector<32x4xbf16>
    %275 = vector.shape_cast %274 : vector<32x4xbf16> to vector<2x16x4xbf16>
    %276 = arith.truncf %271 : vector<32x4xf32> to vector<32x4xbf16>
    %277 = vector.shape_cast %276 : vector<32x4xbf16> to vector<2x16x4xbf16>
    "tpu.trace_start"() <{level = 10 : i32, message = "bqd,bkd->bqk"}> : () -> ()
    %cst_172 = arith.constant dense<0.000000e+00> : vector<2x16x16xf32>
    %278 = tpu.matmul %273, %275, %cst_172 {dimension_numbers = #tpu.dot_dimension_numbers<[2], [2], [1], [1], [0, 0, 0, 1, 1, 1], [0], [0]>} : vector<2x16x4xbf16>, vector<2x16x4xbf16>, vector<2x16x16xf32> -> vector<2x16x16xf32>
    %cst_173 = arith.constant 9.99999971E-10 : f32
    "tpu.trace_stop"() : () -> ()
    %279 = vector.broadcast %cst_173 : f32 to vector<2x16x16xf32>
    %280 = arith.select %9, %279, %278 : vector<2x16x16xi1>, vector<2x16x16xf32>
    %cst_174 = arith.constant dense<0xFF800000> : vector<2x16xf32>
    %281 = vector.multi_reduction <maximumf>, %280, %cst_174 [2] : vector<2x16x16xf32> to vector<2x16xf32>
    %282 = vector.shape_cast %281 : vector<2x16xf32> to vector<2x16x1xf32>
    %283 = vector.broadcast %282 : vector<2x16x1xf32> to vector<2x16x16xf32>
    %284 = arith.subf %280, %283 : vector<2x16x16xf32>
    %285 = math.exp %284 : vector<2x16x16xf32>
    %cst_175 = arith.constant dense<0.000000e+00> : vector<2x16xf32>
    %286 = vector.multi_reduction <add>, %285, %cst_175 [2] : vector<2x16x16xf32> to vector<2x16xf32>
    %287 = vector.shape_cast %286 : vector<2x16xf32> to vector<2x16x1xf32>
    %288 = tpu.reciprocal %287 {approx = true} : vector<2x16x1xf32> -> vector<2x16x1xf32>
    %289 = vector.broadcast %288 : vector<2x16x1xf32> to vector<2x16x16xf32>
    %290 = arith.mulf %285, %289 : vector<2x16x16xf32>
    %291 = arith.truncf %290 : vector<2x16x16xf32> to vector<2x16x16xbf16>
    "tpu.trace_start"() <{level = 10 : i32, message = "bqk,bkd->bqd"}> : () -> ()
    %cst_176 = arith.constant dense<0.000000e+00> : vector<2x16x4xf32>
    %292 = tpu.matmul %291, %277, %cst_176 {dimension_numbers = #tpu.dot_dimension_numbers<[2], [1], [1], [2], [0, 0, 0, 1, 1, 2], [0], [0]>} : vector<2x16x16xbf16>, vector<2x16x4xbf16>, vector<2x16x4xf32> -> vector<2x16x4xf32>
    "tpu.trace_stop"() : () -> ()
    %293 = vector.shape_cast %292 : vector<2x16x4xf32> to vector<32x4xf32>
    %294 = arith.truncf %293 : vector<32x4xf32> to vector<32x4xbf16>
    %c0_177 = arith.constant 0 : index
    %c0_178 = arith.constant 0 : index
    %c0_179 = arith.constant 0 : index
    %295 = vector.load %arg21[%c0_177, %c0_178, %c0_179] : memref<4x4x16xbf16, #tpu.memory_space<vmem>>, vector<1x4x16xbf16>
    %296 = vector.shape_cast %295 : vector<1x4x16xbf16> to vector<4x16xbf16>
    %cst_180 = arith.constant dense<0.000000e+00> : vector<32x16xf32>
    %297 = tpu.matmul %294, %296, %cst_180 {dimension_numbers = #tpu.dot_dimension_numbers<[1], [0], [0], [1], [0, 0, 1, 1], [], []>} : vector<32x4xbf16>, vector<4x16xbf16>, vector<32x16xf32> -> vector<32x16xf32>
    %298 = arith.addf %248, %297 : vector<32x16xf32>
    %c1_181 = arith.constant 1 : index
    %c0_182 = arith.constant 0 : index
    %c0_183 = arith.constant 0 : index
    %299 = vector.load %arg15[%c1_181, %c0_182, %c0_183] : memref<4x16x4xbf16, #tpu.memory_space<vmem>>, vector<1x16x4xbf16>
    %300 = vector.shape_cast %299 : vector<1x16x4xbf16> to vector<16x4xbf16>
    %cst_184 = arith.constant dense<0.000000e+00> : vector<32x4xf32>
    %301 = tpu.matmul %245, %300, %cst_184 {dimension_numbers = #tpu.dot_dimension_numbers<[1], [0], [0], [1], [0, 0, 1, 1], [], []>} : vector<32x16xbf16>, vector<16x4xbf16>, vector<32x4xf32> -> vector<32x4xf32>
    %c1_185 = arith.constant 1 : index
    %c0_186 = arith.constant 0 : index
    %c0_187 = arith.constant 0 : index
    %302 = vector.load %arg16[%c1_185, %c0_186, %c0_187] : memref<4x1x4xf32, #tpu.memory_space<vmem>>, vector<1x1x4xf32>
    %303 = vector.shape_cast %302 : vector<1x1x4xf32> to vector<1x4xf32>
    %304 = vector.broadcast %303 : vector<1x4xf32> to vector<32x4xf32>
    %305 = arith.addf %301, %304 : vector<32x4xf32>
    %cst_188 = arith.constant 5.000000e-01 : f32
    %306 = vector.broadcast %cst_188 : f32 to vector<32x4xf32>
    %307 = arith.mulf %305, %306 : vector<32x4xf32>
    %c1_189 = arith.constant 1 : index
    %c0_190 = arith.constant 0 : index
    %c0_191 = arith.constant 0 : index
    %308 = vector.load %arg17[%c1_189, %c0_190, %c0_191] : memref<4x16x4xbf16, #tpu.memory_space<vmem>>, vector<1x16x4xbf16>
    %309 = vector.shape_cast %308 : vector<1x16x4xbf16> to vector<16x4xbf16>
    %cst_192 = arith.constant dense<0.000000e+00> : vector<32x4xf32>
    %310 = tpu.matmul %247, %309, %cst_192 {dimension_numbers = #tpu.dot_dimension_numbers<[1], [0], [0], [1], [0, 0, 1, 1], [], []>} : vector<32x16xbf16>, vector<16x4xbf16>, vector<32x4xf32> -> vector<32x4xf32>
    %c1_193 = arith.constant 1 : index
    %c0_194 = arith.constant 0 : index
    %c0_195 = arith.constant 0 : index
    %311 = vector.load %arg18[%c1_193, %c0_194, %c0_195] : memref<4x1x4xf32, #tpu.memory_space<vmem>>, vector<1x1x4xf32>
    %312 = vector.shape_cast %311 : vector<1x1x4xf32> to vector<1x4xf32>
    %313 = vector.broadcast %312 : vector<1x4xf32> to vector<32x4xf32>
    %314 = arith.addf %310, %313 : vector<32x4xf32>
    %c1_196 = arith.constant 1 : index
    %c0_197 = arith.constant 0 : index
    %c0_198 = arith.constant 0 : index
    %315 = vector.load %arg19[%c1_196, %c0_197, %c0_198] : memref<4x16x4xbf16, #tpu.memory_space<vmem>>, vector<1x16x4xbf16>
    %316 = vector.shape_cast %315 : vector<1x16x4xbf16> to vector<16x4xbf16>
    %cst_199 = arith.constant dense<0.000000e+00> : vector<32x4xf32>
    %317 = tpu.matmul %247, %316, %cst_199 {dimension_numbers = #tpu.dot_dimension_numbers<[1], [0], [0], [1], [0, 0, 1, 1], [], []>} : vector<32x16xbf16>, vector<16x4xbf16>, vector<32x4xf32> -> vector<32x4xf32>
    %c1_200 = arith.constant 1 : index
    %c0_201 = arith.constant 0 : index
    %c0_202 = arith.constant 0 : index
    %318 = vector.load %arg20[%c1_200, %c0_201, %c0_202] : memref<4x1x4xf32, #tpu.memory_space<vmem>>, vector<1x1x4xf32>
    %319 = vector.shape_cast %318 : vector<1x1x4xf32> to vector<1x4xf32>
    %320 = vector.broadcast %319 : vector<1x4xf32> to vector<32x4xf32>
    %321 = arith.addf %317, %320 : vector<32x4xf32>
    %322 = arith.truncf %307 : vector<32x4xf32> to vector<32x4xbf16>
    %323 = vector.shape_cast %322 : vector<32x4xbf16> to vector<2x16x4xbf16>
    %324 = arith.truncf %314 : vector<32x4xf32> to vector<32x4xbf16>
    %325 = vector.shape_cast %324 : vector<32x4xbf16> to vector<2x16x4xbf16>
    %326 = arith.truncf %321 : vector<32x4xf32> to vector<32x4xbf16>
    %327 = vector.shape_cast %326 : vector<32x4xbf16> to vector<2x16x4xbf16>
    "tpu.trace_start"() <{level = 10 : i32, message = "bqd,bkd->bqk"}> : () -> ()
    %cst_203 = arith.constant dense<0.000000e+00> : vector<2x16x16xf32>
    %328 = tpu.matmul %323, %325, %cst_203 {dimension_numbers = #tpu.dot_dimension_numbers<[2], [2], [1], [1], [0, 0, 0, 1, 1, 1], [0], [0]>} : vector<2x16x4xbf16>, vector<2x16x4xbf16>, vector<2x16x16xf32> -> vector<2x16x16xf32>
    %cst_204 = arith.constant 9.99999971E-10 : f32
    "tpu.trace_stop"() : () -> ()
    %329 = vector.broadcast %cst_204 : f32 to vector<2x16x16xf32>
    %330 = arith.select %9, %329, %328 : vector<2x16x16xi1>, vector<2x16x16xf32>
    %cst_205 = arith.constant dense<0xFF800000> : vector<2x16xf32>
    %331 = vector.multi_reduction <maximumf>, %330, %cst_205 [2] : vector<2x16x16xf32> to vector<2x16xf32>
    %332 = vector.shape_cast %331 : vector<2x16xf32> to vector<2x16x1xf32>
    %333 = vector.broadcast %332 : vector<2x16x1xf32> to vector<2x16x16xf32>
    %334 = arith.subf %330, %333 : vector<2x16x16xf32>
    %335 = math.exp %334 : vector<2x16x16xf32>
    %cst_206 = arith.constant dense<0.000000e+00> : vector<2x16xf32>
    %336 = vector.multi_reduction <add>, %335, %cst_206 [2] : vector<2x16x16xf32> to vector<2x16xf32>
    %337 = vector.shape_cast %336 : vector<2x16xf32> to vector<2x16x1xf32>
    %338 = tpu.reciprocal %337 {approx = true} : vector<2x16x1xf32> -> vector<2x16x1xf32>
    %339 = vector.broadcast %338 : vector<2x16x1xf32> to vector<2x16x16xf32>
    %340 = arith.mulf %335, %339 : vector<2x16x16xf32>
    %341 = arith.truncf %340 : vector<2x16x16xf32> to vector<2x16x16xbf16>
    "tpu.trace_start"() <{level = 10 : i32, message = "bqk,bkd->bqd"}> : () -> ()
    %cst_207 = arith.constant dense<0.000000e+00> : vector<2x16x4xf32>
    %342 = tpu.matmul %341, %327, %cst_207 {dimension_numbers = #tpu.dot_dimension_numbers<[2], [1], [1], [2], [0, 0, 0, 1, 1, 2], [0], [0]>} : vector<2x16x16xbf16>, vector<2x16x4xbf16>, vector<2x16x4xf32> -> vector<2x16x4xf32>
    "tpu.trace_stop"() : () -> ()
    %343 = vector.shape_cast %342 : vector<2x16x4xf32> to vector<32x4xf32>
    %344 = arith.truncf %343 : vector<32x4xf32> to vector<32x4xbf16>
    %c1_208 = arith.constant 1 : index
    %c0_209 = arith.constant 0 : index
    %c0_210 = arith.constant 0 : index
    %345 = vector.load %arg21[%c1_208, %c0_209, %c0_210] : memref<4x4x16xbf16, #tpu.memory_space<vmem>>, vector<1x4x16xbf16>
    %346 = vector.shape_cast %345 : vector<1x4x16xbf16> to vector<4x16xbf16>
    %cst_211 = arith.constant dense<0.000000e+00> : vector<32x16xf32>
    %347 = tpu.matmul %344, %346, %cst_211 {dimension_numbers = #tpu.dot_dimension_numbers<[1], [0], [0], [1], [0, 0, 1, 1], [], []>} : vector<32x4xbf16>, vector<4x16xbf16>, vector<32x16xf32> -> vector<32x16xf32>
    %348 = arith.addf %298, %347 : vector<32x16xf32>
    %c2_212 = arith.constant 2 : index
    %c0_213 = arith.constant 0 : index
    %c0_214 = arith.constant 0 : index
    %349 = vector.load %arg15[%c2_212, %c0_213, %c0_214] : memref<4x16x4xbf16, #tpu.memory_space<vmem>>, vector<1x16x4xbf16>
    %350 = vector.shape_cast %349 : vector<1x16x4xbf16> to vector<16x4xbf16>
    %cst_215 = arith.constant dense<0.000000e+00> : vector<32x4xf32>
    %351 = tpu.matmul %245, %350, %cst_215 {dimension_numbers = #tpu.dot_dimension_numbers<[1], [0], [0], [1], [0, 0, 1, 1], [], []>} : vector<32x16xbf16>, vector<16x4xbf16>, vector<32x4xf32> -> vector<32x4xf32>
    %c2_216 = arith.constant 2 : index
    %c0_217 = arith.constant 0 : index
    %c0_218 = arith.constant 0 : index
    %352 = vector.load %arg16[%c2_216, %c0_217, %c0_218] : memref<4x1x4xf32, #tpu.memory_space<vmem>>, vector<1x1x4xf32>
    %353 = vector.shape_cast %352 : vector<1x1x4xf32> to vector<1x4xf32>
    %354 = vector.broadcast %353 : vector<1x4xf32> to vector<32x4xf32>
    %355 = arith.addf %351, %354 : vector<32x4xf32>
    %cst_219 = arith.constant 5.000000e-01 : f32
    %356 = vector.broadcast %cst_219 : f32 to vector<32x4xf32>
    %357 = arith.mulf %355, %356 : vector<32x4xf32>
    %c2_220 = arith.constant 2 : index
    %c0_221 = arith.constant 0 : index
    %c0_222 = arith.constant 0 : index
    %358 = vector.load %arg17[%c2_220, %c0_221, %c0_222] : memref<4x16x4xbf16, #tpu.memory_space<vmem>>, vector<1x16x4xbf16>
    %359 = vector.shape_cast %358 : vector<1x16x4xbf16> to vector<16x4xbf16>
    %cst_223 = arith.constant dense<0.000000e+00> : vector<32x4xf32>
    %360 = tpu.matmul %247, %359, %cst_223 {dimension_numbers = #tpu.dot_dimension_numbers<[1], [0], [0], [1], [0, 0, 1, 1], [], []>} : vector<32x16xbf16>, vector<16x4xbf16>, vector<32x4xf32> -> vector<32x4xf32>
    %c2_224 = arith.constant 2 : index
    %c0_225 = arith.constant 0 : index
    %c0_226 = arith.constant 0 : index
    %361 = vector.load %arg18[%c2_224, %c0_225, %c0_226] : memref<4x1x4xf32, #tpu.memory_space<vmem>>, vector<1x1x4xf32>
    %362 = vector.shape_cast %361 : vector<1x1x4xf32> to vector<1x4xf32>
    %363 = vector.broadcast %362 : vector<1x4xf32> to vector<32x4xf32>
    %364 = arith.addf %360, %363 : vector<32x4xf32>
    %c2_227 = arith.constant 2 : index
    %c0_228 = arith.constant 0 : index
    %c0_229 = arith.constant 0 : index
    %365 = vector.load %arg19[%c2_227, %c0_228, %c0_229] : memref<4x16x4xbf16, #tpu.memory_space<vmem>>, vector<1x16x4xbf16>
    %366 = vector.shape_cast %365 : vector<1x16x4xbf16> to vector<16x4xbf16>
    %cst_230 = arith.constant dense<0.000000e+00> : vector<32x4xf32>
    %367 = tpu.matmul %247, %366, %cst_230 {dimension_numbers = #tpu.dot_dimension_numbers<[1], [0], [0], [1], [0, 0, 1, 1], [], []>} : vector<32x16xbf16>, vector<16x4xbf16>, vector<32x4xf32> -> vector<32x4xf32>
    %c2_231 = arith.constant 2 : index
    %c0_232 = arith.constant 0 : index
    %c0_233 = arith.constant 0 : index
    %368 = vector.load %arg20[%c2_231, %c0_232, %c0_233] : memref<4x1x4xf32, #tpu.memory_space<vmem>>, vector<1x1x4xf32>
    %369 = vector.shape_cast %368 : vector<1x1x4xf32> to vector<1x4xf32>
    %370 = vector.broadcast %369 : vector<1x4xf32> to vector<32x4xf32>
    %371 = arith.addf %367, %370 : vector<32x4xf32>
    %372 = arith.truncf %357 : vector<32x4xf32> to vector<32x4xbf16>
    %373 = vector.shape_cast %372 : vector<32x4xbf16> to vector<2x16x4xbf16>
    %374 = arith.truncf %364 : vector<32x4xf32> to vector<32x4xbf16>
    %375 = vector.shape_cast %374 : vector<32x4xbf16> to vector<2x16x4xbf16>
    %376 = arith.truncf %371 : vector<32x4xf32> to vector<32x4xbf16>
    %377 = vector.shape_cast %376 : vector<32x4xbf16> to vector<2x16x4xbf16>
    "tpu.trace_start"() <{level = 10 : i32, message = "bqd,bkd->bqk"}> : () -> ()
    %cst_234 = arith.constant dense<0.000000e+00> : vector<2x16x16xf32>
    %378 = tpu.matmul %373, %375, %cst_234 {dimension_numbers = #tpu.dot_dimension_numbers<[2], [2], [1], [1], [0, 0, 0, 1, 1, 1], [0], [0]>} : vector<2x16x4xbf16>, vector<2x16x4xbf16>, vector<2x16x16xf32> -> vector<2x16x16xf32>
    %cst_235 = arith.constant 9.99999971E-10 : f32
    "tpu.trace_stop"() : () -> ()
    %379 = vector.broadcast %cst_235 : f32 to vector<2x16x16xf32>
    %380 = arith.select %9, %379, %378 : vector<2x16x16xi1>, vector<2x16x16xf32>
    %cst_236 = arith.constant dense<0xFF800000> : vector<2x16xf32>
    %381 = vector.multi_reduction <maximumf>, %380, %cst_236 [2] : vector<2x16x16xf32> to vector<2x16xf32>
    %382 = vector.shape_cast %381 : vector<2x16xf32> to vector<2x16x1xf32>
    %383 = vector.broadcast %382 : vector<2x16x1xf32> to vector<2x16x16xf32>
    %384 = arith.subf %380, %383 : vector<2x16x16xf32>
    %385 = math.exp %384 : vector<2x16x16xf32>
    %cst_237 = arith.constant dense<0.000000e+00> : vector<2x16xf32>
    %386 = vector.multi_reduction <add>, %385, %cst_237 [2] : vector<2x16x16xf32> to vector<2x16xf32>
    %387 = vector.shape_cast %386 : vector<2x16xf32> to vector<2x16x1xf32>
    %388 = tpu.reciprocal %387 {approx = true} : vector<2x16x1xf32> -> vector<2x16x1xf32>
    %389 = vector.broadcast %388 : vector<2x16x1xf32> to vector<2x16x16xf32>
    %390 = arith.mulf %385, %389 : vector<2x16x16xf32>
    %391 = arith.truncf %390 : vector<2x16x16xf32> to vector<2x16x16xbf16>
    "tpu.trace_start"() <{level = 10 : i32, message = "bqk,bkd->bqd"}> : () -> ()
    %cst_238 = arith.constant dense<0.000000e+00> : vector<2x16x4xf32>
    %392 = tpu.matmul %391, %377, %cst_238 {dimension_numbers = #tpu.dot_dimension_numbers<[2], [1], [1], [2], [0, 0, 0, 1, 1, 2], [0], [0]>} : vector<2x16x16xbf16>, vector<2x16x4xbf16>, vector<2x16x4xf32> -> vector<2x16x4xf32>
    "tpu.trace_stop"() : () -> ()
    %393 = vector.shape_cast %392 : vector<2x16x4xf32> to vector<32x4xf32>
    %394 = arith.truncf %393 : vector<32x4xf32> to vector<32x4xbf16>
    %c2_239 = arith.constant 2 : index
    %c0_240 = arith.constant 0 : index
    %c0_241 = arith.constant 0 : index
    %395 = vector.load %arg21[%c2_239, %c0_240, %c0_241] : memref<4x4x16xbf16, #tpu.memory_space<vmem>>, vector<1x4x16xbf16>
    %396 = vector.shape_cast %395 : vector<1x4x16xbf16> to vector<4x16xbf16>
    %cst_242 = arith.constant dense<0.000000e+00> : vector<32x16xf32>
    %397 = tpu.matmul %394, %396, %cst_242 {dimension_numbers = #tpu.dot_dimension_numbers<[1], [0], [0], [1], [0, 0, 1, 1], [], []>} : vector<32x4xbf16>, vector<4x16xbf16>, vector<32x16xf32> -> vector<32x16xf32>
    %398 = arith.addf %348, %397 : vector<32x16xf32>
    %c3_243 = arith.constant 3 : index
    %c0_244 = arith.constant 0 : index
    %c0_245 = arith.constant 0 : index
    %399 = vector.load %arg15[%c3_243, %c0_244, %c0_245] : memref<4x16x4xbf16, #tpu.memory_space<vmem>>, vector<1x16x4xbf16>
    %400 = vector.shape_cast %399 : vector<1x16x4xbf16> to vector<16x4xbf16>
    %cst_246 = arith.constant dense<0.000000e+00> : vector<32x4xf32>
    %401 = tpu.matmul %245, %400, %cst_246 {dimension_numbers = #tpu.dot_dimension_numbers<[1], [0], [0], [1], [0, 0, 1, 1], [], []>} : vector<32x16xbf16>, vector<16x4xbf16>, vector<32x4xf32> -> vector<32x4xf32>
    %c3_247 = arith.constant 3 : index
    %c0_248 = arith.constant 0 : index
    %c0_249 = arith.constant 0 : index
    %402 = vector.load %arg16[%c3_247, %c0_248, %c0_249] : memref<4x1x4xf32, #tpu.memory_space<vmem>>, vector<1x1x4xf32>
    %403 = vector.shape_cast %402 : vector<1x1x4xf32> to vector<1x4xf32>
    %404 = vector.broadcast %403 : vector<1x4xf32> to vector<32x4xf32>
    %405 = arith.addf %401, %404 : vector<32x4xf32>
    %cst_250 = arith.constant 5.000000e-01 : f32
    %406 = vector.broadcast %cst_250 : f32 to vector<32x4xf32>
    %407 = arith.mulf %405, %406 : vector<32x4xf32>
    %c3_251 = arith.constant 3 : index
    %c0_252 = arith.constant 0 : index
    %c0_253 = arith.constant 0 : index
    %408 = vector.load %arg17[%c3_251, %c0_252, %c0_253] : memref<4x16x4xbf16, #tpu.memory_space<vmem>>, vector<1x16x4xbf16>
    %409 = vector.shape_cast %408 : vector<1x16x4xbf16> to vector<16x4xbf16>
    %cst_254 = arith.constant dense<0.000000e+00> : vector<32x4xf32>
    %410 = tpu.matmul %247, %409, %cst_254 {dimension_numbers = #tpu.dot_dimension_numbers<[1], [0], [0], [1], [0, 0, 1, 1], [], []>} : vector<32x16xbf16>, vector<16x4xbf16>, vector<32x4xf32> -> vector<32x4xf32>
    %c3_255 = arith.constant 3 : index
    %c0_256 = arith.constant 0 : index
    %c0_257 = arith.constant 0 : index
    %411 = vector.load %arg18[%c3_255, %c0_256, %c0_257] : memref<4x1x4xf32, #tpu.memory_space<vmem>>, vector<1x1x4xf32>
    %412 = vector.shape_cast %411 : vector<1x1x4xf32> to vector<1x4xf32>
    %413 = vector.broadcast %412 : vector<1x4xf32> to vector<32x4xf32>
    %414 = arith.addf %410, %413 : vector<32x4xf32>
    %c3_258 = arith.constant 3 : index
    %c0_259 = arith.constant 0 : index
    %c0_260 = arith.constant 0 : index
    %415 = vector.load %arg19[%c3_258, %c0_259, %c0_260] : memref<4x16x4xbf16, #tpu.memory_space<vmem>>, vector<1x16x4xbf16>
    %416 = vector.shape_cast %415 : vector<1x16x4xbf16> to vector<16x4xbf16>
    %cst_261 = arith.constant dense<0.000000e+00> : vector<32x4xf32>
    %417 = tpu.matmul %247, %416, %cst_261 {dimension_numbers = #tpu.dot_dimension_numbers<[1], [0], [0], [1], [0, 0, 1, 1], [], []>} : vector<32x16xbf16>, vector<16x4xbf16>, vector<32x4xf32> -> vector<32x4xf32>
    %c3_262 = arith.constant 3 : index
    %c0_263 = arith.constant 0 : index
    %c0_264 = arith.constant 0 : index
    %418 = vector.load %arg20[%c3_262, %c0_263, %c0_264] : memref<4x1x4xf32, #tpu.memory_space<vmem>>, vector<1x1x4xf32>
    %419 = vector.shape_cast %418 : vector<1x1x4xf32> to vector<1x4xf32>
    %420 = vector.broadcast %419 : vector<1x4xf32> to vector<32x4xf32>
    %421 = arith.addf %417, %420 : vector<32x4xf32>
    %422 = arith.truncf %407 : vector<32x4xf32> to vector<32x4xbf16>
    %423 = vector.shape_cast %422 : vector<32x4xbf16> to vector<2x16x4xbf16>
    %424 = arith.truncf %414 : vector<32x4xf32> to vector<32x4xbf16>
    %425 = vector.shape_cast %424 : vector<32x4xbf16> to vector<2x16x4xbf16>
    %426 = arith.truncf %421 : vector<32x4xf32> to vector<32x4xbf16>
    %427 = vector.shape_cast %426 : vector<32x4xbf16> to vector<2x16x4xbf16>
    "tpu.trace_start"() <{level = 10 : i32, message = "bqd,bkd->bqk"}> : () -> ()
    %cst_265 = arith.constant dense<0.000000e+00> : vector<2x16x16xf32>
    %428 = tpu.matmul %423, %425, %cst_265 {dimension_numbers = #tpu.dot_dimension_numbers<[2], [2], [1], [1], [0, 0, 0, 1, 1, 1], [0], [0]>} : vector<2x16x4xbf16>, vector<2x16x4xbf16>, vector<2x16x16xf32> -> vector<2x16x16xf32>
    %cst_266 = arith.constant 9.99999971E-10 : f32
    "tpu.trace_stop"() : () -> ()
    %429 = vector.broadcast %cst_266 : f32 to vector<2x16x16xf32>
    %430 = arith.select %9, %429, %428 : vector<2x16x16xi1>, vector<2x16x16xf32>
    %cst_267 = arith.constant dense<0xFF800000> : vector<2x16xf32>
    %431 = vector.multi_reduction <maximumf>, %430, %cst_267 [2] : vector<2x16x16xf32> to vector<2x16xf32>
    %432 = vector.shape_cast %431 : vector<2x16xf32> to vector<2x16x1xf32>
    %433 = vector.broadcast %432 : vector<2x16x1xf32> to vector<2x16x16xf32>
    %434 = arith.subf %430, %433 : vector<2x16x16xf32>
    %435 = math.exp %434 : vector<2x16x16xf32>
    %cst_268 = arith.constant dense<0.000000e+00> : vector<2x16xf32>
    %436 = vector.multi_reduction <add>, %435, %cst_268 [2] : vector<2x16x16xf32> to vector<2x16xf32>
    %437 = vector.shape_cast %436 : vector<2x16xf32> to vector<2x16x1xf32>
    %438 = tpu.reciprocal %437 {approx = true} : vector<2x16x1xf32> -> vector<2x16x1xf32>
    %439 = vector.broadcast %438 : vector<2x16x1xf32> to vector<2x16x16xf32>
    %440 = arith.mulf %435, %439 : vector<2x16x16xf32>
    %441 = arith.truncf %440 : vector<2x16x16xf32> to vector<2x16x16xbf16>
    "tpu.trace_start"() <{level = 10 : i32, message = "bqk,bkd->bqd"}> : () -> ()
    %cst_269 = arith.constant dense<0.000000e+00> : vector<2x16x4xf32>
    %442 = tpu.matmul %441, %427, %cst_269 {dimension_numbers = #tpu.dot_dimension_numbers<[2], [1], [1], [2], [0, 0, 0, 1, 1, 2], [0], [0]>} : vector<2x16x16xbf16>, vector<2x16x4xbf16>, vector<2x16x4xf32> -> vector<2x16x4xf32>
    "tpu.trace_stop"() : () -> ()
    %443 = vector.shape_cast %442 : vector<2x16x4xf32> to vector<32x4xf32>
    %444 = arith.truncf %443 : vector<32x4xf32> to vector<32x4xbf16>
    %c3_270 = arith.constant 3 : index
    %c0_271 = arith.constant 0 : index
    %c0_272 = arith.constant 0 : index
    %445 = vector.load %arg21[%c3_270, %c0_271, %c0_272] : memref<4x4x16xbf16, #tpu.memory_space<vmem>>, vector<1x4x16xbf16>
    %446 = vector.shape_cast %445 : vector<1x4x16xbf16> to vector<4x16xbf16>
    %cst_273 = arith.constant dense<0.000000e+00> : vector<32x16xf32>
    %447 = tpu.matmul %444, %446, %cst_273 {dimension_numbers = #tpu.dot_dimension_numbers<[1], [0], [0], [1], [0, 0, 1, 1], [], []>} : vector<32x4xbf16>, vector<4x16xbf16>, vector<32x16xf32> -> vector<32x16xf32>
    %448 = arith.addf %398, %447 : vector<32x16xf32>
    %c0_274 = arith.constant 0 : index
    %c0_275 = arith.constant 0 : index
    %449 = vector.load %arg22[%c0_274, %c0_275] : memref<1x16xf32, #tpu.memory_space<vmem>>, vector<1x16xf32>
    %450 = vector.broadcast %449 : vector<1x16xf32> to vector<32x16xf32>
    %451 = arith.addf %448, %450 : vector<32x16xf32>
    %452 = vector.shape_cast %451 : vector<32x16xf32> to vector<2x16x16xf32>
    %453 = arith.addf %243, %452 : vector<2x16x16xf32>
    %454 = arith.addf %453, %243 : vector<2x16x16xf32>
    %cst_276 = arith.constant dense<0.000000e+00> : vector<2x16xf32>
    %455 = vector.multi_reduction <add>, %454, %cst_276 [2] : vector<2x16x16xf32> to vector<2x16xf32>
    %456 = vector.shape_cast %455 : vector<2x16xf32> to vector<2x16x1xf32>
    %cst_277 = arith.constant 1.600000e+01 : f32
    %457 = vector.broadcast %cst_277 : f32 to vector<2x16x1xf32>
    %458 = arith.divf %456, %457 : vector<2x16x1xf32>
    %459 = vector.broadcast %458 : vector<2x16x1xf32> to vector<2x16x16xf32>
    %460 = arith.subf %454, %459 : vector<2x16x16xf32>
    %461 = arith.mulf %460, %460 : vector<2x16x16xf32>
    %cst_278 = arith.constant dense<0.000000e+00> : vector<2x16xf32>
    %462 = vector.multi_reduction <add>, %461, %cst_278 [2] : vector<2x16x16xf32> to vector<2x16xf32>
    %463 = vector.shape_cast %462 : vector<2x16xf32> to vector<2x16x1xf32>
    %cst_279 = arith.constant 1.600000e+01 : f32
    %464 = vector.broadcast %cst_279 : f32 to vector<2x16x1xf32>
    %465 = arith.divf %463, %464 : vector<2x16x1xf32>
    %466 = vector.broadcast %458 : vector<2x16x1xf32> to vector<2x16x16xf32>
    %467 = arith.subf %454, %466 : vector<2x16x16xf32>
    %cst_280 = arith.constant 9.99999997E-7 : f32
    %468 = vector.broadcast %cst_280 : f32 to vector<2x16x1xf32>
    %469 = arith.addf %465, %468 : vector<2x16x1xf32>
    %470 = math.rsqrt %469 : vector<2x16x1xf32>
    %471 = vector.broadcast %470 : vector<2x16x1xf32> to vector<2x16x16xf32>
    %472 = arith.mulf %467, %471 : vector<2x16x16xf32>
    %c0_281 = arith.constant 0 : index
    %c0_282 = arith.constant 0 : index
    %c0_283 = arith.constant 0 : index
    %473 = vector.load %arg23[%c0_281, %c0_282, %c0_283] : memref<1x16x1xf32, #tpu.memory_space<vmem>>, vector<1x16x1xf32>
    %474 = vector.broadcast %473 : vector<1x16x1xf32> to vector<2x16x16xf32>
    %475 = arith.mulf %474, %472 : vector<2x16x16xf32>
    %c0_284 = arith.constant 0 : index
    %c0_285 = arith.constant 0 : index
    %c0_286 = arith.constant 0 : index
    %476 = vector.load %arg24[%c0_284, %c0_285, %c0_286] : memref<1x16x1xf32, #tpu.memory_space<vmem>>, vector<1x16x1xf32>
    %477 = vector.broadcast %476 : vector<1x16x1xf32> to vector<2x16x16xf32>
    %478 = arith.addf %475, %477 : vector<2x16x16xf32>
    %479 = vector.shape_cast %478 : vector<2x16x16xf32> to vector<32x16xf32>
    %480 = arith.truncf %479 : vector<32x16xf32> to vector<32x16xbf16>
    %c0_287 = arith.constant 0 : index
    %c0_288 = arith.constant 0 : index
    %481 = vector.load %arg25[%c0_287, %c0_288] : memref<16x32xbf16, #tpu.memory_space<vmem>>, vector<16x32xbf16>
    %cst_289 = arith.constant dense<0.000000e+00> : vector<32x32xf32>
    %482 = tpu.matmul %480, %481, %cst_289 {dimension_numbers = #tpu.dot_dimension_numbers<[1], [0], [0], [1], [0, 0, 1, 1], [], []>} : vector<32x16xbf16>, vector<16x32xbf16>, vector<32x32xf32> -> vector<32x32xf32>
    %c0_290 = arith.constant 0 : index
    %c0_291 = arith.constant 0 : index
    %483 = vector.load %arg26[%c0_290, %c0_291] : memref<1x32xf32, #tpu.memory_space<vmem>>, vector<1x32xf32>
    %484 = vector.broadcast %483 : vector<1x32xf32> to vector<32x32xf32>
    %485 = arith.addf %482, %484 : vector<32x32xf32>
    %cst_292 = arith.constant 0.000000e+00 : f32
    %486 = vector.broadcast %cst_292 : f32 to vector<32x32xf32>
    %487 = arith.maximumf %485, %486 : vector<32x32xf32>
    %488 = arith.truncf %487 : vector<32x32xf32> to vector<32x32xbf16>
    %c0_293 = arith.constant 0 : index
    %c0_294 = arith.constant 0 : index
    %489 = vector.load %arg27[%c0_293, %c0_294] : memref<32x16xbf16, #tpu.memory_space<vmem>>, vector<32x16xbf16>
    %cst_295 = arith.constant dense<0.000000e+00> : vector<32x16xf32>
    %490 = tpu.matmul %488, %489, %cst_295 {dimension_numbers = #tpu.dot_dimension_numbers<[1], [0], [0], [1], [0, 0, 1, 1], [], []>} : vector<32x32xbf16>, vector<32x16xbf16>, vector<32x16xf32> -> vector<32x16xf32>
    %c0_296 = arith.constant 0 : index
    %c0_297 = arith.constant 0 : index
    %491 = vector.load %arg28[%c0_296, %c0_297] : memref<1x16xf32, #tpu.memory_space<vmem>>, vector<1x16xf32>
    %492 = vector.broadcast %491 : vector<1x16xf32> to vector<32x16xf32>
    %493 = arith.addf %490, %492 : vector<32x16xf32>
    %494 = vector.shape_cast %493 : vector<32x16xf32> to vector<2x16x16xf32>
    %495 = arith.addf %478, %494 : vector<2x16x16xf32>
    %496 = arith.addf %495, %478 : vector<2x16x16xf32>
    %cst_298 = arith.constant dense<0.000000e+00> : vector<2x16xf32>
    %497 = vector.multi_reduction <add>, %496, %cst_298 [2] : vector<2x16x16xf32> to vector<2x16xf32>
    %498 = vector.shape_cast %497 : vector<2x16xf32> to vector<2x16x1xf32>
    %cst_299 = arith.constant 1.600000e+01 : f32
    %499 = vector.broadcast %cst_299 : f32 to vector<2x16x1xf32>
    %500 = arith.divf %498, %499 : vector<2x16x1xf32>
    %501 = vector.broadcast %500 : vector<2x16x1xf32> to vector<2x16x16xf32>
    %502 = arith.subf %496, %501 : vector<2x16x16xf32>
    %503 = arith.mulf %502, %502 : vector<2x16x16xf32>
    %cst_300 = arith.constant dense<0.000000e+00> : vector<2x16xf32>
    %504 = vector.multi_reduction <add>, %503, %cst_300 [2] : vector<2x16x16xf32> to vector<2x16xf32>
    %505 = vector.shape_cast %504 : vector<2x16xf32> to vector<2x16x1xf32>
    %cst_301 = arith.constant 1.600000e+01 : f32
    %506 = vector.broadcast %cst_301 : f32 to vector<2x16x1xf32>
    %507 = arith.divf %505, %506 : vector<2x16x1xf32>
    %508 = vector.broadcast %500 : vector<2x16x1xf32> to vector<2x16x16xf32>
    %509 = arith.subf %496, %508 : vector<2x16x16xf32>
    %cst_302 = arith.constant 9.99999997E-7 : f32
    %510 = vector.broadcast %cst_302 : f32 to vector<2x16x1xf32>
    %511 = arith.addf %507, %510 : vector<2x16x1xf32>
    %512 = math.rsqrt %511 : vector<2x16x1xf32>
    %513 = vector.broadcast %512 : vector<2x16x1xf32> to vector<2x16x16xf32>
    %514 = arith.mulf %509, %513 : vector<2x16x16xf32>
    %c0_303 = arith.constant 0 : index
    %c0_304 = arith.constant 0 : index
    %c0_305 = arith.constant 0 : index
    %515 = vector.load %arg29[%c0_303, %c0_304, %c0_305] : memref<1x16x1xf32, #tpu.memory_space<vmem>>, vector<1x16x1xf32>
    %516 = vector.broadcast %515 : vector<1x16x1xf32> to vector<2x16x16xf32>
    %517 = arith.mulf %516, %514 : vector<2x16x16xf32>
    %c0_306 = arith.constant 0 : index
    %c0_307 = arith.constant 0 : index
    %c0_308 = arith.constant 0 : index
    %518 = vector.load %arg30[%c0_306, %c0_307, %c0_308] : memref<1x16x1xf32, #tpu.memory_space<vmem>>, vector<1x16x1xf32>
    %519 = vector.broadcast %518 : vector<1x16x1xf32> to vector<2x16x16xf32>
    %520 = arith.addf %517, %519 : vector<2x16x16xf32>
    %c0_309 = arith.constant 0 : index
    %c0_310 = arith.constant 0 : index
    %c0_311 = arith.constant 0 : index
    %521 = vector.load %arg31[%c0_309, %c0_310, %c0_311] : memref<2x16x16xf32, #tpu.memory_space<vmem>>, vector<2x16x16xf32>
    tpu.vector_store %arg31[%c0_309, %c0_310, %c0_311], %520 {strides = array<i32>} : memref<2x16x16xf32, #tpu.memory_space<vmem>>, vector<2x16x16xf32>,
    return
  }
  func.func @transform_0(%arg0: i32) -> (i32, i32, i32, i32) {
    %c0_i32 = arith.constant 0 : i32
    %c0_i32_0 = arith.constant 0 : i32
    %c0_i32_1 = arith.constant 0 : i32
    %c0_i32_2 = arith.constant 0 : i32
    return %arg0, %c0_i32, %c0_i32_0, %c0_i32_1 : i32, i32, i32, i32
  }
  func.func @transform_1(%arg0: i32) -> (i32, i32, i32, i32) {
    %c0_i32 = arith.constant 0 : i32
    %c0_i32_0 = arith.constant 0 : i32
    %c0_i32_1 = arith.constant 0 : i32
    %c0_i32_2 = arith.constant 0 : i32
    return %arg0, %c0_i32, %c0_i32_0, %c0_i32_1 : i32, i32, i32, i32
  }
  func.func @transform_2(%arg0: i32) -> (i32, i32, i32) {
    %c0_i32 = arith.constant 0 : i32
    %c0_i32_0 = arith.constant 0 : i32
    %c0_i32_1 = arith.constant 0 : i32
    return %arg0, %c0_i32, %c0_i32_0 : i32, i32, i32
  }
  func.func @transform_3(%arg0: i32) -> (i32, i32, i32) {
    %c0_i32 = arith.constant 0 : i32
    %c0_i32_0 = arith.constant 0 : i32
    %c0_i32_1 = arith.constant 0 : i32
    return %arg0, %c0_i32, %c0_i32_0 : i32, i32, i32
  }
  func.func @transform_4(%arg0: i32) -> (i32, i32, i32) {
    %c0_i32 = arith.constant 0 : i32
    %c0_i32_0 = arith.constant 0 : i32
    %c0_i32_1 = arith.constant 0 : i32
    %c0_i32_2 = arith.constant 0 : i32
    return %c0_i32, %c0_i32_0, %c0_i32_1 : i32, i32, i32
  }
  func.func @transform_5(%arg0: i32) -> (i32, i32, i32) {
    %c0_i32 = arith.constant 0 : i32
    %c0_i32_0 = arith.constant 0 : i32
    %c0_i32_1 = arith.constant 0 : i32
    %c0_i32_2 = arith.constant 0 : i32
    return %c0_i32, %c0_i32_0, %c0_i32_1 : i32, i32, i32
  }
  func.func @transform_6(%arg0: i32) -> (i32, i32, i32) {
    %c0_i32 = arith.constant 0 : i32
    %c0_i32_0 = arith.constant 0 : i32
    %c0_i32_1 = arith.constant 0 : i32
    %c0_i32_2 = arith.constant 0 : i32
    return %c0_i32, %c0_i32_0, %c0_i32_1 : i32, i32, i32
  }
  func.func @transform_7(%arg0: i32) -> (i32, i32, i32) {
    %c0_i32 = arith.constant 0 : i32
    %c0_i32_0 = arith.constant 0 : i32
    %c0_i32_1 = arith.constant 0 : i32
    %c0_i32_2 = arith.constant 0 : i32
    return %c0_i32, %c0_i32_0, %c0_i32_1 : i32, i32, i32
  }
  func.func @transform_8(%arg0: i32) -> (i32, i32, i32) {
    %c0_i32 = arith.constant 0 : i32
    %c0_i32_0 = arith.constant 0 : i32
    %c0_i32_1 = arith.constant 0 : i32
    %c0_i32_2 = arith.constant 0 : i32
    return %c0_i32, %c0_i32_0, %c0_i32_1 : i32, i32, i32
  }
  func.func @transform_9(%arg0: i32) -> (i32, i32, i32) {
    %c0_i32 = arith.constant 0 : i32
    %c0_i32_0 = arith.constant 0 : i32
    %c0_i32_1 = arith.constant 0 : i32
    %c0_i32_2 = arith.constant 0 : i32
    return %c0_i32, %c0_i32_0, %c0_i32_1 : i32, i32, i32
  }
  func.func @transform_10(%arg0: i32) -> (i32, i32, i32) {
    %c0_i32 = arith.constant 0 : i32
    %c0_i32_0 = arith.constant 0 : i32
    %c0_i32_1 = arith.constant 0 : i32
    %c0_i32_2 = arith.constant 0 : i32
    return %c0_i32, %c0_i32_0, %c0_i32_1 : i32, i32, i32
  }
  func.func @transform_11(%arg0: i32) -> (i32, i32) {
    %c0_i32 = arith.constant 0 : i32
    %c0_i32_0 = arith.constant 0 : i32
    %c0_i32_1 = arith.constant 0 : i32
    return %c0_i32, %c0_i32_0 : i32, i32
  }
  func.func @transform_12(%arg0: i32) -> (i32, i32, i32) {
    %c0_i32 = arith.constant 0 : i32
    %c0_i32_0 = arith.constant 0 : i32
    %c0_i32_1 = arith.constant 0 : i32
    %c0_i32_2 = arith.constant 0 : i32
    return %c0_i32, %c0_i32_0, %c0_i32_1 : i32, i32, i32
  }
  func.func @transform_13(%arg0: i32) -> (i32, i32, i32) {
    %c0_i32 = arith.constant 0 : i32
    %c0_i32_0 = arith.constant 0 : i32
    %c0_i32_1 = arith.constant 0 : i32
    %c0_i32_2 = arith.constant 0 : i32
    return %c0_i32, %c0_i32_0, %c0_i32_1 : i32, i32, i32
  }
  func.func @transform_14(%arg0: i32) -> (i32, i32, i32) {
    %c0_i32 = arith.constant 0 : i32
    %c0_i32_0 = arith.constant 0 : i32
    %c0_i32_1 = arith.constant 0 : i32
    %c0_i32_2 = arith.constant 0 : i32
    return %c0_i32, %c0_i32_0, %c0_i32_1 : i32, i32, i32
  }
  func.func @transform_15(%arg0: i32) -> (i32, i32, i32) {
    %c0_i32 = arith.constant 0 : i32
    %c0_i32_0 = arith.constant 0 : i32
    %c0_i32_1 = arith.constant 0 : i32
    %c0_i32_2 = arith.constant 0 : i32
    return %c0_i32, %c0_i32_0, %c0_i32_1 : i32, i32, i32
  }
  func.func @transform_16(%arg0: i32) -> (i32, i32, i32) {
    %c0_i32 = arith.constant 0 : i32
    %c0_i32_0 = arith.constant 0 : i32
    %c0_i32_1 = arith.constant 0 : i32
    %c0_i32_2 = arith.constant 0 : i32
    return %c0_i32, %c0_i32_0, %c0_i32_1 : i32, i32, i32
  }
  func.func @transform_17(%arg0: i32) -> (i32, i32, i32) {
    %c0_i32 = arith.constant 0 : i32
    %c0_i32_0 = arith.constant 0 : i32
    %c0_i32_1 = arith.constant 0 : i32
    %c0_i32_2 = arith.constant 0 : i32
    return %c0_i32, %c0_i32_0, %c0_i32_1 : i32, i32, i32
  }
  func.func @transform_18(%arg0: i32) -> (i32, i32, i32) {
    %c0_i32 = arith.constant 0 : i32
    %c0_i32_0 = arith.constant 0 : i32
    %c0_i32_1 = arith.constant 0 : i32
    %c0_i32_2 = arith.constant 0 : i32
    return %c0_i32, %c0_i32_0, %c0_i32_1 : i32, i32, i32
  }
  func.func @transform_19(%arg0: i32) -> (i32, i32, i32) {
    %c0_i32 = arith.constant 0 : i32
    %c0_i32_0 = arith.constant 0 : i32
    %c0_i32_1 = arith.constant 0 : i32
    %c0_i32_2 = arith.constant 0 : i32
    return %c0_i32, %c0_i32_0, %c0_i32_1 : i32, i32, i32
  }
  func.func @transform_20(%arg0: i32) -> (i32, i32, i32) {
    %c0_i32 = arith.constant 0 : i32
    %c0_i32_0 = arith.constant 0 : i32
    %c0_i32_1 = arith.constant 0 : i32
    %c0_i32_2 = arith.constant 0 : i32
    return %c0_i32, %c0_i32_0, %c0_i32_1 : i32, i32, i32
  }
  func.func @transform_21(%arg0: i32) -> (i32, i32) {
    %c0_i32 = arith.constant 0 : i32
    %c0_i32_0 = arith.constant 0 : i32
    %c0_i32_1 = arith.constant 0 : i32
    return %c0_i32, %c0_i32_0 : i32, i32
  }
  func.func @transform_22(%arg0: i32) -> (i32, i32, i32) {
    %c0_i32 = arith.constant 0 : i32
    %c0_i32_0 = arith.constant 0 : i32
    %c0_i32_1 = arith.constant 0 : i32
    %c0_i32_2 = arith.constant 0 : i32
    return %c0_i32, %c0_i32_0, %c0_i32_1 : i32, i32, i32
  }
  func.func @transform_23(%arg0: i32) -> (i32, i32, i32) {
    %c0_i32 = arith.constant 0 : i32
    %c0_i32_0 = arith.constant 0 : i32
    %c0_i32_1 = arith.constant 0 : i32
    %c0_i32_2 = arith.constant 0 : i32
    return %c0_i32, %c0_i32_0, %c0_i32_1 : i32, i32, i32
  }
  func.func @transform_24(%arg0: i32) -> (i32, i32) {
    %c0_i32 = arith.constant 0 : i32
    %c0_i32_0 = arith.constant 0 : i32
    %c0_i32_1 = arith.constant 0 : i32
    return %c0_i32, %c0_i32_0 : i32, i32
  }
  func.func @transform_25(%arg0: i32) -> (i32, i32) {
    %c0_i32 = arith.constant 0 : i32
    %c0_i32_0 = arith.constant 0 : i32
    %c0_i32_1 = arith.constant 0 : i32
    return %c0_i32, %c0_i32_0 : i32, i32
  }
  func.func @transform_26(%arg0: i32) -> (i32, i32) {
    %c0_i32 = arith.constant 0 : i32
    %c0_i32_0 = arith.constant 0 : i32
    %c0_i32_1 = arith.constant 0 : i32
    return %c0_i32, %c0_i32_0 : i32, i32
  }
  func.func @transform_27(%arg0: i32) -> (i32, i32) {
    %c0_i32 = arith.constant 0 : i32
    %c0_i32_0 = arith.constant 0 : i32
    %c0_i32_1 = arith.constant 0 : i32
    return %c0_i32, %c0_i32_0 : i32, i32
  }
  func.func @transform_28(%arg0: i32) -> (i32, i32, i32) {
    %c0_i32 = arith.constant 0 : i32
    %c0_i32_0 = arith.constant 0 : i32
    %c0_i32_1 = arith.constant 0 : i32
    %c0_i32_2 = arith.constant 0 : i32
    return %c0_i32, %c0_i32_0, %c0_i32_1 : i32, i32, i32
  }
  func.func @transform_29(%arg0: i32) -> (i32, i32, i32) {
    %c0_i32 = arith.constant 0 : i32
    %c0_i32_0 = arith.constant 0 : i32
    %c0_i32_1 = arith.constant 0 : i32
    %c0_i32_2 = arith.constant 0 : i32
    return %c0_i32, %c0_i32_0, %c0_i32_1 : i32, i32, i32
  }
  func.func @transform_30(%arg0: i32) -> (i32, i32, i32) {
    %c0_i32 = arith.constant 0 : i32
    %c0_i32_0 = arith.constant 0 : i32
    %c0_i32_1 = arith.constant 0 : i32
    return %arg0, %c0_i32, %c0_i32_0 : i32, i32, i32
  }
}

</mosaic_0001>

<bundles_post_ra>
// kernel: tpu_custom_call.1
= control target key start
LH: loop header
LB: loop body
LE: loop exit
PB: predicated region body
PF: predicated region fallthrough
CT: control target
= control target key end

     0   :  { %s6864_s6 = smov 1   ;;  %s6865_s10 = smov 2   ;;  %s7876_s0 = inlined_call_operand.smem [shape: u32[31], index: -1, kind: input, shape index: {}] }
   0x1   :  { %s6944_s5 = sld [smem:[%s7876_s0]]   ;;  %s6866_s14 = smov 3  }
   0x2   :  { %s6949_s9 = sld [smem:[%s7876_s0 + %s6864_s6]]   ;;  %s6867_s18 = smov 4  }
   0x3   :  { %s6954_s13 = sld [smem:[%s7876_s0 + %s6865_s10]]   ;;  %s6868_s22 = smov 5  }
   0x4   :  { %s6959_s17 = sld [smem:[%s7876_s0 + %s6866_s14]]   ;;  %s6869_s26 = smov 6  }
   0x5   :  { %s6964_s21 = sld [smem:[%s7876_s0 + %s6867_s18]]   ;;  %s6870_s30 = smov 7  }
   0x6   :  { %s6969_s25 = sld [smem:[%s7876_s0 + %s6868_s22]]   ;;  %s6871_s4 = smov 8  }
   0x7   :  { %s6974_s29 = sld [smem:[%s7876_s0 + %s6869_s26]]   ;;  %s6872_s10 = smov 9  }
   0x8   :  { %s6979_s3 = sld [smem:[%s7876_s0 + %s6870_s30]]   ;;  %s6873_s15 = smov 10  }
   0x9   :  { %7890 = sst [smem:[#allocation67_spill]] %s6954_s13  ;;  %s6874_s20 = smov 11  }
   0xa   :  { %s6984_s8 = sld [smem:[%s7876_s0 + %s6871_s4]]   ;;  %s6875_s26 = smov 12  }
   0xb   :  { %7891 = sst [smem:[#allocation68_spill]] %s6964_s21  ;;  %s6876_s1 = smov 13  }
   0xc   :  { %s6989_s14 = sld [smem:[%s7876_s0 + %s6872_s10]]   ;;  %s6877_s7 = smov 14  }
   0xd   :  { %7892 = sst [smem:[#allocation69_spill]] %s6974_s29  ;;  %s6879_s22 = smov 16  }
   0xe   :  { %s6994_s19 = sld [smem:[%s7876_s0 + %s6873_s15]]   ;;  %s6878_s15 = smov 15  }
   0xf   :  { %s6999_s24 = sld [smem:[%s7876_s0 + %s6874_s20]]   ;;  %s6880_s28 = smov 17  }
  0x10   :  { %7893 = sst [smem:[#allocation70_spill]] %s6984_s8 }
  0x11   :  { %s7004_s30 = sld [smem:[%s7876_s0 + %s6875_s26]]  }
  0x12   :  { %s7009_s6 = sld [smem:[%s7876_s0 + %s6876_s1]]  }
  0x13   :  { %s7014_s12 = sld [smem:[%s7876_s0 + %s6877_s7]]   ;;  %s6881_s7 = smov 18  }
  0x14   :  { %7894 = sst [smem:[#allocation71_spill]] %s6994_s19 }
  0x15   :  { %s7019_s20 = sld [smem:[%s7876_s0 + %s6878_s15]]   ;;  %s6882_s15 = smov 19  }
  0x16   :  { %s7024_s27 = sld [smem:[%s7876_s0 + %s6879_s22]]   ;;  %s6883_s22 = smov 20  }
  0x17   :  { %7895 = sst [smem:[#allocation72_spill]] %s7004_s30 }
  0x18   :  { %s7029_s4 = sld [smem:[%s7876_s0 + %s6880_s28]]   ;;  %s6884_s28 = smov 21  }
  0x19   :  { %7896 = sst [smem:[#allocation73_spill]] %s7014_s12 }
  0x1a   :  { %s7034_s12 = sld [smem:[%s7876_s0 + %s6881_s7]]   ;;  %s6885_s7 = smov 22  }
  0x1b   :  { %s7039_s30 = sld [smem:[%s7876_s0 + %s6882_s15]]   ;;  %s6886_s15 = smov 23  }
  0x1c   :  { %7897 = sst [smem:[#allocation74_spill]] %s7024_s27 }
  0x1d   :  { %s7044_s27 = sld [smem:[%s7876_s0 + %s6883_s22]]   ;;  %s6887_s22 = smov 24  }
  0x1e   :  { %s7049_s19 = sld [smem:[%s7876_s0 + %s6884_s28]]   ;;  %s6888_s28 = smov 25  }
  0x1f   :  { %s7059_s8 = sld [smem:[%s7876_s0 + %s6886_s15]]   ;;  %s6890_s15 = smov 27  }
  0x20   :  { %7898 = sst [smem:[#allocation75_spill]] %s7034_s12 }
  0x21   :  { %s7054_s12 = sld [smem:[%s7876_s0 + %s6885_s7]]   ;;  %s6889_s7 = smov 26  }
  0x22   :  { %s7069_s29 = sld [smem:[%s7876_s0 + %s6888_s28]]   ;;  %s6892_s28 = smov 29  }
  0x23   :  { %7899 = sst [smem:[#allocation76_spill]] %s7044_s27 }
  0x24   :  { %s7064_s27 = sld [smem:[%s7876_s0 + %s6887_s22]]   ;;  %s6891_s22 = smov 28  }
  0x25   :  { %s7079_s21 = sld [smem:[%s7876_s0 + %s6890_s15]]  }
  0x26   :  { %s7089_s13 = sld [smem:[%s7876_s0 + %s6892_s28]]  }
  0x27   :  { %7900 = sst [smem:[#allocation77_spill]] %s7054_s12 }
  0x28   :  { %s7074_s12 = sld [smem:[%s7876_s0 + %s6889_s7]]   ;;  %s6893_s7 = smov 30  }
  0x2a   :  { %7901 = sst [smem:[#allocation78_spill]] %s7064_s27 }
  0x2b   :  { %s7084_s27 = sld [smem:[%s7876_s0 + %s6891_s22]]  }
  0x2e   :  { %7902 = sst [smem:[#allocation79_spill]] %s7074_s12 }
  0x2f   :  { %s7094_s12 = sld [smem:[%s7876_s0 + %s6893_s7]]  }
  0x30   :  { %66 = vsyncpa [#allocation3], 0 }
  0x31   :  { %67 = vsyncpa [#allocation6], 0 }
  0x32   :  { %68 = vsyncpa [#allocation9], 0 }
  0x33   :  { %69 = vsyncpa [#allocation12], 0 }
  0x34   :  { %70 = vsyncpa [#allocation15], 0 }
  0x35   :  { %71 = vsyncpa [#allocation18], 0 }
  0x36   :  { %72 = vsyncpa [#allocation21], 0 }
  0x37   :  { %73 = vsyncpa [#allocation24], 0 }
  0x38   :  { %74 = vsyncpa [#allocation27], 0 }
  0x39   :  { %75 = vsyncpa [#allocation30], 0 }
  0x3a   :  { %76 = vsyncpa [#allocation33], 0 }
  0x3b   :  { %77 = vsyncpa [#allocation36], 0 }
  0x3c   :  { %78 = vsyncpa [#allocation39], 0 }
  0x3d   :  { %79 = vsyncpa [#allocation42], 0 }
  0x3e   :  { %80 = vsyncpa [#allocation45], 0 }
  0x3f   :  { %81 = vsyncpa [#allocation48], 0 }
  0x40   :  { %82 = vsyncpa [#allocation4], 0  ;;  %s6894_s0 = smov [#allocation5]   ;;  %s6148_s16 = scalar_lea.hbm %s6949_s9, 256 }
  0x41   :  { %s100_s15 = sshll.u32 %s6894_s0, 4  ;;  %p6149_p0 = scmp.ne.s32.totalorder %s6949_s9, %s6148_s16  ;;  %s101_s15 = int_to_ptr.vmem [resolvable:$true] %s100_s15 }
  0x42   :  { %p6152_p1 = scmp.lt.u32.totalorder %s6148_s16, %s6949_s9 }
  0x44   :  { %p6154_p2 = pnand %p6152_p1, %p6149_p0 }
  0x46   :  { %6157 = shalt.err (!%p6154_p2)
}
  0x47   :  { %s6158_s18 = scalar_lea.vmem %s101_s15, 256  ;;  %p6163_p4 = scmp.lt.s32.totalorder %s101_s15, %s101_s15 }
  0x48   :  { %p6159_p3 = scmp.ne.s32.totalorder %s101_s15, %s6158_s18  ;;  %p6164_p5 = scmp.lt.s32.totalorder %s6158_s18, %s6158_s18 }
  0x4a   :  { %p6165_p6 = por %p6164_p5, %p6163_p4 }
  0x4c   :  { %p6166_p7 = pnand %p6165_p6, %p6159_p3 }
  0x4e   :  { %6169 = shalt.err (!%p6166_p7)
}
  0x4f   :  { %s6895_s22 = smov 64   ;;  %s6896_s23 = smov 4  }
  0x50   :  { %106 = dma.hbm_to_vmem [thread:$0]  %s6949_s9, 256, %s101_s15, [#allocation6], %s6895_s22, %s6895_s22, %s6896_s23  }
  0x51   :  { %s6897_s26 = smov [#allocation8]   ;;  %s6898_s1 = smov [#allocation11]  }
  0x52   :  { %s124_s28 = sshll.u32 %s6897_s26, 4  ;;  %s148_s2 = sshll.u32 %s6898_s1, 4  ;;  %s125_s28 = int_to_ptr.vmem [resolvable:$true] %s124_s28  ;;  %s149_s2 = int_to_ptr.vmem [resolvable:$true] %s148_s2 }
  0x53   :  { %s6170_s7 = scalar_lea.hbm %s6959_s17, 512 }
  0x54   :  { %p6171_p8 = scmp.ne.s32.totalorder %s6959_s17, %s6170_s7  ;;  %p6174_p9 = scmp.lt.u32.totalorder %s6170_s7, %s6959_s17 }
  0x56   :  { %p6176_p10 = pnand %p6174_p9, %p6171_p8 }
  0x58   :  { %6179 = shalt.err (!%p6176_p10)
}
  0x59   :  { %s6180_s10 = scalar_lea.vmem %s125_s28, 512  ;;  %p6185_p12 = scmp.lt.s32.totalorder %s125_s28, %s125_s28 }
  0x5a   :  { %p6181_p11 = scmp.ne.s32.totalorder %s125_s28, %s6180_s10  ;;  %p6186_p13 = scmp.lt.s32.totalorder %s6180_s10, %s6180_s10 }
  0x5c   :  { %p6187_p0 = por %p6186_p13, %p6185_p12 }
  0x5e   :  { %p6188_p1 = pnand %p6187_p0, %p6181_p11 }
  0x60   :  { %6191 = shalt.err (!%p6188_p1)
}
  0x61   :  { %s6899_s11 = smov 128   ;;  %s6900_s9 = smov 8  }
  0x62   :  { %130 = dma.hbm_to_vmem [thread:$0]  %s6959_s17, 512, %s125_s28, [#allocation9], %s6899_s11, %s6899_s11, %s6900_s9  }
  0x63   :  { %s6192_s0 = scalar_lea.hbm %s6969_s25, 64 }
  0x64   :  { %p6193_p2 = scmp.ne.s32.totalorder %s6969_s25, %s6192_s0  ;;  %p6196_p3 = scmp.lt.u32.totalorder %s6192_s0, %s6969_s25 }
  0x66   :  { %p6198_p4 = pnand %p6196_p3, %p6193_p2 }
  0x68   :  { %6201 = shalt.err (!%p6198_p4)
}
  0x69   :  { %s6202_s15 = scalar_lea.vmem %s149_s2, 64  ;;  %p6207_p6 = scmp.lt.s32.totalorder %s149_s2, %s149_s2 }
  0x6a   :  { %p6203_p5 = scmp.ne.s32.totalorder %s149_s2, %s6202_s15  ;;  %p6208_p7 = scmp.lt.s32.totalorder %s6202_s15, %s6202_s15 }
  0x6c   :  { %p6209_p8 = por %p6208_p7, %p6207_p6 }
  0x6e   :  { %p6210_p9 = pnand %p6209_p8, %p6203_p5 }
  0x70   :  { %6213 = shalt.err (!%p6210_p9)
}
  0x71   :  { %s6901_s16 = smov 16   ;;  %s6902_s18 = smov 1  }
  0x72   :  { %154 = dma.hbm_to_vmem [thread:$0]  %s6969_s25, 64, %s149_s2, [#allocation12], %s6901_s16, %s6901_s16, %s6902_s18  }
  0x73   :  { %s6903_s17 = smov [#allocation14]   ;;  %s6904_s28 = smov [#allocation17]  }
  0x74   :  { %s172_s26 = sshll.u32 %s6903_s17, 4  ;;  %s196_s1 = sshll.u32 %s6904_s28, 4  ;;  %s173_s26 = int_to_ptr.vmem [resolvable:$true] %s172_s26  ;;  %s197_s1 = int_to_ptr.vmem [resolvable:$true] %s196_s1 }
  0x75   :  { %s6214_s7 = scalar_lea.hbm %s6979_s3, 64 }
  0x76   :  { %p6215_p10 = scmp.ne.s32.totalorder %s6979_s3, %s6214_s7  ;;  %p6218_p11 = scmp.lt.u32.totalorder %s6214_s7, %s6979_s3 }
  0x78   :  { %p6220_p12 = pnand %p6218_p11, %p6215_p10 }
  0x7a   :  { %6223 = shalt.err (!%p6220_p12)
}
  0x7b   :  { %s6224_s10 = scalar_lea.vmem %s173_s26, 64  ;;  %p6229_p0 = scmp.lt.s32.totalorder %s173_s26, %s173_s26 }
  0x7c   :  { %p6225_p13 = scmp.ne.s32.totalorder %s173_s26, %s6224_s10  ;;  %p6230_p1 = scmp.lt.s32.totalorder %s6224_s10, %s6224_s10 }
  0x7e   :  { %p6231_p2 = por %p6230_p1, %p6229_p0 }
  0x80   :  { %p6232_p3 = pnand %p6231_p2, %p6225_p13 }
  0x82   :  { %6235 = shalt.err (!%p6232_p3)
}
  0x83   :  { %178 = dma.hbm_to_vmem [thread:$0]  %s6979_s3, 64, %s173_s26, [#allocation15], %s6901_s16, %s6901_s16, %s6902_s18  }
  0x84   :  { %s6236_s25 = scalar_lea.hbm %s6989_s14, 64 }
  0x85   :  { %p6237_p4 = scmp.ne.s32.totalorder %s6989_s14, %s6236_s25  ;;  %p6240_p5 = scmp.lt.u32.totalorder %s6236_s25, %s6989_s14 }
  0x87   :  { %p6242_p6 = pnand %p6240_p5, %p6237_p4 }
  0x89   :  { %6245 = shalt.err (!%p6242_p6)
}
  0x8a   :  { %s6246_s2 = scalar_lea.vmem %s197_s1, 64  ;;  %p6251_p8 = scmp.lt.s32.totalorder %s197_s1, %s197_s1 }
  0x8b   :  { %p6247_p7 = scmp.ne.s32.totalorder %s197_s1, %s6246_s2  ;;  %p6252_p9 = scmp.lt.s32.totalorder %s6246_s2, %s6246_s2 }
  0x8d   :  { %p6253_p10 = por %p6252_p9, %p6251_p8 }
  0x8f   :  { %p6254_p11 = pnand %p6253_p10, %p6247_p7 }
  0x91   :  { %6257 = shalt.err (!%p6254_p11)
}
  0x92   :  { %202 = dma.hbm_to_vmem [thread:$0]  %s6989_s14, 64, %s197_s1, [#allocation18], %s6901_s16, %s6901_s16, %s6902_s18  }
  0x93   :  { %s6905_s3 = smov [#allocation20]   ;;  %s6906_s15 = smov [#allocation23]  }
  0x94   :  { %s221_s0 = sshll.u32 %s6905_s3, 4  ;;  %s242_s17 = sshll.u32 %s6906_s15, 4  ;;  %s222_s0 = int_to_ptr.vmem [resolvable:$true] %s221_s0  ;;  %s243_s17 = int_to_ptr.vmem [resolvable:$true] %s242_s17 }
  0x95   :  { %s6258_s26 = scalar_lea.hbm %s6999_s24, 16 }
  0x96   :  { %p6259_p12 = scmp.ne.s32.totalorder %s6999_s24, %s6258_s26  ;;  %p6262_p13 = scmp.lt.u32.totalorder %s6258_s26, %s6999_s24 }
  0x98   :  { %p6264_p0 = pnand %p6262_p13, %p6259_p12 }
  0x9a   :  { %6267 = shalt.err (!%p6264_p0)
}
  0x9b   :  { %s6268_s28 = scalar_lea.vmem %s222_s0, 16  ;;  %s6272_s7 = scalar_lea.vmem %s222_s0, 32 }
  0x9c   :  { %p6269_p1 = scmp.ne.s32.totalorder %s222_s0, %s6268_s28  ;;  %p6273_p2 = scmp.lt.s32.totalorder %s222_s0, %s222_s0 }
  0x9d   :  { %p6274_p3 = scmp.lt.s32.totalorder %s6272_s7, %s6268_s28 }
  0x9f   :  { %p6275_p4 = por %p6274_p3, %p6273_p2 }
  0xa1   :  { %p6276_p5 = pnand %p6275_p4, %p6269_p1 }
  0xa3   :  { %6279 = shalt.err (!%p6276_p5)
}
  0xa4   :  { %224 = dma.hbm_to_vmem [thread:$0]  %s6999_s24, 16, %s222_s0, [#allocation21]  }
  0xa5   :  { %s6280_s14 = scalar_lea.hbm %s7009_s6, 256 }
  0xa6   :  { %p6281_p6 = scmp.ne.s32.totalorder %s7009_s6, %s6280_s14  ;;  %p6284_p7 = scmp.lt.u32.totalorder %s6280_s14, %s7009_s6 }
  0xa8   :  { %p6286_p8 = pnand %p6284_p7, %p6281_p6 }
  0xaa   :  { %6289 = shalt.err (!%p6286_p8)
}
  0xab   :  { %s6290_s1 = scalar_lea.vmem %s243_s17, 256  ;;  %p6295_p10 = scmp.lt.s32.totalorder %s243_s17, %s243_s17 }
  0xac   :  { %p6291_p9 = scmp.ne.s32.totalorder %s243_s17, %s6290_s1  ;;  %p6296_p11 = scmp.lt.s32.totalorder %s6290_s1, %s6290_s1 }
  0xae   :  { %p6297_p12 = por %p6296_p11, %p6295_p10 }
  0xb0   :  { %p6298_p13 = pnand %p6297_p12, %p6291_p9 }
  0xb2   :  { %6301 = shalt.err (!%p6298_p13)
}
  0xb3   :  { %248 = dma.hbm_to_vmem [thread:$0]  %s7009_s6, 256, %s243_s17, [#allocation24], %s6899_s11, %s6899_s11, %s6900_s9  }
  0xb4   :  { %s6907_s24 = smov [#allocation26]   ;;  %s6908_s25 = smov [#allocation29]  }
  0xb5   :  { %s266_s10 = sshll.u32 %s6907_s24, 4  ;;  %s290_s2 = sshll.u32 %s6908_s25, 4  ;;  %s267_s10 = int_to_ptr.vmem [resolvable:$true] %s266_s10  ;;  %s291_s2 = int_to_ptr.vmem [resolvable:$true] %s290_s2 }
  0xb6   :  { %s6302_s3 = scalar_lea.hbm %s7019_s20, 64 }
  0xb7   :  { %p6303_p0 = scmp.ne.s32.totalorder %s7019_s20, %s6302_s3  ;;  %p6306_p1 = scmp.lt.u32.totalorder %s6302_s3, %s7019_s20 }
  0xb9   :  { %p6308_p2 = pnand %p6306_p1, %p6303_p0 }
  0xbb   :  { %6311 = shalt.err (!%p6308_p2)
}
  0xbc   :  { %s6312_s0 = scalar_lea.vmem %s267_s10, 64  ;;  %p6317_p4 = scmp.lt.s32.totalorder %s267_s10, %s267_s10 }
  0xbd   :  { %p6313_p3 = scmp.ne.s32.totalorder %s267_s10, %s6312_s0  ;;  %p6318_p5 = scmp.lt.s32.totalorder %s6312_s0, %s6312_s0 }
  0xbf   :  { %p6319_p6 = por %p6318_p5, %p6317_p4 }
  0xc1   :  { %p6320_p7 = pnand %p6319_p6, %p6313_p3 }
  0xc3   :  { %6323 = shalt.err (!%p6320_p7)
}
  0xc4   :  { %272 = dma.hbm_to_vmem [thread:$0]  %s7019_s20, 64, %s267_s10, [#allocation27], %s6901_s16, %s6901_s16, %s6902_s18  }
  0xc5   :  { %s6324_s6 = scalar_lea.hbm %s7029_s4, 64 }
  0xc6   :  { %p6325_p8 = scmp.ne.s32.totalorder %s7029_s4, %s6324_s6  ;;  %p6328_p9 = scmp.lt.u32.totalorder %s6324_s6, %s7029_s4 }
  0xc8   :  { %p6330_p10 = pnand %p6328_p9, %p6325_p8 }
  0xca   :  { %6333 = shalt.err (!%p6330_p10)
}
  0xcb   :  { %s6334_s15 = scalar_lea.vmem %s291_s2, 64  ;;  %p6339_p12 = scmp.lt.s32.totalorder %s291_s2, %s291_s2 }
  0xcc   :  { %p6335_p11 = scmp.ne.s32.totalorder %s291_s2, %s6334_s15  ;;  %p6340_p13 = scmp.lt.s32.totalorder %s6334_s15, %s6334_s15 }
  0xce   :  { %p6341_p0 = por %p6340_p13, %p6339_p12 }
  0xd0   :  { %p6342_p1 = pnand %p6341_p0, %p6335_p11 }
  0xd2   :  { %6345 = shalt.err (!%p6342_p1)
}
  0xd3   :  { %296 = dma.hbm_to_vmem [thread:$0]  %s7029_s4, 64, %s291_s2, [#allocation30], %s6901_s16, %s6901_s16, %s6902_s18  }
  0xd4   :  { %s6909_s20 = smov [#allocation32]   ;;  %s6910_s26 = smov [#allocation35]  }
  0xd5   :  { %s314_s17 = sshll.u32 %s6909_s20, 4  ;;  %s339_s28 = sshll.u32 %s6910_s26, 4  ;;  %s315_s17 = int_to_ptr.vmem [resolvable:$true] %s314_s17  ;;  %s340_s28 = int_to_ptr.vmem [resolvable:$true] %s339_s28 }
  0xd6   :  { %s6346_s7 = scalar_lea.hbm %s7039_s30, 64 }
  0xd7   :  { %p6347_p2 = scmp.ne.s32.totalorder %s7039_s30, %s6346_s7  ;;  %p6350_p3 = scmp.lt.u32.totalorder %s6346_s7, %s7039_s30 }
  0xd9   :  { %p6352_p4 = pnand %p6350_p3, %p6347_p2 }
  0xdb   :  { %6355 = shalt.err (!%p6352_p4)
}
  0xdc   :  { %s6356_s14 = scalar_lea.vmem %s315_s17, 64  ;;  %p6361_p6 = scmp.lt.s32.totalorder %s315_s17, %s315_s17 }
  0xdd   :  { %p6357_p5 = scmp.ne.s32.totalorder %s315_s17, %s6356_s14  ;;  %p6362_p7 = scmp.lt.s32.totalorder %s6356_s14, %s6356_s14 }
  0xdf   :  { %p6363_p8 = por %p6362_p7, %p6361_p6 }
  0xe1   :  { %p6364_p9 = pnand %p6363_p8, %p6357_p5 }
  0xe3   :  { %6367 = shalt.err (!%p6364_p9)
}
  0xe4   :  { %320 = dma.hbm_to_vmem [thread:$0]  %s7039_s30, 64, %s315_s17, [#allocation33], %s6901_s16, %s6901_s16, %s6902_s18  }
  0xe5   :  { %s6368_s4 = scalar_lea.hbm %s7049_s19, 16 }
  0xe6   :  { %p6369_p10 = scmp.ne.s32.totalorder %s7049_s19, %s6368_s4  ;;  %p6372_p11 = scmp.lt.u32.totalorder %s6368_s4, %s7049_s19 }
  0xe8   :  { %p6374_p12 = pnand %p6372_p11, %p6369_p10 }
  0xea   :  { %6377 = shalt.err (!%p6374_p12)
}
  0xeb   :  { %s6378_s1 = scalar_lea.vmem %s340_s28, 16  ;;  %s6382_s24 = scalar_lea.vmem %s340_s28, 32 }
  0xec   :  { %p6379_p13 = scmp.ne.s32.totalorder %s340_s28, %s6378_s1  ;;  %p6383_p0 = scmp.lt.s32.totalorder %s340_s28, %s340_s28 }
  0xed   :  { %p6384_p1 = scmp.lt.s32.totalorder %s6382_s24, %s6378_s1 }
  0xef   :  { %p6385_p2 = por %p6384_p1, %p6383_p0 }
  0xf1   :  { %p6386_p3 = pnand %p6385_p2, %p6379_p13 }
  0xf3   :  { %6389 = shalt.err (!%p6386_p3)
}
  0xf4   :  { %342 = dma.hbm_to_vmem [thread:$0]  %s7049_s19, 16, %s340_s28, [#allocation36]  }
  0xf5   :  { %s6911_s30 = smov [#allocation38]   ;;  %s6912_s18 = smov [#allocation41]  }
  0xf6   :  { %s360_s16 = sshll.u32 %s6911_s30, 4  ;;  %s385_s10 = sshll.u32 %s6912_s18, 4  ;;  %s361_s16 = int_to_ptr.vmem [resolvable:$true] %s360_s16  ;;  %s386_s10 = int_to_ptr.vmem [resolvable:$true] %s385_s10 }
  0xf7   :  { %s6390_s25 = scalar_lea.hbm %s7059_s8, 256 }
  0xf8   :  { %p6391_p4 = scmp.ne.s32.totalorder %s7059_s8, %s6390_s25  ;;  %p6394_p5 = scmp.lt.u32.totalorder %s6390_s25, %s7059_s8 }
  0xfa   :  { %p6396_p6 = pnand %p6394_p5, %p6391_p4 }
  0xfc   :  { %6399 = shalt.err (!%p6396_p6)
}
  0xfd   :  { %s6400_s2 = scalar_lea.vmem %s361_s16, 256  ;;  %p6405_p8 = scmp.lt.s32.totalorder %s361_s16, %s361_s16 }
  0xfe   :  { %p6401_p7 = scmp.ne.s32.totalorder %s361_s16, %s6400_s2  ;;  %p6406_p9 = scmp.lt.s32.totalorder %s6400_s2, %s6400_s2 }
 0x100   :  { %p6407_p10 = por %p6406_p9, %p6405_p8 }
 0x102   :  { %p6408_p11 = pnand %p6407_p10, %p6401_p7 }
 0x104   :  { %6411 = shalt.err (!%p6408_p11)
}
 0x105   :  { %366 = dma.hbm_to_vmem [thread:$0]  %s7059_s8, 256, %s361_s16, [#allocation39], %s6899_s11, %s6899_s11, %s6900_s9  }
 0x106   :  { %s6412_s19 = scalar_lea.hbm %s7069_s29, 16 }
 0x107   :  { %p6413_p12 = scmp.ne.s32.totalorder %s7069_s29, %s6412_s19  ;;  %p6416_p13 = scmp.lt.u32.totalorder %s6412_s19, %s7069_s29 }
 0x109   :  { %p6418_p0 = pnand %p6416_p13, %p6413_p12 }
 0x10b   :  { %6421 = shalt.err (!%p6418_p0)
}
 0x10c   :  { %s6422_s3 = scalar_lea.vmem %s386_s10, 16  ;;  %s6426_s0 = scalar_lea.vmem %s386_s10, 32 }
 0x10d   :  { %p6423_p1 = scmp.ne.s32.totalorder %s386_s10, %s6422_s3  ;;  %p6427_p2 = scmp.lt.s32.totalorder %s386_s10, %s386_s10 }
 0x10e   :  { %p6428_p3 = scmp.lt.s32.totalorder %s6426_s0, %s6422_s3 }
 0x110   :  { %p6429_p4 = por %p6428_p3, %p6427_p2 }
 0x112   :  { %p6430_p5 = pnand %p6429_p4, %p6423_p1 }
 0x114   :  { %6433 = shalt.err (!%p6430_p5)
}
 0x115   :  { %388 = dma.hbm_to_vmem [thread:$0]  %s7069_s29, 16, %s386_s10, [#allocation42]  }
 0x116   :  { %s6913_s8 = smov [#allocation44]   ;;  %s6914_s15 = smov [#allocation2]  }
 0x117   :  { %s407_s6 = sshll.u32 %s6913_s8, 4  ;;  %s88_s20 = sshll.u32 %s6914_s15, 4  ;;  %s408_s6 = int_to_ptr.vmem [resolvable:$true] %s407_s6  ;;  %s89_s20 = int_to_ptr.vmem [resolvable:$true] %s88_s20 }
 0x118   :  { %s6434_s17 = scalar_lea.hbm %s7079_s21, 16 }
 0x119   :  { %p6435_p6 = scmp.ne.s32.totalorder %s7079_s21, %s6434_s17  ;;  %p6438_p7 = scmp.lt.u32.totalorder %s6434_s17, %s7079_s21 }
 0x11b   :  { %p6440_p8 = pnand %p6438_p7, %p6435_p6 }
 0x11d   :  { %6443 = shalt.err (!%p6440_p8)
}
 0x11e   :  { %s6444_s26 = scalar_lea.vmem %s408_s6, 16  ;;  %s6448_s28 = scalar_lea.vmem %s408_s6, 32 }
 0x11f   :  { %p6445_p9 = scmp.ne.s32.totalorder %s408_s6, %s6444_s26  ;;  %p6449_p10 = scmp.lt.s32.totalorder %s408_s6, %s408_s6 }
 0x120   :  { %p6450_p11 = scmp.lt.s32.totalorder %s6448_s28, %s6444_s26 }
 0x122   :  { %p6451_p12 = por %p6450_p11, %p6449_p10 }
 0x124   :  { %p6452_p13 = pnand %p6451_p12, %p6445_p9 }
 0x126   :  { %6455 = shalt.err (!%p6452_p13)
}
 0x127   :  { %410 = dma.hbm_to_vmem [thread:$0]  %s7079_s21, 16, %s408_s6, [#allocation45]  }
 0x128   :  { %s6456_s29 = scalar_lea.hbm %s6944_s5, 256 }
 0x129   :  { %p6457_p0 = scmp.ne.s32.totalorder %s6944_s5, %s6456_s29  ;;  %p6460_p1 = scmp.lt.u32.totalorder %s6456_s29, %s6944_s5 }
 0x12b   :  { %p6462_p2 = pnand %p6460_p1, %p6457_p0 }
 0x12d   :  { %6465 = shalt.err (!%p6462_p2)
}
 0x12e   :  { %s6466_s7 = scalar_lea.vmem %s89_s20, 256  ;;  %p6471_p4 = scmp.lt.s32.totalorder %s89_s20, %s89_s20 }
 0x12f   :  { %p6467_p3 = scmp.ne.s32.totalorder %s89_s20, %s6466_s7  ;;  %p6472_p5 = scmp.lt.s32.totalorder %s6466_s7, %s6466_s7 }
 0x131   :  { %p6473_p6 = por %p6472_p5, %p6471_p4 }
 0x133   :  { %p6474_p7 = pnand %p6473_p6, %p6467_p3 }
 0x135   :  { %6477 = shalt.err (!%p6474_p7)
}
 0x136   :  { %s7903_s14 = sld [smem:[#allocation67_spill]]  ;;  %s6915_s21 = smov [#allocation7]  }
 0x137   :  { %94 = dma.hbm_to_vmem [thread:$0]  %s6944_s5, 256, %s89_s20, [#allocation3], %s6895_s22, %s6895_s22, %s6896_s23  }
 0x138   :  { %s112_s4 = sshll.u32 %s6915_s21, 4  ;;  %s6916_s1 = smov [#allocation10]   ;;  %s113_s4 = int_to_ptr.vmem [resolvable:$true] %s112_s4 }
 0x139   :  { %s136_s24 = sshll.u32 %s6916_s1, 4  ;;  %s137_s24 = int_to_ptr.vmem [resolvable:$true] %s136_s24 }
 0x13c   :  { %s6478_s30 = scalar_lea.hbm %s7903_s14, 512 }
 0x13d   :  { %p6479_p8 = scmp.ne.s32.totalorder %s7903_s14, %s6478_s30  ;;  %p6482_p9 = scmp.lt.u32.totalorder %s6478_s30, %s7903_s14 }
 0x13f   :  { %p6484_p10 = pnand %p6482_p9, %p6479_p8 }
 0x141   :  { %6487 = shalt.err (!%p6484_p10)
}
 0x142   :  { %s6488_s16 = scalar_lea.vmem %s113_s4, 512  ;;  %p6493_p12 = scmp.lt.s32.totalorder %s113_s4, %s113_s4 }
 0x143   :  { %p6489_p11 = scmp.ne.s32.totalorder %s113_s4, %s6488_s16  ;;  %p6494_p13 = scmp.lt.s32.totalorder %s6488_s16, %s6488_s16 }
 0x145   :  { %p6495_p0 = por %p6494_p13, %p6493_p12 }
 0x147   :  { %p6496_p1 = pnand %p6495_p0, %p6489_p11 }
 0x149   :  { %6499 = shalt.err (!%p6496_p1)
}
 0x14a   :  { %s7904_s5 = sld [smem:[#allocation68_spill]] }
 0x14b   :  { %118 = dma.hbm_to_vmem [thread:$0]  %s7903_s14, 512, %s113_s4, [#allocation6], %s6899_s11, %s6899_s11, %s6900_s9  }
 0x150   :  { %s6500_s18 = scalar_lea.hbm %s7904_s5, 512 }
 0x151   :  { %p6501_p2 = scmp.ne.s32.totalorder %s7904_s5, %s6500_s18  ;;  %p6504_p3 = scmp.lt.u32.totalorder %s6500_s18, %s7904_s5 }
 0x153   :  { %p6506_p4 = pnand %p6504_p3, %p6501_p2 }
 0x155   :  { %6509 = shalt.err (!%p6506_p4)
}
 0x156   :  { %s6510_s10 = scalar_lea.vmem %s137_s24, 512  ;;  %p6515_p6 = scmp.lt.s32.totalorder %s137_s24, %s137_s24 }
 0x157   :  { %p6511_p5 = scmp.ne.s32.totalorder %s137_s24, %s6510_s10  ;;  %p6516_p7 = scmp.lt.s32.totalorder %s6510_s10, %s6510_s10 }
 0x159   :  { %p6517_p8 = por %p6516_p7, %p6515_p6 }
 0x15b   :  { %p6518_p9 = pnand %p6517_p8, %p6511_p5 }
 0x15d   :  { %6521 = shalt.err (!%p6518_p9)
}
 0x15e   :  { %s7905_s25 = sld [smem:[#allocation69_spill]]  ;;  %s6917_s2 = smov [#allocation13]  }
 0x15f   :  { %142 = dma.hbm_to_vmem [thread:$0]  %s7904_s5, 512, %s137_s24, [#allocation9], %s6895_s22, %s6895_s22, %s6896_s23  }
 0x160   :  { %s160_s19 = sshll.u32 %s6917_s2, 4  ;;  %s6918_s3 = smov [#allocation16]   ;;  %s161_s19 = int_to_ptr.vmem [resolvable:$true] %s160_s19 }
 0x161   :  { %s184_s0 = sshll.u32 %s6918_s3, 4  ;;  %s185_s0 = int_to_ptr.vmem [resolvable:$true] %s184_s0 }
 0x164   :  { %s6522_s8 = scalar_lea.hbm %s7905_s25, 512 }
 0x165   :  { %p6523_p10 = scmp.ne.s32.totalorder %s7905_s25, %s6522_s8  ;;  %p6526_p11 = scmp.lt.u32.totalorder %s6522_s8, %s7905_s25 }
 0x167   :  { %p6528_p12 = pnand %p6526_p11, %p6523_p10 }
 0x169   :  { %6531 = shalt.err (!%p6528_p12)
}
 0x16a   :  { %s6532_s6 = scalar_lea.vmem %s161_s19, 512  ;;  %p6537_p0 = scmp.lt.s32.totalorder %s161_s19, %s161_s19 }
 0x16b   :  { %p6533_p13 = scmp.ne.s32.totalorder %s161_s19, %s6532_s6  ;;  %p6538_p1 = scmp.lt.s32.totalorder %s6532_s6, %s6532_s6 }
 0x16d   :  { %p6539_p2 = por %p6538_p1, %p6537_p0 }
 0x16f   :  { %p6540_p3 = pnand %p6539_p2, %p6533_p13 }
 0x171   :  { %6543 = shalt.err (!%p6540_p3)
}
 0x172   :  { %s7906_s15 = sld [smem:[#allocation70_spill]] }
 0x173   :  { %166 = dma.hbm_to_vmem [thread:$0]  %s7905_s25, 512, %s161_s19, [#allocation12], %s6895_s22, %s6895_s22, %s6896_s23  }
 0x178   :  { %s6544_s20 = scalar_lea.hbm %s7906_s15, 512 }
 0x179   :  { %p6545_p4 = scmp.ne.s32.totalorder %s7906_s15, %s6544_s20  ;;  %p6548_p5 = scmp.lt.u32.totalorder %s6544_s20, %s7906_s15 }
 0x17b   :  { %p6550_p6 = pnand %p6548_p5, %p6545_p4 }
 0x17d   :  { %6553 = shalt.err (!%p6550_p6)
}
 0x17e   :  { %s6554_s17 = scalar_lea.vmem %s185_s0, 512  ;;  %p6559_p8 = scmp.lt.s32.totalorder %s185_s0, %s185_s0 }
 0x17f   :  { %p6555_p7 = scmp.ne.s32.totalorder %s185_s0, %s6554_s17  ;;  %p6560_p9 = scmp.lt.s32.totalorder %s6554_s17, %s6554_s17 }
 0x181   :  { %p6561_p10 = por %p6560_p9, %p6559_p8 }
 0x183   :  { %p6562_p11 = pnand %p6561_p10, %p6555_p7 }
 0x185   :  { %6565 = shalt.err (!%p6562_p11)
}
 0x186   :  { %s7907_s26 = sld [smem:[#allocation71_spill]]  ;;  %s6919_s28 = smov [#allocation19]  }
 0x187   :  { %190 = dma.hbm_to_vmem [thread:$0]  %s7906_s15, 512, %s185_s0, [#allocation15], %s6895_s22, %s6895_s22, %s6896_s23  }
 0x188   :  { %s208_s29 = sshll.u32 %s6919_s28, 4  ;;  %s209_s29 = int_to_ptr.vmem [resolvable:$true] %s208_s29 }
 0x18c   :  { %s6566_s7 = scalar_lea.hbm %s7907_s26, 128 }
 0x18d   :  { %p6567_p12 = scmp.ne.s32.totalorder %s7907_s26, %s6566_s7  ;;  %p6570_p13 = scmp.lt.u32.totalorder %s6566_s7, %s7907_s26 }
 0x18f   :  { %p6572_p0 = pnand %p6570_p13, %p6567_p12 }
 0x191   :  { %6575 = shalt.err (!%p6572_p0)
}
 0x192   :  { %s6576_s14 = scalar_lea.vmem %s209_s29, 128  ;;  %p6581_p2 = scmp.lt.s32.totalorder %s209_s29, %s209_s29 }
 0x193   :  { %p6577_p1 = scmp.ne.s32.totalorder %s209_s29, %s6576_s14  ;;  %p6582_p3 = scmp.lt.s32.totalorder %s6576_s14, %s6576_s14 }
 0x195   :  { %p6583_p4 = por %p6582_p3, %p6581_p2 }
 0x197   :  { %p6584_p5 = pnand %p6583_p4, %p6577_p1 }
 0x199   :  { %6587 = shalt.err (!%p6584_p5)
}
 0x19a   :  { %s6920_s21 = smov 32   ;;  %s7908_s4 = sld [smem:[#allocation72_spill]] }
 0x19b   :  { %s6921_s1 = smov 2   ;;  %s6922_s24 = smov [#allocation22]  }
 0x19c   :  { %214 = dma.hbm_to_vmem [thread:$0]  %s7907_s26, 128, %s209_s29, [#allocation18], %s6920_s21, %s6920_s21, %s6921_s1  }
 0x19d   :  { %s230_s30 = sshll.u32 %s6922_s24, 4  ;;  %s6923_s16 = smov [#allocation25]   ;;  %s231_s30 = int_to_ptr.vmem [resolvable:$true] %s230_s30 }
 0x19e   :  { %s254_s5 = sshll.u32 %s6923_s16, 4  ;;  %s7224_s5 = int_to_ptr.vmem [resolvable:$true] %s254_s5 }
 0x1a0   :  { %s6588_s18 = scalar_lea.hbm %s7908_s4, 256 }
 0x1a1   :  { %p6589_p6 = scmp.ne.s32.totalorder %s7908_s4, %s6588_s18  ;;  %p6592_p7 = scmp.lt.u32.totalorder %s6588_s18, %s7908_s4 }
 0x1a3   :  { %p6594_p8 = pnand %p6592_p7, %p6589_p6 }
 0x1a5   :  { %6597 = shalt.err (!%p6594_p8)
}
 0x1a6   :  { %s6598_s10 = scalar_lea.vmem %s231_s30, 256  ;;  %p6603_p10 = scmp.lt.s32.totalorder %s231_s30, %s231_s30 }
 0x1a7   :  { %p6599_p9 = scmp.ne.s32.totalorder %s231_s30, %s6598_s10  ;;  %p6604_p11 = scmp.lt.s32.totalorder %s6598_s10, %s6598_s10 }
 0x1a9   :  { %p6605_p12 = por %p6604_p11, %p6603_p10 }
 0x1ab   :  { %p6606_p13 = pnand %p6605_p12, %p6599_p9 }
 0x1ad   :  { %6609 = shalt.err (!%p6606_p13)
}
 0x1ae   :  { %s7909_s25 = sld [smem:[#allocation73_spill]] }
 0x1af   :  { %236 = dma.hbm_to_vmem [thread:$0]  %s7908_s4, 256, %s231_s30, [#allocation21], %s6899_s11, %s6899_s11, %s6900_s9  }
 0x1b4   :  { %s6610_s2 = scalar_lea.hbm %s7909_s25, 512 }
 0x1b5   :  { %p6611_p0 = scmp.ne.s32.totalorder %s7909_s25, %s6610_s2  ;;  %p6614_p1 = scmp.lt.u32.totalorder %s6610_s2, %s7909_s25 }
 0x1b7   :  { %p6616_p2 = pnand %p6614_p1, %p6611_p0 }
 0x1b9   :  { %6619 = shalt.err (!%p6616_p2)
}
 0x1ba   :  { %s6620_s19 = scalar_lea.vmem %s7224_s5, 512  ;;  %p6625_p4 = scmp.lt.s32.totalorder %s7224_s5, %s7224_s5 }
 0x1bb   :  { %p6621_p3 = scmp.ne.s32.totalorder %s7224_s5, %s6620_s19  ;;  %p6626_p5 = scmp.lt.s32.totalorder %s6620_s19, %s6620_s19 }
 0x1bd   :  { %p6627_p6 = por %p6626_p5, %p6625_p4 }
 0x1bf   :  { %p6628_p7 = pnand %p6627_p6, %p6621_p3 }
 0x1c1   :  { %6631 = shalt.err (!%p6628_p7)
}
 0x1c2   :  { %s7910_s3 = sld [smem:[#allocation74_spill]]  ;;  %s6924_s0 = smov [#allocation28]  }
 0x1c3   :  { %260 = dma.hbm_to_vmem [thread:$0]  %s7909_s25, 512, %s7224_s5, [#allocation24], %s6895_s22, %s6895_s22, %s6896_s23  }
 0x1c4   :  { %s278_s8 = sshll.u32 %s6924_s0, 4  ;;  %s6925_s6 = smov [#allocation31]   ;;  %s279_s8 = int_to_ptr.vmem [resolvable:$true] %s278_s8 }
 0x1c5   :  { %s302_s15 = sshll.u32 %s6925_s6, 4  ;;  %s7245_s15 = int_to_ptr.vmem [resolvable:$true] %s302_s15 }
 0x1c8   :  { %s6632_s20 = scalar_lea.hbm %s7910_s3, 512 }
 0x1c9   :  { %p6633_p8 = scmp.ne.s32.totalorder %s7910_s3, %s6632_s20  ;;  %p6636_p9 = scmp.lt.u32.totalorder %s6632_s20, %s7910_s3 }
 0x1cb   :  { %p6638_p10 = pnand %p6636_p9, %p6633_p8 }
 0x1cd   :  { %6641 = shalt.err (!%p6638_p10)
}
 0x1ce   :  { %s6642_s17 = scalar_lea.vmem %s279_s8, 512  ;;  %p6647_p12 = scmp.lt.s32.totalorder %s279_s8, %s279_s8 }
 0x1cf   :  { %p6643_p11 = scmp.ne.s32.totalorder %s279_s8, %s6642_s17  ;;  %p6648_p13 = scmp.lt.s32.totalorder %s6642_s17, %s6642_s17 }
 0x1d1   :  { %p6649_p0 = por %p6648_p13, %p6647_p12 }
 0x1d3   :  { %p6650_p1 = pnand %p6649_p0, %p6643_p11 }
 0x1d5   :  { %6653 = shalt.err (!%p6650_p1)
}
 0x1d6   :  { %s7911_s26 = sld [smem:[#allocation75_spill]] }
 0x1d7   :  { %284 = dma.hbm_to_vmem [thread:$0]  %s7910_s3, 512, %s279_s8, [#allocation27], %s6895_s22, %s6895_s22, %s6896_s23  }
 0x1dc   :  { %s6654_s28 = scalar_lea.hbm %s7911_s26, 512 }
 0x1dd   :  { %p6655_p2 = scmp.ne.s32.totalorder %s7911_s26, %s6654_s28  ;;  %p6658_p3 = scmp.lt.u32.totalorder %s6654_s28, %s7911_s26 }
 0x1df   :  { %p6660_p4 = pnand %p6658_p3, %p6655_p2 }
 0x1e1   :  { %6663 = shalt.err (!%p6660_p4)
}
 0x1e2   :  { %s6664_s29 = scalar_lea.vmem %s7245_s15, 512  ;;  %p6669_p6 = scmp.lt.s32.totalorder %s7245_s15, %s7245_s15 }
 0x1e3   :  { %p6665_p5 = scmp.ne.s32.totalorder %s7245_s15, %s6664_s29  ;;  %p6670_p7 = scmp.lt.s32.totalorder %s6664_s29, %s6664_s29 }
 0x1e5   :  { %p6671_p8 = por %p6670_p7, %p6669_p6 }
 0x1e7   :  { %p6672_p9 = pnand %p6671_p8, %p6665_p5 }
 0x1e9   :  { %6675 = shalt.err (!%p6672_p9)
}
 0x1ea   :  { %s7912_s7 = sld [smem:[#allocation76_spill]]  ;;  %s6926_s14 = smov [#allocation34]  }
 0x1eb   :  { %308 = dma.hbm_to_vmem [thread:$0]  %s7911_s26, 512, %s7245_s15, [#allocation30], %s6895_s22, %s6895_s22, %s6896_s23  }
 0x1ec   :  { %s326_s4 = sshll.u32 %s6926_s14, 4  ;;  %s6927_s24 = smov [#allocation37]   ;;  %s327_s4 = int_to_ptr.vmem [resolvable:$true] %s326_s4 }
 0x1ed   :  { %s348_s30 = sshll.u32 %s6927_s24, 4  ;;  %s7266_s30 = int_to_ptr.vmem [resolvable:$true] %s348_s30 }
 0x1f0   :  { %s6676_s16 = scalar_lea.hbm %s7912_s7, 128 }
 0x1f1   :  { %p6677_p10 = scmp.ne.s32.totalorder %s7912_s7, %s6676_s16  ;;  %p6680_p11 = scmp.lt.u32.totalorder %s6676_s16, %s7912_s7 }
 0x1f3   :  { %p6682_p12 = pnand %p6680_p11, %p6677_p10 }
 0x1f5   :  { %6685 = shalt.err (!%p6682_p12)
}
 0x1f6   :  { %s6686_s5 = scalar_lea.vmem %s327_s4, 128  ;;  %p6691_p0 = scmp.lt.s32.totalorder %s327_s4, %s327_s4 }
 0x1f7   :  { %p6687_p13 = scmp.ne.s32.totalorder %s327_s4, %s6686_s5  ;;  %p6692_p1 = scmp.lt.s32.totalorder %s6686_s5, %s6686_s5 }
 0x1f9   :  { %p6693_p2 = por %p6692_p1, %p6691_p0 }
 0x1fb   :  { %p6694_p3 = pnand %p6693_p2, %p6687_p13 }
 0x1fd   :  { %6697 = shalt.err (!%p6694_p3)
}
 0x1fe   :  { %s7913_s18 = sld [smem:[#allocation77_spill]] }
 0x1ff   :  { %332 = dma.hbm_to_vmem [thread:$0]  %s7912_s7, 128, %s327_s4, [#allocation33], %s6920_s21, %s6920_s21, %s6921_s1  }
 0x204   :  { %s6698_s10 = scalar_lea.hbm %s7913_s18, 256 }
 0x205   :  { %p6699_p4 = scmp.ne.s32.totalorder %s7913_s18, %s6698_s10  ;;  %p6702_p5 = scmp.lt.u32.totalorder %s6698_s10, %s7913_s18 }
 0x207   :  { %p6704_p6 = pnand %p6702_p5, %p6699_p4 }
 0x209   :  { %6707 = shalt.err (!%p6704_p6)
}
 0x20a   :  { %s6708_s25 = scalar_lea.vmem %s7266_s30, 256  ;;  %p6713_p8 = scmp.lt.s32.totalorder %s7266_s30, %s7266_s30 }
 0x20b   :  { %p6709_p7 = scmp.ne.s32.totalorder %s7266_s30, %s6708_s25  ;;  %p6714_p9 = scmp.lt.s32.totalorder %s6708_s25, %s6708_s25 }
 0x20d   :  { %p6715_p10 = por %p6714_p9, %p6713_p8 }
 0x20f   :  { %p6716_p11 = pnand %p6715_p10, %p6709_p7 }
 0x211   :  { %6719 = shalt.err (!%p6716_p11)
}
 0x212   :  { %s7914_s21 = sld [smem:[#allocation78_spill]]  ;;  %s6928_s1 = smov [#allocation40]  }
 0x213   :  { %354 = dma.hbm_to_vmem [thread:$0]  %s7913_s18, 256, %s7266_s30, [#allocation36], %s6899_s11, %s6899_s11, %s6900_s9  }
 0x214   :  { %s372_s2 = sshll.u32 %s6928_s1, 4  ;;  %s6929_s19 = smov [#allocation43]   ;;  %s373_s2 = int_to_ptr.vmem [resolvable:$true] %s372_s2 }
 0x215   :  { %s394_s3 = sshll.u32 %s6929_s19, 4  ;;  %s7287_s3 = int_to_ptr.vmem [resolvable:$true] %s394_s3 }
 0x218   :  { %s6720_s0 = scalar_lea.hbm %s7914_s21, 128 }
 0x219   :  { %p6721_p12 = scmp.ne.s32.totalorder %s7914_s21, %s6720_s0  ;;  %p6724_p13 = scmp.lt.u32.totalorder %s6720_s0, %s7914_s21 }
 0x21b   :  { %p6726_p0 = pnand %p6724_p13, %p6721_p12 }
 0x21d   :  { %6729 = shalt.err (!%p6726_p0)
}
 0x21e   :  { %s6730_s8 = scalar_lea.vmem %s373_s2, 128  ;;  %p6735_p2 = scmp.lt.s32.totalorder %s373_s2, %s373_s2 }
 0x21f   :  { %p6731_p1 = scmp.ne.s32.totalorder %s373_s2, %s6730_s8  ;;  %p6736_p3 = scmp.lt.s32.totalorder %s6730_s8, %s6730_s8 }
 0x221   :  { %p6737_p4 = por %p6736_p3, %p6735_p2 }
 0x223   :  { %p6738_p5 = pnand %p6737_p4, %p6731_p1 }
 0x225   :  { %6741 = shalt.err (!%p6738_p5)
}
 0x226   :  { %s7915_s6 = sld [smem:[#allocation79_spill]] }
 0x227   :  { %378 = dma.hbm_to_vmem [thread:$0]  %s7914_s21, 128, %s373_s2, [#allocation39], %s6895_s22, %s6895_s22, %s6896_s23  }
 0x22c   :  { %s6742_s15 = scalar_lea.hbm %s7915_s6, 256 }
 0x22d   :  { %p6743_p6 = scmp.ne.s32.totalorder %s7915_s6, %s6742_s15  ;;  %p6746_p7 = scmp.lt.u32.totalorder %s6742_s15, %s7915_s6 }
 0x22f   :  { %p6748_p8 = pnand %p6746_p7, %p6743_p6 }
 0x231   :  { %6751 = shalt.err (!%p6748_p8)
}
 0x232   :  { %s6752_s20 = scalar_lea.vmem %s7287_s3, 256  ;;  %p6757_p10 = scmp.lt.s32.totalorder %s7287_s3, %s7287_s3 }
 0x233   :  { %p6753_p9 = scmp.ne.s32.totalorder %s7287_s3, %s6752_s20  ;;  %p6758_p11 = scmp.lt.s32.totalorder %s6752_s20, %s6752_s20 }
 0x235   :  { %p6759_p12 = por %p6758_p11, %p6757_p10 }
 0x237   :  { %p6760_p13 = pnand %p6759_p12, %p6753_p9 }
 0x239   :  { %6763 = shalt.err (!%p6760_p13)
}
 0x23a   :  { %400 = dma.hbm_to_vmem [thread:$0]  %s7915_s6, 256, %s7287_s3, [#allocation42], %s6895_s22, %s6895_s22, %s6896_s23  }
 0x23b   :  { %s6930_s17 = smov [#allocation46]   ;;  %s6931_s28 = smov [#allocation47]  }
 0x23c   :  { %s416_s26 = sshll.u32 %s6930_s17, 4  ;;  %s428_s29 = sshll.u32 %s6931_s28, 4  ;;  %s417_s26 = int_to_ptr.vmem [resolvable:$true] %s416_s26  ;;  %s7308_s29 = int_to_ptr.vmem [resolvable:$true] %s428_s29 }
 0x23d   :  { %s6764_s7 = scalar_lea.hbm %s7084_s27, 256 }
 0x23e   :  { %p6765_p0 = scmp.ne.s32.totalorder %s7084_s27, %s6764_s7  ;;  %p6768_p1 = scmp.lt.u32.totalorder %s6764_s7, %s7084_s27 }
 0x240   :  { %p6770_p2 = pnand %p6768_p1, %p6765_p0 }
 0x242   :  { %6773 = shalt.err (!%p6770_p2)
}
 0x243   :  { %s6774_s14 = scalar_lea.vmem %s417_s26, 256  ;;  %p6779_p4 = scmp.lt.s32.totalorder %s417_s26, %s417_s26 }
 0x244   :  { %p6775_p3 = scmp.ne.s32.totalorder %s417_s26, %s6774_s14  ;;  %p6780_p5 = scmp.lt.s32.totalorder %s6774_s14, %s6774_s14 }
 0x246   :  { %p6781_p6 = por %p6780_p5, %p6779_p4 }
 0x248   :  { %p6782_p7 = pnand %p6781_p6, %p6775_p3 }
 0x24a   :  { %6785 = shalt.err (!%p6782_p7)
}
 0x24b   :  { %422 = dma.hbm_to_vmem [thread:$0]  %s7084_s27, 256, %s417_s26, [#allocation45], %s6899_s11, %s6899_s11, %s6900_s9  }
 0x24c   :  { %s6786_s22 = scalar_lea.hbm %s7089_s13, 256 }
 0x24d   :  { %p6787_p8 = scmp.ne.s32.totalorder %s7089_s13, %s6786_s22  ;;  %p6790_p9 = scmp.lt.u32.totalorder %s6786_s22, %s7089_s13 }
 0x24f   :  { %p6792_p10 = pnand %p6790_p9, %p6787_p8 }
 0x251   :  { %6795 = shalt.err (!%p6792_p10)
}
 0x252   :  { %s6796_s23 = scalar_lea.vmem %s7308_s29, 256  ;;  %p6801_p12 = scmp.lt.s32.totalorder %s7308_s29, %s7308_s29 }
 0x253   :  { %p6797_p11 = scmp.ne.s32.totalorder %s7308_s29, %s6796_s23  ;;  %p6802_p13 = scmp.lt.s32.totalorder %s6796_s23, %s6796_s23 }
 0x255   :  { %p6803_p0 = por %p6802_p13, %p6801_p12 }
 0x257   :  { %p6804_p1 = pnand %p6803_p0, %p6797_p11 }
 0x259   :  { %6807 = shalt.err (!%p6804_p1)
}
 0x25a   :  { %434 = dma.hbm_to_vmem [thread:$0]  %s7089_s13, 256, %s7308_s29, [#allocation48], %s6899_s11, %s6899_s11, %s6900_s9  }
 0x25b   :  { %6830 = dma.done.wait [#allocation3], 256  }
 0x25c   :  { %6831 = vsyncadd [#allocation3], 4294967040 }
 0x25d   :  { %6832 = dma.done.wait [#allocation6], 768  }
 0x25e   :  { %6833 = vsyncadd [#allocation6], 4294966528 }
 0x25f   :  { %6834 = dma.done.wait [#allocation9], 1024  }
 0x260   :  { %6835 = vsyncadd [#allocation9], 4294966272 }
 0x261   :  { %6836 = dma.done.wait [#allocation12], 576  }
 0x262   :  { %6837 = vsyncadd [#allocation12], 4294966720 }
 0x263   :  { %6838 = dma.done.wait [#allocation15], 576  }
 0x264   :  { %6839 = vsyncadd [#allocation15], 4294966720 }
 0x265   :  { %6840 = dma.done.wait [#allocation18], 192  }
 0x266   :  { %6841 = vsyncadd [#allocation18], 4294967104 }
 0x267   :  { %6842 = dma.done.wait [#allocation21], 272  }
 0x268   :  { %6843 = vsyncadd [#allocation21], 4294967024 }
 0x269   :  { %6844 = dma.done.wait [#allocation24], 768  }
 0x26a   :  { %6845 = vsyncadd [#allocation24], 4294966528 }
 0x26b   :  { %6846 = dma.done.wait [#allocation27], 576  }
 0x26c   :  { %6847 = vsyncadd [#allocation27], 4294966720 }
 0x26d   :  { %6848 = dma.done.wait [#allocation30], 576  }
 0x26e   :  { %6849 = vsyncadd [#allocation30], 4294966720 }
 0x26f   :  { %6850 = dma.done.wait [#allocation33], 192  }
 0x270   :  { %6851 = vsyncadd [#allocation33], 4294967104 }
 0x271   :  { %6852 = dma.done.wait [#allocation36], 272  }
 0x272   :  { %6853 = vsyncadd [#allocation36], 4294967024 }
 0x273   :  { %6854 = dma.done.wait [#allocation39], 384  }
 0x274   :  { %6855 = vsyncadd [#allocation39], 4294966912 }
 0x275   :  { %6856 = dma.done.wait [#allocation42], 272  }
 0x276   :  { %6857 = vsyncadd [#allocation42], 4294967024 }
 0x277   :  { %6858 = dma.done.wait [#allocation45], 272  }
 0x278   :  { %6859 = vsyncadd [#allocation45], 4294967024 }
 0x279   :  { %6860 = dma.done.wait [#allocation48], 256  }
 0x27a   :  { %6861 = vsyncadd [#allocation48], 4294967040  ;;  %v5965_v0 = vld [vmem:[#allocation13] sm:$0xff]   ;;  %vm569_vm0 = vcmask 130048   ;;  %v530_v4 = vld [vmem:[#allocation7 + $0x10] sm:$0xff]  ;;  %v6932_v9 = vmov 0.0  }
 0x27b   :  { %v5966_v1 = vld [vmem:[#allocation10] sm:$0xff]   ;;  %5467 = vmatprep.subr.bf16.mxu1 %v5965_v0  ;;  %v529_v3 = vld [vmem:[#allocation7 + $0x8] sm:$0xff]  ;;  %v531_v6 = vld [vmem:[#allocation7 + $0x18] sm:$0xff]  ;;  %vm6933_vm1 = vmmov 0   ;;  %vm763_vm2 = vcmask 31744   ;;  %v6934_v49 = vmov 0  }
 0x27c   :  { %v528_v2 = vld [vmem:[#allocation7] sm:$0xff]  ;;  %5468 = vmatpush3.bf16.msra.mxu1 %v5965_v0  ;;  %5461 = vmatprep.subr.bf16.mxu0 %v5966_v1  ;;  %v7331_v7 = vpack.c.bf16 %v531_v6, %v530_v4  ;;  %v5967_v8 = vld [vmem:[#allocation16] sm:$0xff]   ;;  %vm1461_vm11 = vcmask 1041408   ;;  %s6935_s13 = smov [#allocation49]  }
 0x27d   :  { %v7329_v5 = vpack.c.bf16 %v529_v3, %v528_v2  ;;  %5462 = vmatpush3.bf16.msra.mxu0 %v5966_v1  ;;  %5479 = vmatprep.subr.bf16.mxu1 %v6932_v9  ;;  %v5139_v10 = vld [vmem:[#allocation11] ss:$0 sm:$0xff]  ;;  %v5143_v12 = vld [vmem:[#allocation14] ss:$0 sm:$0xff]  ;;  %v5147_v35 = vld [vmem:[#allocation17] ss:$0 sm:$0xff] }
 0x27e   :  { %5473 = vmatprep.subr.bf16.mxu0 %v5967_v8  ;;  %5964 = vset.pattern.permute.xlu1 %v6934_v49  ;;  %v538_v50 = vld [vmem:[#allocation2 + $0x8] sm:$0xf]  ;;  %v536_v51 = vld [vmem:[#allocation2] sm:$0xf]  ;;  %v539_v52 = vld [vmem:[#allocation2 + $0xc] sm:$0xf] }
 0x27f   :  { %5469 = vmatprep.mubr.msk.bf16.mxu1 %vm569_vm0, %v7329_v5  ;;  %5463 = vmatprep.mubr.msk.bf16.mxu0 %vm569_vm0, %v7329_v5  ;;  %vm542_vm3 = vcmp.eq.bf16.partialorder %v538_v50, 0  ;;  %v537_v53 = vld [vmem:[#allocation2 + $0x4] sm:$0xf]  ;;  %vm540_vm4 = vcmp.eq.bf16.partialorder %v536_v51, 0  ;;  %vm543_vm5 = vcmp.eq.bf16.partialorder %v539_v52, 0  ;;  %s5082_s27 = sshll.u32 %s6935_s13, 4  ;;  %s5083_s27 = int_to_ptr.vmem [resolvable:$true] %s5082_s27 }
 0x280   :  { %5470 = vmatmul.mubr.msk.bf16.vlgmr.msra.gmra.mrb[0].mxu1 %vm569_vm0, %v7331_v7  ;;  %5464 = vmatmul.mubr.msk.bf16.vlgmr.msra.gmra.mrb[0].mxu0 %vm569_vm0, %v7331_v7  ;;  %v860_v54 = vsel %vm542_vm3, 65537, %v6934_v49  ;;  %vm541_vm6 = vcmp.eq.bf16.partialorder %v537_v53, 0  ;;  %v858_v55 = vsel %vm540_vm4, 65537, %v6934_v49  ;;  %v861_v56 = vsel %vm543_vm5, 65537, %v6934_v49  ;;  %s6808_s4 = scalar_lea.vmem %s5083_s27, 512  ;;  %p6813_p3 = scmp.lt.s32.totalorder %s5083_s27, %s5083_s27 }
 0x281   :  { %5474 = vmatpush3.bf16.msra.mxu0 %v5967_v8  ;;  %5475 = vmatprep.mubr.msk.bf16.mxu0 %vm569_vm0, %v7329_v5  ;;  %v864_v57 = vunpack.c.l.b16 %v860_v54  ;;  %v859_v58 = vsel %vm541_vm6, 65537, %v6934_v49  ;;  %v862_v59 = vunpack.c.l.b16 %v858_v55  ;;  %v865_v60 = vunpack.c.l.b16 %v861_v56  ;;  %p6809_p2 = scmp.ne.s32.totalorder %s5083_s27, %s6808_s4  ;;  %p6814_p4 = scmp.lt.s32.totalorder %s6808_s4, %s6808_s4 }
 0x282   :  { %5485 = vmatprep.subr.bf16.mxu0 %v6932_v9  ;;  %5481 = vmatprep.mubr.msk.bf16.mxu1 %vm6933_vm1, %v6932_v9  ;;  %v863_v61 = vunpack.c.l.b16 %v859_v58  ;;  %v5970_v58 = vld [vmem:[#allocation16 + $0x8] sm:$0xff]  }
 0x283   :  { %5963 = vset.pattern.permute.xlu0 %v6934_v49  ;;  %vm7367_vm7 = vcmp.ne.s32.totalorder %v864_v57, 0  ;;  %vm7371_vm8 = vcmp.ne.s32.totalorder %v862_v59, 0  ;;  %vm7375_vm9 = vcmp.ne.s32.totalorder %v865_v60, 0  ;;  %p6815_p5 = por %p6814_p4, %p6813_p3 }
 0x284   :  { %vm7381_vm10 = vcmp.ne.s32.totalorder %v863_v61, 0 }
 0x285   :  { %p6816_p6 = pnand %p6815_p5, %p6809_p2 }
 0x288   :  { %5476 = vmatmul.mubr.msk.bf16.vlgmr.msra.gmra.mrb[4].mxu0 %vm569_vm0, %v7331_v7 }
 0x289   :  { %5487 = vmatprep.mubr.msk.bf16.mxu0 %vm6933_vm1, %v6932_v9 }
 0x353   :  { %v5471_v11 = vpop.f32.mrb[0].mxu1  ;;  %v5465_v14 = vpop.f32.mrb[0].mxu0 }
 0x354   :  { %v678_v13 = vpop.f32.mrb[1].mxu1  ;;  %v619_v16 = vadd.f32 %v5465_v14, %v5139_v10  ;;  %v610_v17 = vpop.f32.mrb[1].mxu0  ;;  %v687_v18 = vadd.f32 %v5471_v11, %v5143_v12 }
 0x355   :  { %v5472_v15 = vpop.f32.mrb[2].mxu1  ;;  %v611_v21 = vadd.f32 %v5139_v10, %v610_v17  ;;  %v5466_v22 = vpop.f32.mrb[2].mxu0  ;;  %v679_v23 = vadd.f32 %v5143_v12, %v678_v13 }
 0x356   :  { %v690_v19 = vadd.f32 %v5472_v15, %v5143_v12  ;;  %v681_v20 = vpop.f32.mrb[3].mxu1  ;;  %v627_v24 = vmul.f32 0.5, %v619_v16  ;;  %v622_v26 = vadd.f32 %v5466_v22, %v5139_v10  ;;  %v613_v27 = vpop.f32.mrb[3].mxu0 }
 0x357   :  { %v682_v25 = vadd.f32 %v5143_v12, %v681_v20  ;;  %v625_v29 = vmul.f32 0.5, %v611_v21  ;;  %v614_v30 = vadd.f32 %v5139_v10, %v613_v27 }
 0x358   :  { %v760_v28 = vpack.c.bf16 %v690_v19, %v687_v18  ;;  %v628_v32 = vmul.f32 0.5, %v622_v26 }
 0x359   :  { %v759_v31 = vpack.c.bf16 %v682_v25, %v679_v23  ;;  %v626_v33 = vmul.f32 0.5, %v614_v30 }
 0x35a   :  { %v815_v34 = vsel %vm763_vm2, %v760_v28, 0  ;;  %v758_v36 = vpack.c.bf16 %v628_v32, %v627_v24 }
 0x35b   :  { %5486 = vmatpush3.bf16.xpose.msra.mxu0 %v815_v34  ;;  %v768_v37 = vsel %vm763_vm2, %v759_v31, 0  ;;  %v757_v38 = vpack.c.bf16 %v626_v33, %v625_v29  ;;  %v5477_v39 = vpop.f32.mrb[4].mxu0 }
 0x35c   :  { %5480 = vmatpush3.bf16.xpose.msra.mxu1 %v768_v37  ;;  %5497 = vmatprep.subr.bf16.mxu0 %v6932_v9  ;;  %v751_v40 = vadd.f32 %v5477_v39, %v5147_v35  ;;  %v742_v41 = vpop.f32.mrb[5].mxu0 }
 0x35d   :  { %5491 = vmatprep.subr.bf16.mxu1 %v6932_v9  ;;  %v743_v42 = vadd.f32 %v5147_v35, %v742_v41  ;;  %v5478_v43 = vpop.f32.mrb[6].mxu0  ;;  %v5968_v41 = vld [vmem:[#allocation13 + $0x8] sm:$0xff]  }
 0x35e   :  { %v754_v44 = vadd.f32 %v5478_v43, %v5147_v35  ;;  %v745_v45 = vpop.f32.mrb[7].mxu0 }
 0x35f   :  { %v746_v46 = vadd.f32 %v5147_v35, %v745_v45 }
 0x360   :  { %v762_v47 = vpack.c.bf16 %v754_v44, %v751_v40 }
 0x361   :  { %v761_v48 = vpack.c.bf16 %v746_v46, %v743_v42  ;;  %v5969_v42 = vld [vmem:[#allocation10 + $0x8] sm:$0xff]  }
 0x362   :  { %5488 = vmatmul.mubr.msk.bf16.vlgmr.msra.gmra.mrb[8].mxu0 %vm763_vm2, %v758_v36 }
 0x363   :  { %5482 = vmatmul.mubr.msk.bf16.vlgmr.msra.gmra.mrb[4].mxu1 %vm763_vm2, %v757_v38  ;;  %5498 = vmatpush3.bf16.msra.mxu0 %v762_v47 }
 0x364   :  { %5492 = vmatpush3.bf16.msra.mxu1 %v761_v48  ;;  %5499 = vmatprep.mubr.msk.bf16.mxu0 %vm6933_vm1, %v6932_v9 }
 0x365   :  { %5493 = vmatprep.mubr.msk.bf16.mxu1 %vm6933_vm1, %v6932_v9  ;;  %5509 = vmatprep.subr.bf16.mxu0 %v5968_v41 }
 0x366   :  { %5503 = vmatprep.subr.bf16.mxu1 %v5969_v42 }
 0x435   :  { %v851_v0 = vpop.f32.mrb[8].mxu0 }
 0x436   :  { %v872_v2 = vsel %vm7367_vm7, 1e-09, %v851_v0  ;;  %v804_v3 = vpop.f32.mrb[4].mxu1  ;;  %v5489_v4 = vpop.f32.mrb[9].mxu0 }
 0x437   :  { %v870_v8 = vsel %vm7371_vm8, 1e-09, %v804_v3  ;;  %v5483_v10 = vpop.f32.mrb[5].mxu1  ;;  %v854_v11 = vpop.f32.mrb[10].mxu0  ;;  %v880_v12 = vsel %vm569_vm0, %v872_v2, -inf }
 0x438   :  { %v873_v13 = vsel %vm7375_vm9, 1e-09, %v854_v11  ;;  %881 = vmax.xlane.f32.xlu0 %v880_v12  ;;  %v807_v14 = vpop.f32.mrb[6].mxu1  ;;  %v5490_v15 = vpop.f32.mrb[11].mxu0  ;;  %v874_v16 = vsel %vm569_vm0, %v870_v8, -inf }
 0x439   :  { %v871_v17 = vsel %vm7381_vm10, 1e-09, %v807_v14  ;;  %875 = vmax.xlane.f32.xlu1 %v874_v16  ;;  %v5484_v18 = vpop.f32.mrb[7].mxu1  ;;  %v883_v19 = vsel %vm569_vm0, %v873_v13, -inf  ;;  %v5155_v15 = vld [vmem:[#allocation11 + $0x1] ss:$0 sm:$0xff] }
 0x43a   :  { %v877_v20 = vsel %vm569_vm0, %v871_v17, -inf }
 0x43c   :  { %884 = vmax.xlane.f32.xlu0 %v883_v19 }
 0x43d   :  { %878 = vmax.xlane.f32.xlu1 %v877_v20 }
 0x4c5   :  { %v882_v21 = vpop.xlane.xlu0 %881 }
 0x4c6   :  { %v888_v22 = vsub.f32 %v872_v2, %v882_v21  ;;  %v876_v23 = vpop.xlane.xlu1 %875 }
 0x4c7   :  { %v886_v24 = vsub.f32 %v870_v8, %v876_v23 }
 0x4c8   :  { %v894_v25 = vmul.f32 1.442695, %v888_v22 }
 0x4c9   :  { %v890_v26 = vmul.f32 1.442695, %v886_v24  ;;  %v885_v27 = vpop.xlane.xlu0 %884 }
 0x4ca   :  { %5992 = vpow2.f32 %v894_v25  ;;  %v889_v28 = vsub.f32 %v873_v13, %v885_v27  ;;  %v879_v29 = vpop.xlane.xlu1 %878  ;;  %v5159_v13 = vld [vmem:[#allocation14 + $0x1] ss:$0 sm:$0xff] }
 0x4cb   :  { %v887_v30 = vsub.f32 %v871_v17, %v879_v29  ;;  %5994 = vpow2.f32 %v890_v26 }
 0x4cc   :  { %v896_v31 = vmul.f32 1.442695, %v889_v28 }
 0x4cd   :  { %v892_v32 = vmul.f32 1.442695, %v887_v30 }
 0x4ce   :  { %5996 = vpow2.f32 %v896_v31 }
 0x4cf   :  { %5998 = vpow2.f32 %v892_v32 }
 0x4d4   :  { %v5993_v33 = vpop.eup %5992 }
 0x4d5   :  { %v904_v34 = vsel %vm569_vm0, %v5993_v33, 0.0  ;;  %v5995_v35 = vpop.eup %5994 }
 0x4d6   :  { %905 = vadd.xlane.f32.xlu0 %v904_v34  ;;  %v898_v37 = vsel %vm569_vm0, %v5995_v35, 0.0 }
 0x4d8   :  { %v5997_v36 = vpop.eup %5996 }
 0x4d9   :  { %v907_v38 = vsel %vm569_vm0, %v5997_v36, 0.0  ;;  %v5999_v39 = vpop.eup %5998 }
 0x4da   :  { %899 = vadd.xlane.f32.xlu0 %v898_v37  ;;  %908 = vadd.xlane.f32.xlu1 %v907_v38  ;;  %v901_v40 = vsel %vm569_vm0, %v5999_v39, 0.0 }
 0x4de   :  { %902 = vadd.xlane.f32.xlu1 %v901_v40  ;;  %v5163_v40 = vld [vmem:[#allocation17 + $0x1] ss:$0 sm:$0xff] }
 0x563   :  { %v906_v43 = vpop.xlane.xlu0 %905 }
 0x564   :  { %6000 = vrcp.f32 %v906_v43 }
 0x567   :  { %v900_v44 = vpop.xlane.xlu0 %899  ;;  %v909_v45 = vpop.xlane.xlu1 %908 }
 0x568   :  { %6002 = vrcp.f32 %v909_v45 }
 0x569   :  { %6004 = vrcp.f32 %v900_v44 }
 0x56b   :  { %v903_v46 = vpop.xlane.xlu1 %902 }
 0x56c   :  { %6006 = vrcp.f32 %v903_v46 }
 0x56e   :  { %v6001_v47 = vpop.eup %6000 }
 0x56f   :  { %v916_v51 = vmul.f32 %v6001_v47, %v5993_v33 }
 0x572   :  { %v6003_v48 = vpop.eup %6002 }
 0x573   :  { %v6005_v50 = vpop.eup %6004  ;;  %v917_v52 = vmul.f32 %v6003_v48, %v5997_v36 }
 0x574   :  { %v914_v55 = vmul.f32 %v6005_v50, %v5995_v35 }
 0x575   :  { %v919_v54 = vpack.c.bf16 %v917_v52, %v916_v51 }
 0x576   :  { %v6007_v53 = vpop.eup %6006 }
 0x577   :  { %v915_v56 = vmul.f32 %v6007_v53, %v5999_v39  ;;  %5500 = vmatmul.mubr.msk.bf16.vlgmr.msra.gmra.mrb[12].mxu0 %vm569_vm0, %v919_v54 }
 0x578   :  { %5510 = vmatpush3.bf16.msra.mxu0 %v5968_v41  ;;  %5511 = vmatprep.mubr.msk.bf16.mxu0 %vm569_vm0, %v7329_v5 }
 0x579   :  { %v918_v57 = vpack.c.bf16 %v915_v56, %v914_v55  ;;  %5521 = vmatprep.subr.bf16.mxu0 %v6932_v9 }
 0x57b   :  { %5494 = vmatmul.mubr.msk.bf16.vlgmr.msra.gmra.mrb[8].mxu1 %vm569_vm0, %v918_v57 }
 0x57c   :  { %5504 = vmatpush3.bf16.msra.mxu1 %v5969_v42  ;;  %5505 = vmatprep.mubr.msk.bf16.mxu1 %vm569_vm0, %v7329_v5 }
 0x57d   :  { %5515 = vmatprep.subr.bf16.mxu1 %v5970_v58 }
 0x57f   :  { %5512 = vmatmul.mubr.msk.bf16.vlgmr.msra.gmra.mrb[16].mxu0 %vm569_vm0, %v7331_v7 }
 0x580   :  { %5523 = vmatprep.mubr.msk.bf16.mxu0 %vm6933_vm1, %v6932_v9 }
 0x583   :  { %5506 = vmatmul.mubr.msk.bf16.vlgmr.msra.gmra.mrb[12].mxu1 %vm569_vm0, %v7331_v7 }
 0x584   :  { %5517 = vmatprep.mubr.msk.bf16.mxu1 %vm569_vm0, %v7329_v5  ;;  %5516 = vmatpush3.bf16.msra.mxu1 %v5970_v58 }
 0x585   :  { %5527 = vmatprep.subr.bf16.mxu1 %v6932_v9 }
 0x58b   :  { %5518 = vmatmul.mubr.msk.bf16.vlgmr.msra.gmra.mrb[16].mxu1 %vm569_vm0, %v7331_v7 }
 0x58c   :  { %5529 = vmatprep.mubr.msk.bf16.mxu1 %vm6933_vm1, %v6932_v9 }
 0x64a   :  { %v7419_v59 = vpop.f32.mrb[12].mxu0 }
 0x64b   :  { %v5501_v60 = vpop.f32.mrb[13].mxu0 }
 0x64c   :  { %v7421_v61 = vpop.f32.mrb[14].mxu0 }
 0x64d   :  { %v1009_v0 = vpack.c.bf16 %v7421_v61, %v7419_v59  ;;  %v5502_v2 = vpop.f32.mrb[15].mxu0  ;;  %v5183_v59 = vld [vmem:[#allocation17 + $0x2] ss:$0 sm:$0xff] }
 0x64e   :  { %v7425_v3 = vpop.f32.mrb[8].mxu1 }
 0x64f   :  { %v5495_v4 = vpop.f32.mrb[9].mxu1 }
 0x650   :  { %v7427_v8 = vpop.f32.mrb[10].mxu1 }
 0x651   :  { %v1008_v10 = vpack.c.bf16 %v7427_v8, %v7425_v3  ;;  %v5496_v11 = vpop.f32.mrb[11].mxu1 }
 0x652   :  { %v5513_v12 = vpop.f32.mrb[16].mxu0 }
 0x653   :  { %v1132_v14 = vpop.f32.mrb[17].mxu0  ;;  %v1141_v17 = vadd.f32 %v5513_v12, %v5159_v13 }
 0x654   :  { %v5514_v16 = vpop.f32.mrb[18].mxu0  ;;  %v1133_v21 = vadd.f32 %v5159_v13, %v1132_v14 }
 0x655   :  { %v1144_v18 = vadd.f32 %v5514_v16, %v5159_v13  ;;  %v1135_v19 = vpop.f32.mrb[19].mxu0 }
 0x656   :  { %v5507_v20 = vpop.f32.mrb[12].mxu1  ;;  %v1136_v22 = vadd.f32 %v5159_v13, %v1135_v19 }
 0x657   :  { %v1071_v23 = vadd.f32 %v5507_v20, %v5155_v15  ;;  %v1062_v24 = vpop.f32.mrb[13].mxu1  ;;  %v1216_v25 = vpack.c.bf16 %v1144_v18, %v1141_v17 }
 0x658   :  { %v1063_v26 = vadd.f32 %v5155_v15, %v1062_v24  ;;  %v5508_v27 = vpop.f32.mrb[14].mxu1  ;;  %v1215_v28 = vpack.c.bf16 %v1136_v22, %v1133_v21 }
 0x659   :  { %v1079_v29 = vmul.f32 0.5, %v1071_v23  ;;  %v1074_v30 = vadd.f32 %v5508_v27, %v5155_v15  ;;  %v1065_v31 = vpop.f32.mrb[15].mxu1  ;;  %v1270_v34 = vsel %vm763_vm2, %v1216_v25, 0 }
 0x65a   :  { %v1077_v32 = vmul.f32 0.5, %v1063_v26  ;;  %v1066_v33 = vadd.f32 %v5155_v15, %v1065_v31  ;;  %5528 = vmatpush3.bf16.xpose.msra.mxu1 %v1270_v34  ;;  %v1223_v36 = vsel %vm763_vm2, %v1215_v28, 0 }
 0x65b   :  { %v1080_v35 = vmul.f32 0.5, %v1074_v30  ;;  %5522 = vmatpush3.bf16.xpose.msra.mxu0 %v1223_v36  ;;  %5539 = vmatprep.subr.bf16.mxu1 %v6932_v9 }
 0x65c   :  { %v1078_v37 = vmul.f32 0.5, %v1066_v33  ;;  %5533 = vmatprep.subr.bf16.mxu0 %v6932_v9 }
 0x65d   :  { %v1214_v38 = vpack.c.bf16 %v1080_v35, %v1079_v29 }
 0x65e   :  { %v1213_v39 = vpack.c.bf16 %v1078_v37, %v1077_v32  ;;  %v5519_v41 = vpop.f32.mrb[16].mxu1  ;;  %v5971_v37 = vld [vmem:[#allocation10 + $0x10] sm:$0xff]  }
 0x65f   :  { %v1207_v42 = vadd.f32 %v5519_v41, %v5163_v40  ;;  %v1198_v43 = vpop.f32.mrb[17].mxu1 }
 0x660   :  { %v1199_v44 = vadd.f32 %v5163_v40, %v1198_v43  ;;  %v5520_v45 = vpop.f32.mrb[18].mxu1 }
 0x661   :  { %5530 = vmatmul.mubr.msk.bf16.vlgmr.msra.gmra.mrb[20].mxu1 %vm763_vm2, %v1214_v38  ;;  %v1210_v46 = vadd.f32 %v5520_v45, %v5163_v40  ;;  %v1201_v47 = vpop.f32.mrb[19].mxu1 }
 0x662   :  { %5524 = vmatmul.mubr.msk.bf16.vlgmr.msra.gmra.mrb[20].mxu0 %vm763_vm2, %v1213_v39  ;;  %5541 = vmatprep.mubr.msk.bf16.mxu1 %vm6933_vm1, %v6932_v9  ;;  %v1202_v48 = vadd.f32 %v5163_v40, %v1201_v47 }
 0x663   :  { %5535 = vmatprep.mubr.msk.bf16.mxu0 %vm6933_vm1, %v6932_v9  ;;  %v1218_v50 = vpack.c.bf16 %v1210_v46, %v1207_v42 }
 0x664   :  { %v1217_v51 = vpack.c.bf16 %v1202_v48, %v1199_v44  ;;  %v5972_v48 = vld [vmem:[#allocation13 + $0x10] sm:$0xff]  }
 0x665   :  { %5540 = vmatpush3.bf16.msra.mxu1 %v1218_v50 }
 0x666   :  { %5534 = vmatpush3.bf16.msra.mxu0 %v1217_v51  ;;  %5557 = vmatprep.subr.bf16.mxu1 %v5971_v37 }
 0x734   :  { %v1306_v52 = vpop.f32.mrb[20].mxu1 }
 0x735   :  { %v1315_v53 = vsel %vm7367_vm7, 1e-09, %v1306_v52  ;;  %v1259_v54 = vpop.f32.mrb[20].mxu0  ;;  %v5531_v55 = vpop.f32.mrb[21].mxu1 }
 0x736   :  { %v5525_v56 = vpop.f32.mrb[21].mxu0  ;;  %v1309_v57 = vpop.f32.mrb[22].mxu1  ;;  %v1323_v58 = vsel %vm569_vm0, %v1315_v53, -inf  ;;  %v1313_v60 = vsel %vm7371_vm8, 1e-09, %v1259_v54 }
 0x737   :  { %v1316_v2 = vsel %vm7375_vm9, 1e-09, %v1309_v57  ;;  %1324 = vmax.xlane.f32.xlu0 %v1323_v58  ;;  %v1262_v4 = vpop.f32.mrb[22].mxu0  ;;  %v5532_v11 = vpop.f32.mrb[23].mxu1  ;;  %v1317_v15 = vsel %vm569_vm0, %v1313_v60, -inf }
 0x738   :  { %v5526_v12 = vpop.f32.mrb[23].mxu0  ;;  %v1326_v13 = vsel %vm569_vm0, %v1316_v2, -inf  ;;  %v1314_v14 = vsel %vm7381_vm10, 1e-09, %v1262_v4  ;;  %v1454_v54 = vld [vmem:[#allocation19 + $0x2] sm:$0x3] }
 0x739   :  { %1327 = vmax.xlane.f32.xlu1 %v1326_v13  ;;  %v1320_v16 = vsel %vm569_vm0, %v1314_v14, -inf  ;;  %5883 = vmatprep.subr.msk.bf16.mxu0 %vm1461_vm11, %v1454_v54  ;;  %v1463_v55 = vsel %vm1461_vm11, %v1454_v54, 0  ;;  %v1010_v56 = vld [vmem:[#allocation19] sm:$0x3] }
 0x73b   :  { %1318 = vmax.xlane.f32.xlu0 %v1317_v15 }
 0x73d   :  { %1321 = vmax.xlane.f32.xlu1 %v1320_v16 }
 0x7c4   :  { %v1325_v17 = vpop.xlane.xlu0 %1324 }
 0x7c5   :  { %v1331_v18 = vsub.f32 %v1315_v53, %v1325_v17 }
 0x7c6   :  { %v1328_v19 = vpop.xlane.xlu1 %1327 }
 0x7c7   :  { %v1337_v20 = vmul.f32 1.442695, %v1331_v18  ;;  %v1332_v21 = vsub.f32 %v1316_v2, %v1328_v19  ;;  %v1521_v18 = vsel %vm1461_vm11, %v1010_v56, 0  ;;  %v5973_v19 = vld [vmem:[#allocation16 + $0x10] sm:$0xff]  }
 0x7c8   :  { %v1319_v22 = vpop.xlane.xlu0 %1318 }
 0x7c9   :  { %6008 = vpow2.f32 %v1337_v20  ;;  %v1339_v23 = vmul.f32 1.442695, %v1332_v21  ;;  %v1329_v24 = vsub.f32 %v1313_v60, %v1319_v22 }
 0x7ca   :  { %v1322_v25 = vpop.xlane.xlu1 %1321 }
 0x7cb   :  { %6010 = vpow2.f32 %v1339_v23  ;;  %v1333_v26 = vmul.f32 1.442695, %v1329_v24  ;;  %v1330_v27 = vsub.f32 %v1314_v14, %v1322_v25  ;;  %v5175_v14 = vld [vmem:[#allocation11 + $0x2] ss:$0 sm:$0xff] }
 0x7cd   :  { %6012 = vpow2.f32 %v1333_v26  ;;  %v1335_v28 = vmul.f32 1.442695, %v1330_v27 }
 0x7cf   :  { %6014 = vpow2.f32 %v1335_v28 }
 0x7d3   :  { %v6009_v29 = vpop.eup %6008 }
 0x7d4   :  { %v1347_v30 = vsel %vm569_vm0, %v6009_v29, 0.0 }
 0x7d5   :  { %v6011_v31 = vpop.eup %6010  ;;  %1348 = vadd.xlane.f32.xlu0 %v1347_v30 }
 0x7d6   :  { %v1350_v32 = vsel %vm569_vm0, %v6011_v31, 0.0 }
 0x7d7   :  { %v6013_v33 = vpop.eup %6012  ;;  %1351 = vadd.xlane.f32.xlu1 %v1350_v32 }
 0x7d8   :  { %v1341_v34 = vsel %vm569_vm0, %v6013_v33, 0.0 }
 0x7d9   :  { %v6015_v35 = vpop.eup %6014  ;;  %1342 = vadd.xlane.f32.xlu0 %v1341_v34  ;;  %v5179_v34 = vld [vmem:[#allocation14 + $0x2] ss:$0 sm:$0xff] }
 0x7da   :  { %v1344_v36 = vsel %vm569_vm0, %v6015_v35, 0.0 }
 0x7db   :  { %1345 = vadd.xlane.f32.xlu1 %v1344_v36 }
 0x862   :  { %v1349_v38 = vpop.xlane.xlu0 %1348 }
 0x863   :  { %6016 = vrcp.f32 %v1349_v38 }
 0x864   :  { %v1352_v39 = vpop.xlane.xlu1 %1351 }
 0x865   :  { %6018 = vrcp.f32 %v1352_v39 }
 0x866   :  { %v1343_v40 = vpop.xlane.xlu0 %1342 }
 0x867   :  { %6020 = vrcp.f32 %v1343_v40 }
 0x868   :  { %v1346_v41 = vpop.xlane.xlu1 %1345 }
 0x869   :  { %6022 = vrcp.f32 %v1346_v41 }
 0x86d   :  { %v6017_v42 = vpop.eup %6016 }
 0x86e   :  { %v1359_v44 = vmul.f32 %v6017_v42, %v6009_v29 }
 0x86f   :  { %v6019_v43 = vpop.eup %6018 }
 0x870   :  { %v1360_v45 = vmul.f32 %v6019_v43, %v6011_v31 }
 0x871   :  { %v6021_v46 = vpop.eup %6020 }
 0x872   :  { %v1362_v47 = vpack.c.bf16 %v1360_v45, %v1359_v44  ;;  %v1357_v51 = vmul.f32 %v6021_v46, %v6013_v33 }
 0x873   :  { %v6023_v50 = vpop.eup %6022 }
 0x874   :  { %v1358_v52 = vmul.f32 %v6023_v50, %v6015_v35  ;;  %5542 = vmatmul.mubr.msk.bf16.vlgmr.msra.gmra.mrb[24].mxu1 %vm569_vm0, %v1362_v47 }
 0x875   :  { %5558 = vmatpush3.bf16.msra.mxu1 %v5971_v37  ;;  %5559 = vmatprep.mubr.msk.bf16.mxu1 %vm569_vm0, %v7329_v5 }
 0x876   :  { %v1361_v53 = vpack.c.bf16 %v1358_v52, %v1357_v51  ;;  %5563 = vmatprep.subr.bf16.mxu1 %v5972_v48 }
 0x878   :  { %5536 = vmatmul.mubr.msk.bf16.vlgmr.msra.gmra.mrb[24].mxu0 %vm569_vm0, %v1361_v53 }
 0x879   :  { %5546 = vmatpush3.bf16.msra.mxu0 %v1463_v55 }
 0x87a   :  { %5884 = vmatprep.subr.msk.bf16.mxu0 %vm1461_vm11, %v1010_v56 }
 0x87c   :  { %5560 = vmatmul.mubr.msk.bf16.vlgmr.msra.gmra.mrb[28].mxu1 %vm569_vm0, %v7331_v7 }
 0x87d   :  { %5564 = vmatpush3.bf16.msra.mxu1 %v5972_v48  ;;  %5565 = vmatprep.mubr.msk.bf16.mxu1 %vm569_vm0, %v7329_v5 }
 0x87e   :  { %5575 = vmatprep.subr.bf16.mxu1 %v6932_v9 }
 0x884   :  { %5566 = vmatmul.mubr.msk.bf16.vlgmr.msra.gmra.mrb[32].mxu1 %vm569_vm0, %v7331_v7 }
 0x885   :  { %5577 = vmatprep.mubr.msk.bf16.mxu1 %vm6933_vm1, %v6932_v9 }
 0x947   :  { %v1444_v57 = vpop.f32.mrb[24].mxu1 }
 0x948   :  { %v5543_v58 = vpop.f32.mrb[25].mxu1 }
 0x949   :  { %v1447_v60 = vpop.f32.mrb[26].mxu1 }
 0x94a   :  { %v1452_v2 = vpack.c.bf16 %v1447_v60, %v1444_v57  ;;  %v5544_v4 = vpop.f32.mrb[27].mxu1 }
 0x94b   :  { %v1400_v11 = vpop.f32.mrb[24].mxu0 }
 0x94c   :  { %v5537_v12 = vpop.f32.mrb[25].mxu0 }
 0x94d   :  { %v1403_v13 = vpop.f32.mrb[26].mxu0 }
 0x94e   :  { %v1451_v15 = vpack.c.bf16 %v1403_v13, %v1400_v11  ;;  %v5538_v16 = vpop.f32.mrb[27].mxu0 }
 0x94f   :  { %v5561_v17 = vpop.f32.mrb[28].mxu1 }
 0x950   :  { %v1632_v20 = vadd.f32 %v5561_v17, %v5175_v14  ;;  %5547 = vmatprep.mubr.msk.bf16.mxu0 %vm763_vm2, %v1451_v15  ;;  %v1623_v21 = vpop.f32.mrb[29].mxu1 }
 0x951   :  { %v1624_v22 = vadd.f32 %v5175_v14, %v1623_v21  ;;  %5548 = vmatmul.mubr.msk.bf16.vlgmr.msra.gmra.mrb[28].mxu0 %vm763_vm2, %v1452_v2  ;;  %v5562_v23 = vpop.f32.mrb[30].mxu1 }
 0x952   :  { %v1635_v24 = vadd.f32 %v5562_v23, %v5175_v14  ;;  %5553 = vmatprep.mubr.msk.bf16.mxu0 %vm763_vm2, %v1008_v10  ;;  %v1626_v25 = vpop.f32.mrb[31].mxu1  ;;  %5552 = vmatpush3.bf16.msra.mxu0 %v1521_v18  ;;  %v1640_v27 = vmul.f32 0.5, %v1632_v20 }
 0x953   :  { %v1627_v26 = vadd.f32 %v5175_v14, %v1626_v25  ;;  %5569 = vmatprep.subr.bf16.mxu0 %v5973_v19  ;;  %v1638_v29 = vmul.f32 0.5, %v1624_v22 }
 0x954   :  { %v1641_v28 = vmul.f32 0.5, %v1635_v24 }
 0x955   :  { %v1639_v30 = vmul.f32 0.5, %v1627_v26 }
 0x956   :  { %v1775_v31 = vpack.c.bf16 %v1641_v28, %v1640_v27 }
 0x957   :  { %v1774_v32 = vpack.c.bf16 %v1639_v30, %v1638_v29  ;;  %v5567_v33 = vpop.f32.mrb[32].mxu1 }
 0x958   :  { %v1693_v35 = vpop.f32.mrb[33].mxu1  ;;  %v1702_v37 = vadd.f32 %v5567_v33, %v5179_v34 }
 0x959   :  { %v5568_v36 = vpop.f32.mrb[34].mxu1  ;;  %v1694_v3 = vadd.f32 %v5179_v34, %v1693_v35 }
 0x95a   :  { %v1705_v38 = vadd.f32 %v5568_v36, %v5179_v34  ;;  %v1696_v39 = vpop.f32.mrb[35].mxu1 }
 0x95b   :  { %v1697_v8 = vadd.f32 %v5179_v34, %v1696_v39 }
 0x95c   :  { %v1777_v10 = vpack.c.bf16 %v1705_v38, %v1702_v37  ;;  %v5974_v37 = vld [vmem:[#allocation10 + $0x18] sm:$0xff]  }
 0x95d   :  { %v1776_v40 = vpack.c.bf16 %v1697_v8, %v1694_v3  ;;  %5554 = vmatmul.mubr.msk.bf16.vlgmr.msra.gmra.mrb[28].mxu0 %vm763_vm2, %v1009_v0 }
 0x95e   :  { %5570 = vmatpush3.bf16.msra.mxu0 %v5973_v19  ;;  %5571 = vmatprep.mubr.msk.bf16.mxu0 %vm569_vm0, %v7329_v5  ;;  %v1831_v42 = vsel %vm763_vm2, %v1777_v10, 0 }
 0x95f   :  { %v1784_v41 = vsel %vm763_vm2, %v1776_v40, 0  ;;  %5581 = vmatprep.subr.bf16.mxu0 %v6932_v9 }
 0x960   :  { %5576 = vmatpush3.bf16.xpose.msra.mxu1 %v1784_v41 }
 0x961   :  { %5587 = vmatprep.subr.bf16.mxu1 %v6932_v9 }
 0x965   :  { %5572 = vmatmul.mubr.msk.bf16.vlgmr.msra.gmra.mrb[32].mxu0 %vm569_vm0, %v7331_v7 }
 0x966   :  { %5583 = vmatprep.mubr.msk.bf16.mxu0 %vm6933_vm1, %v6932_v9 }
 0x967   :  { %5582 = vmatpush3.bf16.xpose.msra.mxu0 %v1831_v42  ;;  %5578 = vmatmul.mubr.msk.bf16.vlgmr.msra.gmra.mrb[36].mxu1 %vm763_vm2, %v1774_v32 }
 0x968   :  { %5593 = vmatprep.subr.bf16.mxu0 %v6932_v9  ;;  %5589 = vmatprep.mubr.msk.bf16.mxu1 %vm6933_vm1, %v6932_v9 }
 0x96e   :  { %5584 = vmatmul.mubr.msk.bf16.vlgmr.msra.gmra.mrb[36].mxu0 %vm763_vm2, %v1775_v31 }
 0x96f   :  { %5595 = vmatprep.mubr.msk.bf16.mxu0 %vm6933_vm1, %v6932_v9 }
 0xa38   :  { %v5573_v61 = vpop.f32.mrb[32].mxu0 }
 0xa39   :  { %v1768_v0 = vadd.f32 %v5573_v61, %v5183_v59  ;;  %v1759_v43 = vpop.f32.mrb[33].mxu0  ;;  %v5975_v61 = vld [vmem:[#allocation13 + $0x18] sm:$0xff]  }
 0xa3a   :  { %v1820_v44 = vpop.f32.mrb[36].mxu1  ;;  %v1760_v45 = vadd.f32 %v5183_v59, %v1759_v43  ;;  %v5574_v46 = vpop.f32.mrb[34].mxu0 }
 0xa3b   :  { %v1874_v47 = vsel %vm7371_vm8, 1e-09, %v1820_v44  ;;  %v5579_v48 = vpop.f32.mrb[37].mxu1  ;;  %v1771_v50 = vadd.f32 %v5574_v46, %v5183_v59  ;;  %v1762_v51 = vpop.f32.mrb[35].mxu0 }
 0xa3c   :  { %v1823_v52 = vpop.f32.mrb[38].mxu1  ;;  %v1878_v53 = vsel %vm569_vm0, %v1874_v47, -inf  ;;  %v1763_v54 = vadd.f32 %v5183_v59, %v1762_v51 }
 0xa3d   :  { %v1875_v55 = vsel %vm7381_vm10, 1e-09, %v1823_v52  ;;  %1879 = vmax.xlane.f32.xlu0 %v1878_v53  ;;  %v5580_v56 = vpop.f32.mrb[39].mxu1  ;;  %v1779_v57 = vpack.c.bf16 %v1771_v50, %v1768_v0  ;;  %v5976_v50 = vld [vmem:[#allocation16 + $0x18] sm:$0xff]  }
 0xa3e   :  { %v1881_v58 = vsel %vm569_vm0, %v1875_v55, -inf  ;;  %v1778_v60 = vpack.c.bf16 %v1763_v54, %v1760_v45  ;;  %v5193_v56 = vld [vmem:[#allocation11 + $0x3] ss:$0 sm:$0xff] }
 0xa3f   :  { %1882 = vmax.xlane.f32.xlu1 %v1881_v58  ;;  %5594 = vmatpush3.bf16.msra.mxu0 %v1779_v57 }
 0xa40   :  { %5588 = vmatpush3.bf16.msra.mxu1 %v1778_v60 }
 0xa41   :  { %v1867_v2 = vpop.f32.mrb[36].mxu0  ;;  %5605 = vmatprep.subr.bf16.mxu1 %v5974_v37 }
 0xa42   :  { %v1876_v4 = vsel %vm7367_vm7, 1e-09, %v1867_v2  ;;  %v5585_v11 = vpop.f32.mrb[37].mxu0 }
 0xa43   :  { %v1870_v12 = vpop.f32.mrb[38].mxu0  ;;  %v1884_v13 = vsel %vm569_vm0, %v1876_v4, -inf }
 0xa44   :  { %v1877_v14 = vsel %vm7375_vm9, 1e-09, %v1870_v12  ;;  %1885 = vmax.xlane.f32.xlu0 %v1884_v13  ;;  %v5586_v15 = vpop.f32.mrb[39].mxu0 }
 0xa45   :  { %v1887_v16 = vsel %vm569_vm0, %v1877_v14, -inf }
 0xa46   :  { %1888 = vmax.xlane.f32.xlu1 %v1887_v16 }
 0xaca   :  { %v1880_v17 = vpop.xlane.xlu0 %1879 }
 0xacb   :  { %v1890_v18 = vsub.f32 %v1874_v47, %v1880_v17  ;;  %v2015_v47 = vld [vmem:[#allocation19 + $0x4] sm:$0x3] }
 0xacc   :  { %v1883_v19 = vpop.xlane.xlu1 %1882  ;;  %5885 = vmatprep.subr.msk.bf16.mxu0 %vm1461_vm11, %v2015_v47  ;;  %v2023_v48 = vsel %vm1461_vm11, %v2015_v47, 0 }
 0xacd   :  { %v1894_v20 = vmul.f32 1.442695, %v1890_v18  ;;  %v1891_v21 = vsub.f32 %v1875_v55, %v1883_v19 }
 0xacf   :  { %6024 = vpow2.f32 %v1894_v20  ;;  %v1896_v22 = vmul.f32 1.442695, %v1891_v21 }
 0xad1   :  { %6026 = vpow2.f32 %v1896_v22  ;;  %v1886_v23 = vpop.xlane.xlu0 %1885 }
 0xad2   :  { %v1892_v24 = vsub.f32 %v1876_v4, %v1886_v23 }
 0xad3   :  { %v1889_v25 = vpop.xlane.xlu1 %1888 }
 0xad4   :  { %v1898_v26 = vmul.f32 1.442695, %v1892_v24  ;;  %v1893_v27 = vsub.f32 %v1877_v14, %v1889_v25 }
 0xad6   :  { %6028 = vpow2.f32 %v1898_v26  ;;  %v1900_v28 = vmul.f32 1.442695, %v1893_v27  ;;  %v5197_v26 = vld [vmem:[#allocation14 + $0x3] ss:$0 sm:$0xff] }
 0xad8   :  { %6030 = vpow2.f32 %v1900_v28 }
 0xad9   :  { %v6025_v29 = vpop.eup %6024 }
 0xada   :  { %v1902_v30 = vsel %vm569_vm0, %v6025_v29, 0.0 }
 0xadb   :  { %v6027_v31 = vpop.eup %6026  ;;  %1903 = vadd.xlane.f32.xlu0 %v1902_v30 }
 0xadc   :  { %v1905_v32 = vsel %vm569_vm0, %v6027_v31, 0.0 }
 0xadd   :  { %1906 = vadd.xlane.f32.xlu1 %v1905_v32 }
 0xae0   :  { %v6029_v33 = vpop.eup %6028 }
 0xae1   :  { %v1908_v34 = vsel %vm569_vm0, %v6029_v33, 0.0 }
 0xae2   :  { %v6031_v35 = vpop.eup %6030  ;;  %1909 = vadd.xlane.f32.xlu0 %v1908_v34 }
 0xae3   :  { %v1911_v36 = vsel %vm569_vm0, %v6031_v35, 0.0 }
 0xae4   :  { %1912 = vadd.xlane.f32.xlu1 %v1911_v36 }
 0xb68   :  { %v1904_v38 = vpop.xlane.xlu0 %1903 }
 0xb69   :  { %6032 = vrcp.f32 %v1904_v38 }
 0xb6a   :  { %v1907_v39 = vpop.xlane.xlu1 %1906 }
 0xb6b   :  { %6034 = vrcp.f32 %v1907_v39 }
 0xb6f   :  { %v1910_v3 = vpop.xlane.xlu0 %1909 }
 0xb70   :  { %6036 = vrcp.f32 %v1910_v3 }
 0xb71   :  { %v1913_v8 = vpop.xlane.xlu1 %1912 }
 0xb72   :  { %6038 = vrcp.f32 %v1913_v8 }
 0xb73   :  { %v6033_v10 = vpop.eup %6032 }
 0xb74   :  { %v1918_v41 = vmul.f32 %v6033_v10, %v6025_v29 }
 0xb75   :  { %v6035_v40 = vpop.eup %6034 }
 0xb76   :  { %v1919_v42 = vmul.f32 %v6035_v40, %v6027_v31 }
 0xb78   :  { %v1922_v59 = vpack.c.bf16 %v1919_v42, %v1918_v41 }
 0xb7a   :  { %v6037_v0 = vpop.eup %6036  ;;  %5590 = vmatmul.mubr.msk.bf16.vlgmr.msra.gmra.mrb[40].mxu1 %vm569_vm0, %v1922_v59 }
 0xb7b   :  { %5606 = vmatpush3.bf16.msra.mxu1 %v5974_v37  ;;  %5607 = vmatprep.mubr.msk.bf16.mxu1 %vm569_vm0, %v7329_v5  ;;  %v1920_v44 = vmul.f32 %v6037_v0, %v6029_v33 }
 0xb7c   :  { %v6039_v43 = vpop.eup %6038  ;;  %5611 = vmatprep.subr.bf16.mxu1 %v5975_v61 }
 0xb7d   :  { %v1921_v45 = vmul.f32 %v6039_v43, %v6031_v35 }
 0xb7f   :  { %v1923_v46 = vpack.c.bf16 %v1921_v45, %v1920_v44 }
 0xb81   :  { %5596 = vmatmul.mubr.msk.bf16.vlgmr.msra.gmra.mrb[40].mxu0 %vm569_vm0, %v1923_v46 }
 0xb82   :  { %5608 = vmatmul.mubr.msk.bf16.vlgmr.msra.gmra.mrb[44].mxu1 %vm569_vm0, %v7331_v7  ;;  %5600 = vmatpush3.bf16.msra.mxu0 %v2023_v48 }
 0xb83   :  { %5612 = vmatpush3.bf16.msra.mxu1 %v5975_v61  ;;  %5613 = vmatprep.mubr.msk.bf16.mxu1 %vm569_vm0, %v7329_v5 }
 0xb84   :  { %5623 = vmatprep.subr.bf16.mxu1 %v6932_v9  ;;  %5617 = vmatprep.subr.bf16.mxu0 %v5976_v50 }
 0xb8a   :  { %5614 = vmatmul.mubr.msk.bf16.vlgmr.msra.gmra.mrb[48].mxu1 %vm569_vm0, %v7331_v7 }
 0xb8b   :  { %5625 = vmatprep.mubr.msk.bf16.mxu1 %vm6933_vm1, %v6932_v9 }
 0xc4d   :  { %v1961_v51 = vpop.f32.mrb[40].mxu1 }
 0xc4e   :  { %v5591_v52 = vpop.f32.mrb[41].mxu1 }
 0xc4f   :  { %v1964_v53 = vpop.f32.mrb[42].mxu1 }
 0xc50   :  { %v2012_v54 = vpack.c.bf16 %v1964_v53, %v1961_v51  ;;  %v5592_v55 = vpop.f32.mrb[43].mxu1 }
 0xc52   :  { %5601 = vmatprep.mubr.msk.bf16.mxu0 %vm763_vm2, %v2012_v54 }
 0xc54   :  { %v2005_v57 = vpop.f32.mrb[40].mxu0 }
 0xc55   :  { %v5597_v58 = vpop.f32.mrb[41].mxu0  ;;  %v5609_v60 = vpop.f32.mrb[44].mxu1 }
 0xc56   :  { %v2008_v2 = vpop.f32.mrb[42].mxu0  ;;  %v2138_v4 = vadd.f32 %v5609_v60, %v5193_v56  ;;  %v2129_v11 = vpop.f32.mrb[45].mxu1 }
 0xc57   :  { %v2013_v12 = vpack.c.bf16 %v2008_v2, %v2005_v57  ;;  %v5598_v13 = vpop.f32.mrb[43].mxu0  ;;  %v2130_v14 = vadd.f32 %v5193_v56, %v2129_v11  ;;  %v5610_v15 = vpop.f32.mrb[46].mxu1 }
 0xc58   :  { %v2141_v16 = vadd.f32 %v5610_v15, %v5193_v56  ;;  %v2132_v17 = vpop.f32.mrb[47].mxu1  ;;  %v2146_v19 = vmul.f32 0.5, %v2138_v4 }
 0xc59   :  { %5602 = vmatmul.mubr.msk.bf16.vlgmr.msra.gmra.mrb[28].mxu0 %vm763_vm2, %v2013_v12  ;;  %v2133_v18 = vadd.f32 %v5193_v56, %v2132_v17  ;;  %v2144_v21 = vmul.f32 0.5, %v2130_v14 }
 0xc5a   :  { %v2147_v20 = vmul.f32 0.5, %v2141_v16  ;;  %5618 = vmatpush3.bf16.msra.mxu0 %v5976_v50  ;;  %5619 = vmatprep.mubr.msk.bf16.mxu0 %vm569_vm0, %v7329_v5 }
 0xc5b   :  { %v2145_v22 = vmul.f32 0.5, %v2133_v18  ;;  %5629 = vmatprep.subr.bf16.mxu0 %v6932_v9 }
 0xc5c   :  { %v2281_v23 = vpack.c.bf16 %v2147_v20, %v2146_v19 }
 0xc5d   :  { %v2280_v24 = vpack.c.bf16 %v2145_v22, %v2144_v21  ;;  %v5615_v25 = vpop.f32.mrb[48].mxu1 }
 0xc5e   :  { %v2199_v27 = vpop.f32.mrb[49].mxu1  ;;  %v2208_v29 = vadd.f32 %v5615_v25, %v5197_v26 }
 0xc5f   :  { %v5616_v28 = vpop.f32.mrb[50].mxu1  ;;  %v2200_v32 = vadd.f32 %v5197_v26, %v2199_v27 }
 0xc60   :  { %v2211_v30 = vadd.f32 %v5616_v28, %v5197_v26  ;;  %v2202_v31 = vpop.f32.mrb[51].mxu1 }
 0xc61   :  { %v2203_v33 = vadd.f32 %v5197_v26, %v2202_v31  ;;  %5620 = vmatmul.mubr.msk.bf16.vlgmr.msra.gmra.mrb[44].mxu0 %vm569_vm0, %v7331_v7  ;;  %v5201_v7 = vld [vmem:[#allocation17 + $0x3] ss:$0 sm:$0xff] }
 0xc62   :  { %v2283_v34 = vpack.c.bf16 %v2211_v30, %v2208_v29  ;;  %5631 = vmatprep.mubr.msk.bf16.mxu0 %vm6933_vm1, %v6932_v9 }
 0xc63   :  { %v2282_v5 = vpack.c.bf16 %v2203_v33, %v2200_v32 }
 0xc64   :  { %v2337_v35 = vsel %vm763_vm2, %v2283_v34, 0 }
 0xc65   :  { %5630 = vmatpush3.bf16.xpose.msra.mxu0 %v2337_v35  ;;  %v2290_v36 = vsel %vm763_vm2, %v2282_v5, 0 }
 0xc66   :  { %5624 = vmatpush3.bf16.xpose.msra.mxu1 %v2290_v36  ;;  %5641 = vmatprep.subr.bf16.mxu0 %v6932_v9  ;;  %v2521_v36 = vld [vmem:[#allocation19 + $0x6] sm:$0x3] }
 0xc67   :  { %5635 = vmatprep.subr.bf16.mxu1 %v6932_v9 }
 0xc6c   :  { %5632 = vmatmul.mubr.msk.bf16.vlgmr.msra.gmra.mrb[48].mxu0 %vm763_vm2, %v2281_v23 }
 0xc6d   :  { %5626 = vmatmul.mubr.msk.bf16.vlgmr.msra.gmra.mrb[52].mxu1 %vm763_vm2, %v2280_v24  ;;  %5643 = vmatprep.mubr.msk.bf16.mxu0 %vm6933_vm1, %v6932_v9 }
 0xc6e   :  { %5637 = vmatprep.mubr.msk.bf16.mxu1 %vm6933_vm1, %v6932_v9 }
 0xd34   :  { %v5621_v37 = vpop.f32.mrb[44].mxu0 }
 0xd35   :  { %v2274_v38 = vadd.f32 %v5621_v37, %v5201_v7  ;;  %v2265_v39 = vpop.f32.mrb[45].mxu0 }
 0xd36   :  { %v2266_v3 = vadd.f32 %v5201_v7, %v2265_v39  ;;  %v5622_v8 = vpop.f32.mrb[46].mxu0 }
 0xd37   :  { %v2277_v10 = vadd.f32 %v5622_v8, %v5201_v7  ;;  %v2268_v40 = vpop.f32.mrb[47].mxu0 }
 0xd38   :  { %v2269_v41 = vadd.f32 %v5201_v7, %v2268_v40  ;;  %v2529_v7 = vsel %vm1461_vm11, %v2521_v36, 0 }
 0xd39   :  { %v2285_v42 = vpack.c.bf16 %v2277_v10, %v2274_v38 }
 0xd3a   :  { %v2284_v59 = vpack.c.bf16 %v2269_v41, %v2266_v3 }
 0xd3b   :  { %5642 = vmatpush3.bf16.msra.mxu0 %v2285_v42 }
 0xd3c   :  { %5636 = vmatpush3.bf16.msra.mxu1 %v2284_v59  ;;  %5886 = vmatprep.subr.msk.bf16.mxu0 %vm1461_vm11, %v2521_v36 }
 0xd3f   :  { %v2373_v61 = vpop.f32.mrb[48].mxu0 }
 0xd40   :  { %v2326_v0 = vpop.f32.mrb[52].mxu1  ;;  %v5633_v43 = vpop.f32.mrb[49].mxu0  ;;  %v2382_v51 = vsel %vm7367_vm7, 1e-09, %v2373_v61  ;;  %v5211_v61 = vld [vmem:[#allocation20] ss:$0 sm:$0xff] }
 0xd41   :  { %v2380_v44 = vsel %vm7371_vm8, 1e-09, %v2326_v0  ;;  %v5627_v45 = vpop.f32.mrb[53].mxu1  ;;  %v2376_v46 = vpop.f32.mrb[50].mxu0  ;;  %v2390_v55 = vsel %vm569_vm0, %v2382_v51, -inf }
 0xd42   :  { %v2329_v47 = vpop.f32.mrb[54].mxu1  ;;  %v5634_v48 = vpop.f32.mrb[51].mxu0  ;;  %v2384_v50 = vsel %vm569_vm0, %v2380_v44, -inf  ;;  %v2383_v63 = vsel %vm7375_vm9, 1e-09, %v2376_v46 }
 0xd43   :  { %v2381_v52 = vsel %vm7381_vm10, 1e-09, %v2329_v47  ;;  %2385 = vmax.xlane.f32.xlu0 %v2384_v50  ;;  %v5628_v53 = vpop.f32.mrb[55].mxu1  ;;  %v2393_v56 = vsel %vm569_vm0, %v2383_v63, -inf }
 0xd44   :  { %v2387_v54 = vsel %vm569_vm0, %v2381_v52, -inf }
 0xd45   :  { %2388 = vmax.xlane.f32.xlu1 %v2387_v54  ;;  %v6145_v54 = vld [vmem:[#allocation7 + $0x8] sm:$0xff] }
 0xd47   :  { %2391 = vmax.xlane.f32.xlu0 %v2390_v55  ;;  %v6146_v55 = vld [vmem:[#allocation7 + $0x10] sm:$0xff] }
 0xd49   :  { %2394 = vmax.xlane.f32.xlu1 %v2393_v56 }
 0xdd0   :  { %v2386_v57 = vpop.xlane.xlu0 %2385 }
 0xdd1   :  { %v2396_v62 = vsub.f32 %v2380_v44, %v2386_v57 }
 0xdd2   :  { %v2389_v58 = vpop.xlane.xlu1 %2388 }
 0xdd3   :  { %v2400_v60 = vmul.f32 1.442695, %v2396_v62  ;;  %v2397_v6 = vsub.f32 %v2381_v52, %v2389_v58  ;;  %v6147_v62 = vld [vmem:[#allocation7 + $0x18] sm:$0xff] }
 0xdd4   :  { %v2392_v2 = vpop.xlane.xlu0 %2391 }
 0xdd5   :  { %6040 = vpow2.f32 %v2400_v60  ;;  %v2402_v4 = vmul.f32 1.442695, %v2397_v6  ;;  %v2398_v11 = vsub.f32 %v2382_v51, %v2392_v2  ;;  %v6144_v51 = vld [vmem:[#allocation7] sm:$0xff] }
 0xdd6   :  { %v2395_v12 = vpop.xlane.xlu1 %2394  ;;  %v2653_v2 = vld [vmem:[#allocation22 + $0x8] sm:$0xff] }
 0xdd7   :  { %6042 = vpow2.f32 %v2402_v4  ;;  %v2404_v1 = vmul.f32 1.442695, %v2398_v11  ;;  %v2399_v13 = vsub.f32 %v2383_v63, %v2395_v12  ;;  %v2668_v4 = vld [vmem:[#allocation23] sm:$0xff] }
 0xdd9   :  { %6044 = vpow2.f32 %v2404_v1  ;;  %v2406_v14 = vmul.f32 1.442695, %v2399_v13 }
 0xddb   :  { %6046 = vpow2.f32 %v2406_v14 }
 0xddf   :  { %v6041_v15 = vpop.eup %6040 }
 0xde0   :  { %v2408_v16 = vsel %vm569_vm0, %v6041_v15, 0.0 }
 0xde1   :  { %v6043_v17 = vpop.eup %6042  ;;  %2409 = vadd.xlane.f32.xlu0 %v2408_v16 }
 0xde2   :  { %v2411_v18 = vsel %vm569_vm0, %v6043_v17, 0.0 }
 0xde3   :  { %v6045_v19 = vpop.eup %6044  ;;  %2412 = vadd.xlane.f32.xlu1 %v2411_v18 }
 0xde4   :  { %v2414_v20 = vsel %vm569_vm0, %v6045_v19, 0.0 }
 0xde5   :  { %v6047_v21 = vpop.eup %6046  ;;  %2415 = vadd.xlane.f32.xlu0 %v2414_v20 }
 0xde6   :  { %v2417_v22 = vsel %vm569_vm0, %v6047_v21, 0.0 }
 0xde7   :  { %2418 = vadd.xlane.f32.xlu1 %v2417_v22 }
 0xe6e   :  { %v2410_v23 = vpop.xlane.xlu0 %2409 }
 0xe6f   :  { %6048 = vrcp.f32 %v2410_v23 }
 0xe70   :  { %v2413_v24 = vpop.xlane.xlu1 %2412 }
 0xe71   :  { %6050 = vrcp.f32 %v2413_v24 }
 0xe72   :  { %v2416_v25 = vpop.xlane.xlu0 %2415 }
 0xe73   :  { %6052 = vrcp.f32 %v2416_v25 }
 0xe74   :  { %v2419_v26 = vpop.xlane.xlu1 %2418 }
 0xe75   :  { %6054 = vrcp.f32 %v2419_v26 }
 0xe79   :  { %v6049_v27 = vpop.eup %6048 }
 0xe7a   :  { %v2424_v29 = vmul.f32 %v6049_v27, %v6041_v15 }
 0xe7b   :  { %v6051_v28 = vpop.eup %6050 }
 0xe7c   :  { %v2425_v30 = vmul.f32 %v6051_v28, %v6043_v17 }
 0xe7d   :  { %v6053_v31 = vpop.eup %6052 }
 0xe7e   :  { %v2428_v32 = vpack.c.bf16 %v2425_v30, %v2424_v29  ;;  %v2426_v34 = vmul.f32 %v6053_v31, %v6045_v19  ;;  %v2669_v30 = vld [vmem:[#allocation23 + $0x8] sm:$0xff]  ;;  %v2652_v31 = vld [vmem:[#allocation22] sm:$0xff] }
 0xe7f   :  { %v6055_v33 = vpop.eup %6054 }
 0xe80   :  { %v2427_v5 = vmul.f32 %v6055_v33, %v6047_v21  ;;  %5638 = vmatmul.mubr.msk.bf16.vlgmr.msra.gmra.mrb[56].mxu1 %vm569_vm0, %v2428_v32  ;;  %v5977_v32 = vld [vmem:[#allocation25] sm:$0xff]  }
 0xe81   :  { %5653 = vmatprep.subr.bf16.mxu1 %v5977_v32  ;;  %v5978_v33 = vld [vmem:[#allocation28] sm:$0xff]  }
 0xe82   :  { %v2429_v35 = vpack.c.bf16 %v2427_v5, %v2426_v34  ;;  %5654 = vmatpush3.bf16.msra.mxu1 %v5977_v32  ;;  %v532_v34 = vld [vmem:[#allocation8] sm:$0xff]  ;;  %v533_v5 = vld [vmem:[#allocation8 + $0x8] sm:$0xff] }
 0xe83   :  { %5659 = vmatprep.subr.bf16.mxu1 %v5978_v33 }
 0xe84   :  { %5644 = vmatmul.mubr.msk.bf16.vlgmr.msra.gmra.mrb[52].mxu0 %vm569_vm0, %v2429_v35  ;;  %v7581_v35 = vpack.c.bf16 %v533_v5, %v532_v34 }
 0xe85   :  { %5648 = vmatpush3.bf16.msra.mxu0 %v2529_v7 }
 0xf53   :  { %v2467_v37 = vpop.f32.mrb[56].mxu1 }
 0xf54   :  { %v5639_v38 = vpop.f32.mrb[57].mxu1 }
 0xf55   :  { %v2470_v39 = vpop.f32.mrb[58].mxu1 }
 0xf56   :  { %v2518_v3 = vpack.c.bf16 %v2470_v39, %v2467_v37  ;;  %v5640_v8 = vpop.f32.mrb[59].mxu1 }
 0xf57   :  { %v2511_v10 = vpop.f32.mrb[52].mxu0 }
 0xf58   :  { %v5645_v40 = vpop.f32.mrb[53].mxu0  ;;  %5649 = vmatprep.mubr.msk.bf16.mxu0 %vm763_vm2, %v2518_v3 }
 0xf59   :  { %v2514_v41 = vpop.f32.mrb[54].mxu0 }
 0xf5a   :  { %v2519_v42 = vpack.c.bf16 %v2514_v41, %v2511_v10  ;;  %v5646_v59 = vpop.f32.mrb[55].mxu0 }
 0xf5c   :  { %5650 = vmatmul.mubr.msk.bf16.vlgmr.msra.gmra.mrb[28].mxu0 %vm763_vm2, %v2519_v42 }
 0xf5d   :  { %5667 = vmatprep.mubr.msk.bf16.mxu0 %vm569_vm0, %v7581_v35 }
0x102f   :  { %v5651_v0 = vpop.f32.mrb[28].mxu0 }
0x1030   :  { %v2565_v43 = vpop.f32.mrb[29].mxu0  ;;  %v2593_v44 = vadd.f32 %v5651_v0, %v5211_v61 }
0x1031   :  { %v2591_v45 = vadd.f32 %v5211_v61, %v2565_v43  ;;  %v5652_v46 = vpop.f32.mrb[30].mxu0 }
0x1032   :  { %v2568_v47 = vpop.f32.mrb[31].mxu0  ;;  %v2594_v48 = vadd.f32 %v5652_v46, %v5211_v61  ;;  %v2597_v56 = vadd.f32 %v6146_v55, %v2593_v44 }
0x1033   :  { %v2592_v50 = vadd.f32 %v5211_v61, %v2568_v47  ;;  %v2595_v52 = vadd.f32 %v6144_v51, %v2591_v45 }
0x1034   :  { %v2598_v58 = vadd.f32 %v6147_v62, %v2594_v48  ;;  %v2605_v60 = vsel %vm569_vm0, %v2597_v56, 0.0 }
0x1035   :  { %v2599_v53 = vsel %vm569_vm0, %v2595_v52, 0.0  ;;  %v2596_v63 = vadd.f32 %v6145_v54, %v2592_v50 }
0x1036   :  { %2600 = vadd.xlane.f32.xlu0 %v2599_v53  ;;  %v2608_v6 = vsel %vm569_vm0, %v2598_v58, 0.0 }
0x1037   :  { %v2602_v57 = vsel %vm569_vm0, %v2596_v63, 0.0 }
0x1038   :  { %2603 = vadd.xlane.f32.xlu1 %v2602_v57 }
0x103a   :  { %2606 = vadd.xlane.f32.xlu0 %v2605_v60 }
0x103c   :  { %2609 = vadd.xlane.f32.xlu1 %v2608_v6 }
0x104d   :  { %2661 = vperm.xlu1 %5964, %v2653_v2  }
0x1051   :  { %2672 = vperm.xlu1 %5964, %v2668_v4   ;;  %v534_v4 = vld [vmem:[#allocation8 + $0x10] sm:$0xff] }
0x10c3   :  { %v2601_v11 = vpop.xlane.xlu0 %2600 }
0x10c4   :  { %v2612_v1 = vmul.f32 0.0625, %v2601_v11  ;;  %v535_v11 = vld [vmem:[#allocation8 + $0x18] sm:$0xff] }
0x10c5   :  { %v2604_v12 = vpop.xlane.xlu1 %2603 }
0x10c6   :  { %v2613_v14 = vmul.f32 0.0625, %v2604_v12  ;;  %v2616_v17 = vsub.f32 %v2595_v52, %v2612_v1  ;;  %v7608_v12 = vpack.c.bf16 %v535_v11, %v534_v4  ;;  %v5979_v1 = vld [vmem:[#allocation31] sm:$0xff]  }
0x10c7   :  { %v2607_v13 = vpop.xlane.xlu0 %2606  ;;  %5665 = vmatprep.subr.bf16.mxu0 %v5979_v1 }
0x10c8   :  { %v2614_v15 = vmul.f32 0.0625, %v2607_v13  ;;  %v2617_v20 = vsub.f32 %v2596_v63, %v2613_v14  ;;  %v2620_v25 = vmul.f32 %v2616_v17, %v2616_v17  ;;  %5666 = vmatpush3.bf16.msra.mxu0 %v5979_v1  ;;  %v5212_v13 = vld [vmem:[#allocation26] ss:$0 sm:$0xff] }
0x10c9   :  { %v2610_v16 = vpop.xlane.xlu1 %2609  ;;  %5677 = vmatprep.subr.bf16.mxu0 %v6932_v9 }
0x10ca   :  { %v2618_v18 = vsub.f32 %v2597_v56, %v2614_v15  ;;  %v2615_v19 = vmul.f32 0.0625, %v2610_v16  ;;  %v2621_v27 = vmul.f32 %v2617_v20, %v2617_v20  ;;  %v2624_v28 = vsel %vm569_vm0, %v2620_v25, 0.0 }
0x10cb   :  { %5668 = vmatmul.mubr.msk.bf16.vlgmr.msra.gmra.mrb[56].mxu0 %vm569_vm0, %v7608_v12 }
0x10cc   :  { %v2619_v21 = vsub.f32 %v2598_v58, %v2615_v19  ;;  %v2622_v22 = vmul.f32 %v2618_v18, %v2618_v18  ;;  %v2627_v29 = vsel %vm569_vm0, %v2621_v27, 0.0  ;;  %5679 = vmatprep.mubr.msk.bf16.mxu0 %vm6933_vm1, %v6932_v9 }
0x10cd   :  { %v2662_v36 = vpop.permute.xlu1 %2661 }
0x10ce   :  { %v2630_v23 = vsel %vm569_vm0, %v2622_v22, 0.0  ;;  %v2623_v24 = vmul.f32 %v2619_v21, %v2619_v21 }
0x10cf   :  { %2631 = vadd.xlane.f32.xlu0 %v2630_v23 }
0x10d0   :  { %v2633_v26 = vsel %vm569_vm0, %v2623_v24, 0.0 }
0x10d1   :  { %2634 = vadd.xlane.f32.xlu1 %v2633_v26  ;;  %v2673_v7 = vpop.permute.xlu1 %2672 }
0x10d3   :  { %2625 = vadd.xlane.f32.xlu0 %v2624_v28 }
0x10d5   :  { %2628 = vadd.xlane.f32.xlu1 %v2627_v29  ;;  %v5216_v29 = vld [vmem:[#allocation29] ss:$0 sm:$0xff] }
0x10e6   :  { %2677 = vperm.xlu1 %5964, %v2669_v30  }
0x10e9   :  { %2656 = vperm.xlu0 %5963, %v2652_v31  }
0x115c   :  { %v2632_v37 = vpop.xlane.xlu0 %2631 }
0x115d   :  { %v2638_v38 = vmul.f32 0.0625, %v2632_v37 }
0x115e   :  { %v2635_v39 = vpop.xlane.xlu1 %2634 }
0x115f   :  { %v2642_v3 = vadd.f32 1e-06, %v2638_v38  ;;  %v2639_v8 = vmul.f32 0.0625, %v2635_v39 }
0x1160   :  { %v2626_v10 = vpop.xlane.xlu0 %2625 }
0x1161   :  { %v2643_v40 = vadd.f32 1e-06, %v2639_v8  ;;  %v2636_v41 = vmul.f32 0.0625, %v2626_v10  ;;  %6056 = vrsqrt.f32 %v2642_v3  ;;  %v5220_v3 = vld [vmem:[#allocation32] ss:$0 sm:$0xff] }
0x1162   :  { %v2629_v42 = vpop.xlane.xlu1 %2628 }
0x1163   :  { %6058 = vrsqrt.f32 %v2643_v40  ;;  %v2640_v59 = vadd.f32 1e-06, %v2636_v41  ;;  %v2637_v61 = vmul.f32 0.0625, %v2629_v42 }
0x1165   :  { %6060 = vrsqrt.f32 %v2640_v59  ;;  %v2641_v0 = vadd.f32 1e-06, %v2637_v61 }
0x1166   :  { %v2678_v56 = vpop.permute.xlu1 %2677 }
0x1167   :  { %6062 = vrsqrt.f32 %v2641_v0 }
0x1168   :  { %v2657_v50 = vpop.permute.xlu0 %2656 }
0x116b   :  { %v6057_v43 = vpop.eup %6056 }
0x116c   :  { %v2650_v47 = vmul.f32 %v6057_v43, %v2618_v18 }
0x116d   :  { %v6059_v44 = vpop.eup %6058 }
0x116e   :  { %v2651_v45 = vmul.f32 %v6059_v44, %v2619_v21  ;;  %v2666_v63 = vmul.f32 %v2657_v50, %v2650_v47  ;;  %v547_v47 = vld [vmem:[#allocation5 + $0xc] sm:$0xf] }
0x116f   :  { %v6061_v46 = vpop.eup %6060  ;;  %vm551_vm14 = vcmp.eq.bf16.partialorder %v547_v47, 0 }
0x1170   :  { %v2648_v48 = vmul.f32 %v6061_v46, %v2616_v17  ;;  %v2667_v52 = vmul.f32 %v2662_v36, %v2651_v45  ;;  %v7591_v60 = vadd.f32 %v2673_v7, %v2666_v63  ;;  %v546_v45 = vld [vmem:[#allocation5 + $0x8] sm:$0xf]  ;;  %v544_v46 = vld [vmem:[#allocation5] sm:$0xf] }
0x1171   :  { %v6063_v51 = vpop.eup %6062  ;;  %vm550_vm12 = vcmp.eq.bf16.partialorder %v546_v45, 0  ;;  %vm548_vm13 = vcmp.eq.bf16.partialorder %v544_v46, 0 }
0x1172   :  { %v2649_v53 = vmul.f32 %v6063_v51, %v2617_v20  ;;  %v2664_v54 = vmul.f32 %v2657_v50, %v2648_v48  ;;  %v7585_v57 = vadd.f32 %v2678_v56, %v2667_v52  ;;  %v2998_v48 = vsel %vm550_vm12, 65537, %v6934_v49  ;;  %v545_v50 = vld [vmem:[#allocation5 + $0x4] sm:$0xf] }
0x1173   :  { %v2996_v51 = vsel %vm548_vm13, 65537, %v6934_v49  ;;  %v2999_v52 = vsel %vm551_vm14, 65537, %v6934_v49  ;;  %vm549_vm15 = vcmp.eq.bf16.partialorder %v545_v50, 0 }
0x1174   :  { %v2665_v55 = vmul.f32 %v2662_v36, %v2649_v53  ;;  %v7589_v58 = vadd.f32 %v2673_v7, %v2664_v54  ;;  %v7599_v2 = vpack.c.bf16 %v7585_v57, %v7591_v60  ;;  %v3002_v53 = vunpack.c.l.b16 %v2998_v48 }
0x1175   :  { %v3000_v54 = vunpack.c.l.b16 %v2996_v51  ;;  %v3003_v63 = vunpack.c.l.b16 %v2999_v52 }
0x1176   :  { %v7587_v62 = vadd.f32 %v2678_v56, %v2665_v55  ;;  %v2997_v55 = vsel %vm549_vm15, 65537, %v6934_v49  ;;  %vm7633_vm3 = vcmp.ne.s32.totalorder %v3002_v53, 0 }
0x1177   :  { %vm7637_vm4 = vcmp.ne.s32.totalorder %v3000_v54, 0  ;;  %vm7641_vm5 = vcmp.ne.s32.totalorder %v3003_v63, 0 }
0x1178   :  { %v7595_v6 = vpack.c.bf16 %v7587_v62, %v7589_v58 }
0x117a   :  { %5655 = vmatprep.mubr.msk.bf16.mxu1 %vm569_vm0, %v7595_v6 }
0x117b   :  { %5656 = vmatmul.mubr.msk.bf16.vlgmr.msra.gmra.mrb[60].mxu1 %vm569_vm0, %v7599_v2 }
0x117c   :  { %5660 = vmatpush3.bf16.msra.mxu1 %v5978_v33  ;;  %5661 = vmatprep.mubr.msk.bf16.mxu1 %vm569_vm0, %v7581_v35 }
0x117d   :  { %5671 = vmatprep.subr.bf16.mxu1 %v6932_v9 }
0x1183   :  { %5662 = vmatmul.mubr.msk.bf16.vlgmr.msra.gmra.mrb[64].mxu1 %vm569_vm0, %v7608_v12 }
0x1184   :  { %5673 = vmatprep.mubr.msk.bf16.mxu1 %vm6933_vm1, %v6932_v9 }
0x119e   :  { %v5669_v8 = vpop.f32.mrb[56].mxu0 }
0x119f   :  { %v2890_v10 = vadd.f32 %v5669_v8, %v5220_v3  ;;  %v2881_v40 = vpop.f32.mrb[57].mxu0 }
0x11a0   :  { %v2882_v41 = vadd.f32 %v5220_v3, %v2881_v40  ;;  %v5670_v42 = vpop.f32.mrb[58].mxu0 }
0x11a1   :  { %v2893_v59 = vadd.f32 %v5670_v42, %v5220_v3  ;;  %v2884_v61 = vpop.f32.mrb[59].mxu0 }
0x11a2   :  { %v2885_v0 = vadd.f32 %v5220_v3, %v2884_v61 }
0x11a3   :  { %v2901_v43 = vpack.c.bf16 %v2893_v59, %v2890_v10 }
0x11a4   :  { %v2900_v44 = vpack.c.bf16 %v2885_v0, %v2882_v41  ;;  %v5980_v0 = vld [vmem:[#allocation28 + $0x8] sm:$0xff]  }
0x124e   :  { %v5657_v14 = vpop.f32.mrb[60].mxu1 }
0x124f   :  { %v2752_v15 = vadd.f32 %v5657_v14, %v5212_v13  ;;  %v2743_v16 = vpop.f32.mrb[61].mxu1 }
0x1250   :  { %v2744_v17 = vadd.f32 %v5212_v13, %v2743_v16  ;;  %v5658_v18 = vpop.f32.mrb[62].mxu1 }
0x1251   :  { %v2755_v19 = vadd.f32 %v5658_v18, %v5212_v13  ;;  %v2746_v20 = vpop.f32.mrb[63].mxu1  ;;  %v2760_v22 = vmul.f32 0.5, %v2752_v15 }
0x1252   :  { %v2747_v21 = vadd.f32 %v5212_v13, %v2746_v20  ;;  %v2758_v24 = vmul.f32 0.5, %v2744_v17  ;;  %v3001_v13 = vunpack.c.l.b16 %v2997_v55 }
0x1253   :  { %v2761_v23 = vmul.f32 0.5, %v2755_v19 }
0x1254   :  { %v2759_v25 = vmul.f32 0.5, %v2747_v21  ;;  %vm7652_vm6 = vcmp.ne.s32.totalorder %v3001_v13, 0 }
0x1255   :  { %v2897_v26 = vpack.c.bf16 %v2761_v23, %v2760_v22 }
0x1256   :  { %v2896_v27 = vpack.c.bf16 %v2759_v25, %v2758_v24  ;;  %v5663_v28 = vpop.f32.mrb[64].mxu1 }
0x1257   :  { %v2817_v30 = vpop.f32.mrb[65].mxu1  ;;  %v2826_v32 = vadd.f32 %v5663_v28, %v5216_v29 }
0x1258   :  { %v5664_v31 = vpop.f32.mrb[66].mxu1  ;;  %v2818_v5 = vadd.f32 %v5216_v29, %v2817_v30 }
0x1259   :  { %v2829_v33 = vadd.f32 %v5664_v31, %v5216_v29  ;;  %v2820_v34 = vpop.f32.mrb[67].mxu1 }
0x125a   :  { %v2821_v36 = vadd.f32 %v5216_v29, %v2820_v34 }
0x125b   :  { %v2899_v7 = vpack.c.bf16 %v2829_v33, %v2826_v32 }
0x125c   :  { %v2898_v37 = vpack.c.bf16 %v2821_v36, %v2818_v5 }
0x125d   :  { %v2953_v38 = vsel %vm763_vm2, %v2899_v7, 0 }
0x125e   :  { %5678 = vmatpush3.bf16.xpose.msra.mxu0 %v2953_v38  ;;  %v2906_v39 = vsel %vm763_vm2, %v2898_v37, 0 }
0x125f   :  { %5672 = vmatpush3.bf16.xpose.msra.mxu1 %v2906_v39  ;;  %5689 = vmatprep.subr.bf16.mxu0 %v6932_v9 }
0x1260   :  { %5683 = vmatprep.subr.bf16.mxu1 %v6932_v9 }
0x1265   :  { %5680 = vmatmul.mubr.msk.bf16.vlgmr.msra.gmra.mrb[60].mxu0 %vm763_vm2, %v2897_v26 }
0x1266   :  { %5674 = vmatmul.mubr.msk.bf16.vlgmr.msra.gmra.mrb[68].mxu1 %vm763_vm2, %v2896_v27  ;;  %5691 = vmatprep.mubr.msk.bf16.mxu0 %vm6933_vm1, %v6932_v9 }
0x1267   :  { %5685 = vmatprep.mubr.msk.bf16.mxu1 %vm6933_vm1, %v6932_v9  ;;  %5690 = vmatpush3.bf16.msra.mxu0 %v2901_v43  ;;  %v5981_v43 = vld [vmem:[#allocation25 + $0x8] sm:$0xff]  }
0x1268   :  { %5684 = vmatpush3.bf16.msra.mxu1 %v2900_v44  ;;  %5701 = vmatprep.subr.bf16.mxu0 %v5980_v0 }
0x1269   :  { %5695 = vmatprep.subr.bf16.mxu1 %v5981_v43 }
0x1338   :  { %v2989_v4 = vpop.f32.mrb[60].mxu0 }
0x1339   :  { %v3010_v14 = vsel %vm7633_vm3, 1e-09, %v2989_v4  ;;  %v2942_v15 = vpop.f32.mrb[68].mxu1  ;;  %v5681_v16 = vpop.f32.mrb[61].mxu0 }
0x133a   :  { %v5675_v49 = vpop.f32.mrb[69].mxu1  ;;  %v2992_v17 = vpop.f32.mrb[62].mxu0  ;;  %v3018_v18 = vsel %vm569_vm0, %v3010_v14, -inf  ;;  %v3008_v19 = vsel %vm7637_vm4, 1e-09, %v2942_v15 }
0x133b   :  { %v3011_v20 = vsel %vm7641_vm5, 1e-09, %v2992_v17  ;;  %3019 = vmax.xlane.f32.xlu1 %v3018_v18  ;;  %v2945_v21 = vpop.f32.mrb[70].mxu1  ;;  %v5682_v22 = vpop.f32.mrb[63].mxu0  ;;  %v3012_v26 = vsel %vm569_vm0, %v3008_v19, -inf }
0x133c   :  { %v5676_v24 = vpop.f32.mrb[71].mxu1  ;;  %v3021_v25 = vsel %vm569_vm0, %v3011_v20, -inf  ;;  %v3009_v27 = vsel %vm7652_vm6, 1e-09, %v2945_v21 }
0x133d   :  { %3022 = vmax.xlane.f32.xlu0 %v3021_v25  ;;  %v3015_v28 = vsel %vm569_vm0, %v3009_v27, -inf }
0x133f   :  { %3013 = vmax.xlane.f32.xlu1 %v3012_v26  ;;  %v5232_v26 = vld [vmem:[#allocation29 + $0x1] ss:$0 sm:$0xff] }
0x1343   :  { %3016 = vmax.xlane.f32.xlu1 %v3015_v28  ;;  %v5228_v28 = vld [vmem:[#allocation26 + $0x1] ss:$0 sm:$0xff] }
0x13c8   :  { %v3020_v29 = vpop.xlane.xlu1 %3019 }
0x13c9   :  { %v3026_v30 = vsub.f32 %v3010_v14, %v3020_v29  ;;  %v5982_v14 = vld [vmem:[#allocation31 + $0x8] sm:$0xff]  }
0x13ca   :  { %v3023_v31 = vpop.xlane.xlu0 %3022 }
0x13cb   :  { %v3032_v32 = vmul.f32 1.442695, %v3026_v30  ;;  %v3027_v33 = vsub.f32 %v3011_v20, %v3023_v31 }
0x13cc   :  { %v3014_v34 = vpop.xlane.xlu1 %3013 }
0x13cd   :  { %6064 = vpow2.f32 %v3032_v32  ;;  %v3034_v5 = vmul.f32 1.442695, %v3027_v33  ;;  %v3024_v36 = vsub.f32 %v3008_v19, %v3014_v34 }
0x13cf   :  { %6066 = vpow2.f32 %v3034_v5  ;;  %v3028_v7 = vmul.f32 1.442695, %v3024_v36 }
0x13d0   :  { %v3017_v37 = vpop.xlane.xlu1 %3016 }
0x13d1   :  { %6068 = vpow2.f32 %v3028_v7  ;;  %v3025_v38 = vsub.f32 %v3009_v27, %v3017_v37 }
0x13d3   :  { %v3030_v39 = vmul.f32 1.442695, %v3025_v38 }
0x13d5   :  { %6070 = vpow2.f32 %v3030_v39 }
0x13d7   :  { %v6065_v3 = vpop.eup %6064 }
0x13d8   :  { %v3042_v8 = vsel %vm569_vm0, %v6065_v3, 0.0 }
0x13d9   :  { %v6067_v10 = vpop.eup %6066  ;;  %3043 = vadd.xlane.f32.xlu1 %v3042_v8 }
0x13da   :  { %v3045_v42 = vsel %vm569_vm0, %v6067_v10, 0.0 }
0x13db   :  { %v6069_v40 = vpop.eup %6068 }
0x13dc   :  { %v3036_v41 = vsel %vm569_vm0, %v6069_v40, 0.0 }
0x13dd   :  { %3037 = vadd.xlane.f32.xlu0 %v3036_v41  ;;  %3046 = vadd.xlane.f32.xlu1 %v3045_v42 }
0x13df   :  { %v6071_v59 = vpop.eup %6070 }
0x13e0   :  { %v3039_v61 = vsel %vm569_vm0, %v6071_v59, 0.0 }
0x13e1   :  { %3040 = vadd.xlane.f32.xlu1 %v3039_v61 }
0x1466   :  { %v3044_v44 = vpop.xlane.xlu1 %3043 }
0x1467   :  { %6072 = vrcp.f32 %v3044_v44 }
0x146a   :  { %v3038_v45 = vpop.xlane.xlu0 %3037  ;;  %v3047_v46 = vpop.xlane.xlu1 %3046 }
0x146b   :  { %6074 = vrcp.f32 %v3047_v46  ;;  %v5236_v46 = vld [vmem:[#allocation32 + $0x1] ss:$0 sm:$0xff] }
0x146c   :  { %6076 = vrcp.f32 %v3038_v45 }
0x146e   :  { %v3041_v47 = vpop.xlane.xlu1 %3040 }
0x146f   :  { %6078 = vrcp.f32 %v3041_v47 }
0x1471   :  { %v6073_v48 = vpop.eup %6072 }
0x1472   :  { %v3054_v52 = vmul.f32 %v6073_v48, %v6065_v3 }
0x1475   :  { %v6075_v50 = vpop.eup %6074 }
0x1476   :  { %v6077_v51 = vpop.eup %6076  ;;  %v3055_v53 = vmul.f32 %v6075_v50, %v6067_v10 }
0x1477   :  { %v3052_v55 = vmul.f32 %v6077_v51, %v6069_v40 }
0x1478   :  { %v3057_v63 = vpack.c.bf16 %v3055_v53, %v3054_v52 }
0x1479   :  { %v6079_v54 = vpop.eup %6078 }
0x147a   :  { %v3053_v4 = vmul.f32 %v6079_v54, %v6071_v59  ;;  %5692 = vmatmul.mubr.msk.bf16.vlgmr.msra.gmra.mrb[64].mxu0 %vm569_vm0, %v3057_v63 }
0x147b   :  { %5702 = vmatpush3.bf16.msra.mxu0 %v5980_v0  ;;  %5703 = vmatprep.mubr.msk.bf16.mxu0 %vm569_vm0, %v7581_v35 }
0x147c   :  { %v3056_v13 = vpack.c.bf16 %v3053_v4, %v3052_v55  ;;  %5713 = vmatprep.subr.bf16.mxu0 %v6932_v9 }
0x147e   :  { %5686 = vmatmul.mubr.msk.bf16.vlgmr.msra.gmra.mrb[72].mxu1 %vm569_vm0, %v3056_v13 }
0x147f   :  { %5697 = vmatprep.mubr.msk.bf16.mxu1 %vm569_vm0, %v7595_v6  ;;  %5696 = vmatpush3.bf16.msra.mxu1 %v5981_v43 }
0x1480   :  { %5707 = vmatprep.subr.bf16.mxu1 %v5982_v14 }
0x1482   :  { %5704 = vmatmul.mubr.msk.bf16.vlgmr.msra.gmra.mrb[68].mxu0 %vm569_vm0, %v7608_v12 }
0x1483   :  { %5715 = vmatprep.mubr.msk.bf16.mxu0 %vm6933_vm1, %v6932_v9 }
0x1486   :  { %5698 = vmatmul.mubr.msk.bf16.vlgmr.msra.gmra.mrb[76].mxu1 %vm569_vm0, %v7599_v2 }
0x1487   :  { %5709 = vmatprep.mubr.msk.bf16.mxu1 %vm569_vm0, %v7581_v35  ;;  %5708 = vmatpush3.bf16.msra.mxu1 %v5982_v14 }
0x1488   :  { %5719 = vmatprep.subr.bf16.mxu1 %v6932_v9 }
0x148e   :  { %5710 = vmatmul.mubr.msk.bf16.vlgmr.msra.gmra.mrb[80].mxu1 %vm569_vm0, %v7608_v12 }
0x148f   :  { %5721 = vmatprep.mubr.msk.bf16.mxu1 %vm6933_vm1, %v6932_v9 }
0x154d   :  { %v7685_v15 = vpop.f32.mrb[64].mxu0 }
0x154e   :  { %v5693_v16 = vpop.f32.mrb[65].mxu0 }
0x154f   :  { %v7687_v49 = vpop.f32.mrb[66].mxu0 }
0x1550   :  { %v3147_v17 = vpack.c.bf16 %v7687_v49, %v7685_v15  ;;  %v5694_v18 = vpop.f32.mrb[67].mxu0  ;;  %v5256_v15 = vld [vmem:[#allocation32 + $0x2] ss:$0 sm:$0xff] }
0x1551   :  { %v7691_v19 = vpop.f32.mrb[72].mxu1 }
0x1552   :  { %v5687_v20 = vpop.f32.mrb[73].mxu1 }
0x1553   :  { %v7693_v21 = vpop.f32.mrb[74].mxu1 }
0x1554   :  { %v3146_v22 = vpack.c.bf16 %v7693_v21, %v7691_v19  ;;  %v5688_v24 = vpop.f32.mrb[75].mxu1 }
0x1555   :  { %v5705_v25 = vpop.f32.mrb[68].mxu0 }
0x1556   :  { %v3270_v27 = vpop.f32.mrb[69].mxu0  ;;  %v3279_v30 = vadd.f32 %v5705_v25, %v5232_v26 }
0x1557   :  { %v5706_v29 = vpop.f32.mrb[70].mxu0  ;;  %v3271_v34 = vadd.f32 %v5232_v26, %v3270_v27 }
0x1558   :  { %v3282_v31 = vadd.f32 %v5706_v29, %v5232_v26  ;;  %v3273_v32 = vpop.f32.mrb[71].mxu0 }
0x1559   :  { %v5699_v33 = vpop.f32.mrb[76].mxu1  ;;  %v3274_v5 = vadd.f32 %v5232_v26, %v3273_v32 }
0x155a   :  { %v3209_v36 = vadd.f32 %v5699_v33, %v5228_v28  ;;  %v3200_v7 = vpop.f32.mrb[77].mxu1  ;;  %v3354_v37 = vpack.c.bf16 %v3282_v31, %v3279_v30 }
0x155b   :  { %v3201_v38 = vadd.f32 %v5228_v28, %v3200_v7  ;;  %v5700_v39 = vpop.f32.mrb[78].mxu1  ;;  %v3353_v3 = vpack.c.bf16 %v3274_v5, %v3271_v34 }
0x155c   :  { %v3212_v8 = vadd.f32 %v5700_v39, %v5228_v28  ;;  %v3203_v10 = vpop.f32.mrb[79].mxu1  ;;  %v3408_v41 = vsel %vm763_vm2, %v3354_v37, 0  ;;  %v3217_v42 = vmul.f32 0.5, %v3209_v36 }
0x155d   :  { %v3204_v40 = vadd.f32 %v5228_v28, %v3203_v10  ;;  %5720 = vmatpush3.bf16.xpose.msra.mxu1 %v3408_v41  ;;  %v3361_v61 = vsel %vm763_vm2, %v3353_v3, 0  ;;  %v3215_v0 = vmul.f32 0.5, %v3201_v38 }
0x155e   :  { %v3218_v59 = vmul.f32 0.5, %v3212_v8  ;;  %5714 = vmatpush3.bf16.xpose.msra.mxu0 %v3361_v61  ;;  %5731 = vmatprep.subr.bf16.mxu1 %v6932_v9 }
0x155f   :  { %v3216_v43 = vmul.f32 0.5, %v3204_v40  ;;  %5725 = vmatprep.subr.bf16.mxu0 %v6932_v9 }
0x1560   :  { %v3352_v44 = vpack.c.bf16 %v3218_v59, %v3217_v42 }
0x1561   :  { %v3351_v45 = vpack.c.bf16 %v3216_v43, %v3215_v0  ;;  %v5711_v47 = vpop.f32.mrb[80].mxu1 }
0x1562   :  { %v3345_v48 = vadd.f32 %v5711_v47, %v5236_v46  ;;  %v3336_v50 = vpop.f32.mrb[81].mxu1 }
0x1563   :  { %v3337_v51 = vadd.f32 %v5236_v46, %v3336_v50  ;;  %v5712_v52 = vpop.f32.mrb[82].mxu1 }
0x1564   :  { %5722 = vmatmul.mubr.msk.bf16.vlgmr.msra.gmra.mrb[84].mxu1 %vm763_vm2, %v3352_v44  ;;  %v3348_v53 = vadd.f32 %v5712_v52, %v5236_v46  ;;  %v3339_v54 = vpop.f32.mrb[83].mxu1 }
0x1565   :  { %5716 = vmatmul.mubr.msk.bf16.vlgmr.msra.gmra.mrb[72].mxu0 %vm763_vm2, %v3351_v45  ;;  %5733 = vmatprep.mubr.msk.bf16.mxu1 %vm6933_vm1, %v6932_v9  ;;  %v3340_v63 = vadd.f32 %v5236_v46, %v3339_v54 }
0x1566   :  { %5727 = vmatprep.mubr.msk.bf16.mxu0 %vm6933_vm1, %v6932_v9  ;;  %v3356_v55 = vpack.c.bf16 %v3348_v53, %v3345_v48  ;;  %v5983_v48 = vld [vmem:[#allocation25 + $0x10] sm:$0xff]  }
0x1567   :  { %v3355_v4 = vpack.c.bf16 %v3340_v63, %v3337_v51 }
0x1568   :  { %5732 = vmatpush3.bf16.msra.mxu1 %v3356_v55 }
0x1569   :  { %5726 = vmatpush3.bf16.msra.mxu0 %v3355_v4  ;;  %5749 = vmatprep.subr.bf16.mxu1 %v5983_v48 }
0x1637   :  { %v3444_v13 = vpop.f32.mrb[84].mxu1 }
0x1638   :  { %v3453_v14 = vsel %vm7633_vm3, 1e-09, %v3444_v13  ;;  %v3397_v16 = vpop.f32.mrb[72].mxu0  ;;  %v5723_v18 = vpop.f32.mrb[85].mxu1 }
0x1639   :  { %v5717_v20 = vpop.f32.mrb[73].mxu0  ;;  %v3447_v24 = vpop.f32.mrb[86].mxu1  ;;  %v3461_v25 = vsel %vm569_vm0, %v3453_v14, -inf  ;;  %v3451_v26 = vsel %vm7637_vm4, 1e-09, %v3397_v16  ;;  %v5984_v16 = vld [vmem:[#allocation28 + $0x10] sm:$0xff]  }
0x163a   :  { %v3454_v27 = vsel %vm7641_vm5, 1e-09, %v3447_v24  ;;  %3462 = vmax.xlane.f32.xlu0 %v3461_v25  ;;  %v3400_v28 = vpop.f32.mrb[74].mxu0  ;;  %v5724_v29 = vpop.f32.mrb[87].mxu1  ;;  %v3455_v33 = vsel %vm569_vm0, %v3451_v26, -inf }
0x163b   :  { %v5718_v30 = vpop.f32.mrb[75].mxu0  ;;  %v3464_v31 = vsel %vm569_vm0, %v3454_v27, -inf  ;;  %v3452_v32 = vsel %vm7652_vm6, 1e-09, %v3400_v28  ;;  %v3148_v28 = vld [vmem:[#allocation34] sm:$0x3] }
0x163c   :  { %3465 = vmax.xlane.f32.xlu1 %v3464_v31  ;;  %v3458_v34 = vsel %vm569_vm0, %v3452_v32, -inf }
0x163e   :  { %3456 = vmax.xlane.f32.xlu0 %v3455_v33 }
0x1640   :  { %3459 = vmax.xlane.f32.xlu1 %v3458_v34 }
0x16c7   :  { %v3463_v5 = vpop.xlane.xlu0 %3462 }
0x16c8   :  { %v3469_v36 = vsub.f32 %v3453_v14, %v3463_v5 }
0x16c9   :  { %v3466_v7 = vpop.xlane.xlu1 %3465 }
0x16ca   :  { %v3475_v37 = vmul.f32 1.442695, %v3469_v36  ;;  %v3470_v38 = vsub.f32 %v3454_v27, %v3466_v7  ;;  %v5248_v7 = vld [vmem:[#allocation26 + $0x2] ss:$0 sm:$0xff] }
0x16cb   :  { %v3457_v39 = vpop.xlane.xlu0 %3456 }
0x16cc   :  { %6080 = vpow2.f32 %v3475_v37  ;;  %v3477_v3 = vmul.f32 1.442695, %v3470_v38  ;;  %v3467_v8 = vsub.f32 %v3451_v26, %v3457_v39  ;;  %v3592_v26 = vld [vmem:[#allocation34 + $0x2] sm:$0x3] }
0x16cd   :  { %v3460_v10 = vpop.xlane.xlu1 %3459  ;;  %5887 = vmatprep.subr.msk.bf16.mxu0 %vm1461_vm11, %v3592_v26  ;;  %v3600_v27 = vsel %vm1461_vm11, %v3592_v26, 0 }
0x16ce   :  { %6082 = vpow2.f32 %v3477_v3  ;;  %v3471_v40 = vmul.f32 1.442695, %v3467_v8  ;;  %v3468_v41 = vsub.f32 %v3452_v32, %v3460_v10  ;;  %v3658_v3 = vsel %vm1461_vm11, %v3148_v28, 0  ;;  %v5985_v8 = vld [vmem:[#allocation31 + $0x10] sm:$0xff]  }
0x16d0   :  { %6084 = vpow2.f32 %v3471_v40  ;;  %v3473_v42 = vmul.f32 1.442695, %v3468_v41 }
0x16d2   :  { %6086 = vpow2.f32 %v3473_v42 }
0x16d6   :  { %v6081_v59 = vpop.eup %6080 }
0x16d7   :  { %v3485_v61 = vsel %vm569_vm0, %v6081_v59, 0.0 }
0x16d8   :  { %v6083_v0 = vpop.eup %6082  ;;  %3486 = vadd.xlane.f32.xlu0 %v3485_v61 }
0x16d9   :  { %v3488_v43 = vsel %vm569_vm0, %v6083_v0, 0.0 }
0x16da   :  { %v6085_v44 = vpop.eup %6084  ;;  %3489 = vadd.xlane.f32.xlu1 %v3488_v43 }
0x16db   :  { %v3479_v45 = vsel %vm569_vm0, %v6085_v44, 0.0 }
0x16dc   :  { %v6087_v46 = vpop.eup %6086  ;;  %3480 = vadd.xlane.f32.xlu0 %v3479_v45 }
0x16dd   :  { %v3482_v47 = vsel %vm569_vm0, %v6087_v46, 0.0 }
0x16de   :  { %3483 = vadd.xlane.f32.xlu1 %v3482_v47 }
0x1765   :  { %v3487_v50 = vpop.xlane.xlu0 %3486 }
0x1766   :  { %6088 = vrcp.f32 %v3487_v50 }
0x1767   :  { %v3490_v51 = vpop.xlane.xlu1 %3489 }
0x1768   :  { %6090 = vrcp.f32 %v3490_v51  ;;  %v5252_v51 = vld [vmem:[#allocation29 + $0x2] ss:$0 sm:$0xff] }
0x1769   :  { %v3481_v52 = vpop.xlane.xlu0 %3480 }
0x176a   :  { %6092 = vrcp.f32 %v3481_v52 }
0x176b   :  { %v3484_v53 = vpop.xlane.xlu1 %3483 }
0x176c   :  { %6094 = vrcp.f32 %v3484_v53 }
0x1770   :  { %v6089_v54 = vpop.eup %6088 }
0x1771   :  { %v3497_v55 = vmul.f32 %v6089_v54, %v6081_v59 }
0x1772   :  { %v6091_v63 = vpop.eup %6090 }
0x1773   :  { %v3498_v4 = vmul.f32 %v6091_v63, %v6083_v0 }
0x1774   :  { %v6093_v13 = vpop.eup %6092 }
0x1775   :  { %v3500_v14 = vpack.c.bf16 %v3498_v4, %v3497_v55  ;;  %v3495_v20 = vmul.f32 %v6093_v13, %v6085_v44 }
0x1776   :  { %v6095_v18 = vpop.eup %6094 }
0x1777   :  { %v3496_v24 = vmul.f32 %v6095_v18, %v6087_v46  ;;  %5734 = vmatmul.mubr.msk.bf16.vlgmr.msra.gmra.mrb[88].mxu1 %vm569_vm0, %v3500_v14 }
0x1778   :  { %5750 = vmatpush3.bf16.msra.mxu1 %v5983_v48  ;;  %5751 = vmatprep.mubr.msk.bf16.mxu1 %vm569_vm0, %v7595_v6 }
0x1779   :  { %v3499_v25 = vpack.c.bf16 %v3496_v24, %v3495_v20  ;;  %5755 = vmatprep.subr.bf16.mxu1 %v5984_v16 }
0x177b   :  { %5728 = vmatmul.mubr.msk.bf16.vlgmr.msra.gmra.mrb[76].mxu0 %vm569_vm0, %v3499_v25 }
0x177c   :  { %5738 = vmatpush3.bf16.msra.mxu0 %v3600_v27 }
0x177d   :  { %5888 = vmatprep.subr.msk.bf16.mxu0 %vm1461_vm11, %v3148_v28 }
0x177f   :  { %5752 = vmatmul.mubr.msk.bf16.vlgmr.msra.gmra.mrb[92].mxu1 %vm569_vm0, %v7599_v2 }
0x1780   :  { %5756 = vmatpush3.bf16.msra.mxu1 %v5984_v16  ;;  %5757 = vmatprep.mubr.msk.bf16.mxu1 %vm569_vm0, %v7581_v35 }
0x1781   :  { %5767 = vmatprep.subr.bf16.mxu1 %v6932_v9 }
0x1787   :  { %5758 = vmatmul.mubr.msk.bf16.vlgmr.msra.gmra.mrb[96].mxu1 %vm569_vm0, %v7608_v12 }
0x1788   :  { %5769 = vmatprep.mubr.msk.bf16.mxu1 %vm6933_vm1, %v6932_v9 }
0x184a   :  { %v3582_v29 = vpop.f32.mrb[88].mxu1 }
0x184b   :  { %v5735_v30 = vpop.f32.mrb[89].mxu1 }
0x184c   :  { %v3585_v31 = vpop.f32.mrb[90].mxu1 }
0x184d   :  { %v3590_v32 = vpack.c.bf16 %v3585_v31, %v3582_v29  ;;  %v5736_v33 = vpop.f32.mrb[91].mxu1 }
0x184e   :  { %v3538_v34 = vpop.f32.mrb[76].mxu0 }
0x184f   :  { %v5729_v5 = vpop.f32.mrb[77].mxu0 }
0x1850   :  { %v3541_v36 = vpop.f32.mrb[78].mxu0 }
0x1851   :  { %v3589_v37 = vpack.c.bf16 %v3541_v36, %v3538_v34  ;;  %v5730_v38 = vpop.f32.mrb[79].mxu0 }
0x1852   :  { %v5753_v39 = vpop.f32.mrb[92].mxu1 }
0x1853   :  { %v3769_v10 = vadd.f32 %v5753_v39, %v5248_v7  ;;  %5739 = vmatprep.mubr.msk.bf16.mxu0 %vm763_vm2, %v3589_v37  ;;  %v3760_v40 = vpop.f32.mrb[93].mxu1 }
0x1854   :  { %v3761_v41 = vadd.f32 %v5248_v7, %v3760_v40  ;;  %5740 = vmatmul.mubr.msk.bf16.vlgmr.msra.gmra.mrb[80].mxu0 %vm763_vm2, %v3590_v32  ;;  %v5754_v42 = vpop.f32.mrb[94].mxu1 }
0x1855   :  { %v3772_v59 = vadd.f32 %v5754_v42, %v5248_v7  ;;  %5745 = vmatprep.mubr.msk.bf16.mxu0 %vm763_vm2, %v3146_v22  ;;  %v3763_v61 = vpop.f32.mrb[95].mxu1  ;;  %5744 = vmatpush3.bf16.msra.mxu0 %v3658_v3  ;;  %v3777_v43 = vmul.f32 0.5, %v3769_v10 }
0x1856   :  { %v3764_v0 = vadd.f32 %v5248_v7, %v3763_v61  ;;  %5761 = vmatprep.subr.bf16.mxu0 %v5985_v8  ;;  %v3775_v45 = vmul.f32 0.5, %v3761_v41 }
0x1857   :  { %v3778_v44 = vmul.f32 0.5, %v3772_v59 }
0x1858   :  { %v3776_v46 = vmul.f32 0.5, %v3764_v0 }
0x1859   :  { %v3912_v47 = vpack.c.bf16 %v3778_v44, %v3777_v43 }
0x185a   :  { %v3911_v48 = vpack.c.bf16 %v3776_v46, %v3775_v45  ;;  %v5759_v50 = vpop.f32.mrb[96].mxu1 }
0x185b   :  { %v3830_v52 = vpop.f32.mrb[97].mxu1  ;;  %v3839_v54 = vadd.f32 %v5759_v50, %v5252_v51 }
0x185c   :  { %v5760_v53 = vpop.f32.mrb[98].mxu1  ;;  %v3831_v19 = vadd.f32 %v5252_v51, %v3830_v52 }
0x185d   :  { %v3842_v63 = vadd.f32 %v5760_v53, %v5252_v51  ;;  %v3833_v55 = vpop.f32.mrb[99].mxu1 }
0x185e   :  { %v3834_v21 = vadd.f32 %v5252_v51, %v3833_v55 }
0x185f   :  { %v3914_v22 = vpack.c.bf16 %v3842_v63, %v3839_v54 }
0x1860   :  { %v3913_v4 = vpack.c.bf16 %v3834_v21, %v3831_v19  ;;  %5746 = vmatmul.mubr.msk.bf16.vlgmr.msra.gmra.mrb[80].mxu0 %vm763_vm2, %v3147_v17 }
0x1861   :  { %5762 = vmatpush3.bf16.msra.mxu0 %v5985_v8  ;;  %5763 = vmatprep.mubr.msk.bf16.mxu0 %vm569_vm0, %v7581_v35  ;;  %v3968_v14 = vsel %vm763_vm2, %v3914_v22, 0  ;;  %v5986_v22 = vld [vmem:[#allocation25 + $0x18] sm:$0xff]  }
0x1862   :  { %v3921_v13 = vsel %vm763_vm2, %v3913_v4, 0  ;;  %5773 = vmatprep.subr.bf16.mxu0 %v6932_v9 }
0x1863   :  { %5768 = vmatpush3.bf16.xpose.msra.mxu1 %v3921_v13 }
0x1864   :  { %5779 = vmatprep.subr.bf16.mxu1 %v6932_v9 }
0x1868   :  { %5764 = vmatmul.mubr.msk.bf16.vlgmr.msra.gmra.mrb[84].mxu0 %vm569_vm0, %v7608_v12 }
0x1869   :  { %5775 = vmatprep.mubr.msk.bf16.mxu0 %vm6933_vm1, %v6932_v9 }
0x186a   :  { %5774 = vmatpush3.bf16.xpose.msra.mxu0 %v3968_v14  ;;  %5770 = vmatmul.mubr.msk.bf16.vlgmr.msra.gmra.mrb[100].mxu1 %vm763_vm2, %v3911_v48 }
0x186b   :  { %5785 = vmatprep.subr.bf16.mxu0 %v6932_v9  ;;  %5781 = vmatprep.mubr.msk.bf16.mxu1 %vm6933_vm1, %v6932_v9 }
0x1871   :  { %5776 = vmatmul.mubr.msk.bf16.vlgmr.msra.gmra.mrb[88].mxu0 %vm763_vm2, %v3912_v47 }
0x1872   :  { %5787 = vmatprep.mubr.msk.bf16.mxu0 %vm6933_vm1, %v6932_v9 }
0x193b   :  { %v5765_v49 = vpop.f32.mrb[84].mxu0 }
0x193c   :  { %v3905_v17 = vadd.f32 %v5765_v49, %v5256_v15  ;;  %v3896_v16 = vpop.f32.mrb[85].mxu0 }
0x193d   :  { %v3957_v18 = vpop.f32.mrb[100].mxu1  ;;  %v3897_v20 = vadd.f32 %v5256_v15, %v3896_v16  ;;  %v5766_v24 = vpop.f32.mrb[86].mxu0 }
0x193e   :  { %v4011_v25 = vsel %vm7637_vm4, 1e-09, %v3957_v18  ;;  %v5771_v26 = vpop.f32.mrb[101].mxu1  ;;  %v3908_v27 = vadd.f32 %v5766_v24, %v5256_v15  ;;  %v3899_v28 = vpop.f32.mrb[87].mxu0  ;;  %v5987_v24 = vld [vmem:[#allocation28 + $0x18] sm:$0xff]  }
0x193f   :  { %v3960_v29 = vpop.f32.mrb[102].mxu1  ;;  %v4015_v30 = vsel %vm569_vm0, %v4011_v25, -inf  ;;  %v3900_v31 = vadd.f32 %v5256_v15, %v3899_v28 }
0x1940   :  { %v4012_v32 = vsel %vm7652_vm6, 1e-09, %v3960_v29  ;;  %4016 = vmax.xlane.f32.xlu0 %v4015_v30  ;;  %v5772_v33 = vpop.f32.mrb[103].mxu1  ;;  %v3916_v34 = vpack.c.bf16 %v3908_v27, %v3905_v17 }
0x1941   :  { %v4018_v5 = vsel %vm569_vm0, %v4012_v32, -inf  ;;  %v3915_v36 = vpack.c.bf16 %v3900_v31, %v3897_v20  ;;  %v5988_v31 = vld [vmem:[#allocation31 + $0x18] sm:$0xff]  }
0x1942   :  { %4019 = vmax.xlane.f32.xlu1 %v4018_v5  ;;  %5786 = vmatpush3.bf16.msra.mxu0 %v3916_v34 }
0x1943   :  { %5780 = vmatpush3.bf16.msra.mxu1 %v3915_v36  ;;  %v5266_v36 = vld [vmem:[#allocation26 + $0x3] ss:$0 sm:$0xff] }
0x1944   :  { %v4004_v7 = vpop.f32.mrb[88].mxu0  ;;  %5797 = vmatprep.subr.bf16.mxu1 %v5986_v22 }
0x1945   :  { %v4013_v37 = vsel %vm7633_vm3, 1e-09, %v4004_v7  ;;  %v5777_v38 = vpop.f32.mrb[89].mxu0 }
0x1946   :  { %v4007_v39 = vpop.f32.mrb[90].mxu0  ;;  %v4021_v3 = vsel %vm569_vm0, %v4013_v37, -inf }
0x1947   :  { %v4014_v8 = vsel %vm7641_vm5, 1e-09, %v4007_v39  ;;  %4022 = vmax.xlane.f32.xlu0 %v4021_v3  ;;  %v5778_v10 = vpop.f32.mrb[91].mxu0 }
0x1948   :  { %v4024_v40 = vsel %vm569_vm0, %v4014_v8, -inf }
0x1949   :  { %4025 = vmax.xlane.f32.xlu1 %v4024_v40 }
0x19cd   :  { %v4017_v41 = vpop.xlane.xlu0 %4016 }
0x19ce   :  { %v4027_v42 = vsub.f32 %v4011_v25, %v4017_v41 }
0x19cf   :  { %v4020_v59 = vpop.xlane.xlu1 %4019 }
0x19d0   :  { %v4031_v61 = vmul.f32 1.442695, %v4027_v42  ;;  %v4028_v0 = vsub.f32 %v4012_v32, %v4020_v59 }
0x19d2   :  { %6096 = vpow2.f32 %v4031_v61  ;;  %v4033_v43 = vmul.f32 1.442695, %v4028_v0 }
0x19d4   :  { %6098 = vpow2.f32 %v4033_v43  ;;  %v4023_v44 = vpop.xlane.xlu0 %4022 }
0x19d5   :  { %v4029_v45 = vsub.f32 %v4013_v37, %v4023_v44 }
0x19d6   :  { %v4026_v46 = vpop.xlane.xlu1 %4025 }
0x19d7   :  { %v4035_v47 = vmul.f32 1.442695, %v4029_v45  ;;  %v4030_v48 = vsub.f32 %v4014_v8, %v4026_v46 }
0x19d9   :  { %6100 = vpow2.f32 %v4035_v47  ;;  %v4037_v50 = vmul.f32 1.442695, %v4030_v48 }
0x19db   :  { %6102 = vpow2.f32 %v4037_v50 }
0x19dc   :  { %v6097_v51 = vpop.eup %6096 }
0x19dd   :  { %v4039_v52 = vsel %vm569_vm0, %v6097_v51, 0.0 }
0x19de   :  { %v6099_v53 = vpop.eup %6098  ;;  %4040 = vadd.xlane.f32.xlu0 %v4039_v52 }
0x19df   :  { %v4042_v54 = vsel %vm569_vm0, %v6099_v53, 0.0 }
0x19e0   :  { %4043 = vadd.xlane.f32.xlu1 %v4042_v54 }
0x19e3   :  { %v6101_v63 = vpop.eup %6100 }
0x19e4   :  { %v4045_v55 = vsel %vm569_vm0, %v6101_v63, 0.0 }
0x19e5   :  { %v6103_v19 = vpop.eup %6102  ;;  %4046 = vadd.xlane.f32.xlu0 %v4045_v55 }
0x19e6   :  { %v4048_v21 = vsel %vm569_vm0, %v6103_v19, 0.0 }
0x19e7   :  { %4049 = vadd.xlane.f32.xlu1 %v4048_v21 }
0x1a6b   :  { %v4041_v4 = vpop.xlane.xlu0 %4040 }
0x1a6c   :  { %6104 = vrcp.f32 %v4041_v4 }
0x1a6d   :  { %v4044_v13 = vpop.xlane.xlu1 %4043 }
0x1a6e   :  { %6106 = vrcp.f32 %v4044_v13 }
0x1a72   :  { %v4047_v14 = vpop.xlane.xlu0 %4046 }
0x1a73   :  { %6108 = vrcp.f32 %v4047_v14 }
0x1a74   :  { %v4050_v15 = vpop.xlane.xlu1 %4049 }
0x1a75   :  { %6110 = vrcp.f32 %v4050_v15 }
0x1a76   :  { %v6105_v49 = vpop.eup %6104 }
0x1a77   :  { %v4055_v16 = vmul.f32 %v6105_v49, %v6097_v51  ;;  %v5270_v51 = vld [vmem:[#allocation29 + $0x3] ss:$0 sm:$0xff] }
0x1a78   :  { %v6107_v17 = vpop.eup %6106 }
0x1a79   :  { %v4056_v18 = vmul.f32 %v6107_v17, %v6099_v53 }
0x1a7b   :  { %v4059_v20 = vpack.c.bf16 %v4056_v18, %v4055_v16 }
0x1a7d   :  { %v6109_v25 = vpop.eup %6108  ;;  %5782 = vmatmul.mubr.msk.bf16.vlgmr.msra.gmra.mrb[104].mxu1 %vm569_vm0, %v4059_v20 }
0x1a7e   :  { %5798 = vmatpush3.bf16.msra.mxu1 %v5986_v22  ;;  %5799 = vmatprep.mubr.msk.bf16.mxu1 %vm569_vm0, %v7595_v6  ;;  %v4057_v27 = vmul.f32 %v6109_v25, %v6101_v63  ;;  %v4152_v6 = vld [vmem:[#allocation34 + $0x4] sm:$0x3] }
0x1a7f   :  { %v6111_v26 = vpop.eup %6110  ;;  %5803 = vmatprep.subr.bf16.mxu1 %v5987_v24  ;;  %5889 = vmatprep.subr.msk.bf16.mxu0 %vm1461_vm11, %v4152_v6  ;;  %v4160_v30 = vsel %vm1461_vm11, %v4152_v6, 0 }
0x1a80   :  { %v4058_v28 = vmul.f32 %v6111_v26, %v6103_v19 }
0x1a82   :  { %v4060_v29 = vpack.c.bf16 %v4058_v28, %v4057_v27 }
0x1a84   :  { %5788 = vmatmul.mubr.msk.bf16.vlgmr.msra.gmra.mrb[92].mxu0 %vm569_vm0, %v4060_v29 }
0x1a85   :  { %5800 = vmatmul.mubr.msk.bf16.vlgmr.msra.gmra.mrb[108].mxu1 %vm569_vm0, %v7599_v2  ;;  %5792 = vmatpush3.bf16.msra.mxu0 %v4160_v30 }
0x1a86   :  { %5804 = vmatpush3.bf16.msra.mxu1 %v5987_v24  ;;  %5805 = vmatprep.mubr.msk.bf16.mxu1 %vm569_vm0, %v7581_v35 }
0x1a87   :  { %5815 = vmatprep.subr.bf16.mxu1 %v6932_v9  ;;  %5809 = vmatprep.subr.bf16.mxu0 %v5988_v31 }
0x1a8d   :  { %5806 = vmatmul.mubr.msk.bf16.vlgmr.msra.gmra.mrb[112].mxu1 %vm569_vm0, %v7608_v12 }
0x1a8e   :  { %5817 = vmatprep.mubr.msk.bf16.mxu1 %vm6933_vm1, %v6932_v9 }
0x1b50   :  { %v4098_v2 = vpop.f32.mrb[104].mxu1 }
0x1b51   :  { %v5783_v32 = vpop.f32.mrb[105].mxu1 }
0x1b52   :  { %v4101_v33 = vpop.f32.mrb[106].mxu1 }
0x1b53   :  { %v4149_v34 = vpack.c.bf16 %v4101_v33, %v4098_v2  ;;  %v5784_v5 = vpop.f32.mrb[107].mxu1 }
0x1b55   :  { %5793 = vmatprep.mubr.msk.bf16.mxu0 %vm763_vm2, %v4149_v34 }
0x1b57   :  { %v4142_v7 = vpop.f32.mrb[92].mxu0 }
0x1b58   :  { %v5789_v37 = vpop.f32.mrb[93].mxu0  ;;  %v5801_v38 = vpop.f32.mrb[108].mxu1 }
0x1b59   :  { %v4145_v39 = vpop.f32.mrb[94].mxu0  ;;  %v4275_v3 = vadd.f32 %v5801_v38, %v5266_v36  ;;  %v4266_v8 = vpop.f32.mrb[109].mxu1 }
0x1b5a   :  { %v4150_v10 = vpack.c.bf16 %v4145_v39, %v4142_v7  ;;  %v5790_v40 = vpop.f32.mrb[95].mxu0  ;;  %v4267_v41 = vadd.f32 %v5266_v36, %v4266_v8  ;;  %v5802_v42 = vpop.f32.mrb[110].mxu1 }
0x1b5b   :  { %v4278_v59 = vadd.f32 %v5802_v42, %v5266_v36  ;;  %v4269_v61 = vpop.f32.mrb[111].mxu1  ;;  %v4283_v43 = vmul.f32 0.5, %v4275_v3 }
0x1b5c   :  { %5794 = vmatmul.mubr.msk.bf16.vlgmr.msra.gmra.mrb[80].mxu0 %vm763_vm2, %v4150_v10  ;;  %v4270_v0 = vadd.f32 %v5266_v36, %v4269_v61  ;;  %v4281_v45 = vmul.f32 0.5, %v4267_v41 }
0x1b5d   :  { %v4284_v44 = vmul.f32 0.5, %v4278_v59  ;;  %5810 = vmatpush3.bf16.msra.mxu0 %v5988_v31  ;;  %5811 = vmatprep.mubr.msk.bf16.mxu0 %vm569_vm0, %v7581_v35 }
0x1b5e   :  { %v4282_v46 = vmul.f32 0.5, %v4270_v0  ;;  %5821 = vmatprep.subr.bf16.mxu0 %v6932_v9 }
0x1b5f   :  { %v4418_v47 = vpack.c.bf16 %v4284_v44, %v4283_v43 }
0x1b60   :  { %v4417_v48 = vpack.c.bf16 %v4282_v46, %v4281_v45  ;;  %v5807_v50 = vpop.f32.mrb[112].mxu1 }
0x1b61   :  { %v4336_v52 = vpop.f32.mrb[113].mxu1  ;;  %v4345_v54 = vadd.f32 %v5807_v50, %v5270_v51 }
0x1b62   :  { %v5808_v53 = vpop.f32.mrb[114].mxu1  ;;  %v4337_v19 = vadd.f32 %v5270_v51, %v4336_v52 }
0x1b63   :  { %v4348_v63 = vadd.f32 %v5808_v53, %v5270_v51  ;;  %v4339_v55 = vpop.f32.mrb[115].mxu1 }
0x1b64   :  { %v4340_v21 = vadd.f32 %v5270_v51, %v4339_v55  ;;  %5812 = vmatmul.mubr.msk.bf16.vlgmr.msra.gmra.mrb[96].mxu0 %vm569_vm0, %v7608_v12  ;;  %v5274_v12 = vld [vmem:[#allocation32 + $0x3] ss:$0 sm:$0xff] }
0x1b65   :  { %v4420_v22 = vpack.c.bf16 %v4348_v63, %v4345_v54  ;;  %5823 = vmatprep.mubr.msk.bf16.mxu0 %vm6933_vm1, %v6932_v9 }
0x1b66   :  { %v4419_v35 = vpack.c.bf16 %v4340_v21, %v4337_v19 }
0x1b67   :  { %v4474_v4 = vsel %vm763_vm2, %v4420_v22, 0 }
0x1b68   :  { %5822 = vmatpush3.bf16.xpose.msra.mxu0 %v4474_v4  ;;  %v4427_v13 = vsel %vm763_vm2, %v4419_v35, 0 }
0x1b69   :  { %5816 = vmatpush3.bf16.xpose.msra.mxu1 %v4427_v13  ;;  %5833 = vmatprep.subr.bf16.mxu0 %v6932_v9 }
0x1b6a   :  { %5827 = vmatprep.subr.bf16.mxu1 %v6932_v9 }
0x1b6f   :  { %5824 = vmatmul.mubr.msk.bf16.vlgmr.msra.gmra.mrb[100].mxu0 %vm763_vm2, %v4418_v47 }
0x1b70   :  { %5818 = vmatmul.mubr.msk.bf16.vlgmr.msra.gmra.mrb[116].mxu1 %vm763_vm2, %v4417_v48  ;;  %5835 = vmatprep.mubr.msk.bf16.mxu0 %vm6933_vm1, %v6932_v9 }
0x1b71   :  { %5829 = vmatprep.mubr.msk.bf16.mxu1 %vm6933_vm1, %v6932_v9  ;;  %vm4925_vm1 = vcmask 261120  }
0x1c37   :  { %v5813_v14 = vpop.f32.mrb[96].mxu0 }
0x1c38   :  { %v4411_v15 = vadd.f32 %v5813_v14, %v5274_v12  ;;  %v4402_v49 = vpop.f32.mrb[97].mxu0  ;;  %v4658_v14 = vld [vmem:[#allocation34 + $0x6] sm:$0x3] }
0x1c39   :  { %v4403_v17 = vadd.f32 %v5274_v12, %v4402_v49  ;;  %v5814_v16 = vpop.f32.mrb[98].mxu0 }
0x1c3a   :  { %v4414_v18 = vadd.f32 %v5814_v16, %v5274_v12  ;;  %v4405_v20 = vpop.f32.mrb[99].mxu0 }
0x1c3b   :  { %v4406_v24 = vadd.f32 %v5274_v12, %v4405_v20 }
0x1c3c   :  { %v4422_v25 = vpack.c.bf16 %v4414_v18, %v4411_v15  ;;  %v4666_v15 = vsel %vm1461_vm11, %v4658_v14, 0 }
0x1c3d   :  { %v4421_v26 = vpack.c.bf16 %v4406_v24, %v4403_v17 }
0x1c3e   :  { %5834 = vmatpush3.bf16.msra.mxu0 %v4422_v25 }
0x1c3f   :  { %5828 = vmatpush3.bf16.msra.mxu1 %v4421_v26  ;;  %5890 = vmatprep.subr.msk.bf16.mxu0 %vm1461_vm11, %v4658_v14 }
0x1c42   :  { %v4510_v27 = vpop.f32.mrb[100].mxu0 }
0x1c43   :  { %v4463_v28 = vpop.f32.mrb[116].mxu1  ;;  %v5825_v29 = vpop.f32.mrb[101].mxu0  ;;  %v4519_v33 = vsel %vm7633_vm3, 1e-09, %v4510_v27 }
0x1c44   :  { %v4517_v6 = vsel %vm7637_vm4, 1e-09, %v4463_v28  ;;  %v5819_v9 = vpop.f32.mrb[117].mxu1  ;;  %v4513_v30 = vpop.f32.mrb[102].mxu0  ;;  %v4527_v7 = vsel %vm569_vm0, %v4519_v33, -inf }
0x1c45   :  { %v4466_v31 = vpop.f32.mrb[118].mxu1  ;;  %v5826_v2 = vpop.f32.mrb[103].mxu0  ;;  %v4521_v32 = vsel %vm569_vm0, %v4517_v6, -inf  ;;  %v4520_v11 = vsel %vm7641_vm5, 1e-09, %v4513_v30 }
0x1c46   :  { %v4518_v34 = vsel %vm7652_vm6, 1e-09, %v4466_v31  ;;  %4522 = vmax.xlane.f32.xlu0 %v4521_v32  ;;  %v5820_v5 = vpop.f32.mrb[119].mxu1  ;;  %v4530_v37 = vsel %vm569_vm0, %v4520_v11, -inf  ;;  %v5284_v29 = vld [vmem:[#allocation35] ss:$0 sm:$0xff] }
0x1c47   :  { %v4524_v36 = vsel %vm569_vm0, %v4518_v34, -inf }
0x1c48   :  { %4525 = vmax.xlane.f32.xlu1 %v4524_v36 }
0x1c4a   :  { %4528 = vmax.xlane.f32.xlu0 %v4527_v7 }
0x1c4c   :  { %4531 = vmax.xlane.f32.xlu1 %v4530_v37 }
0x1cd3   :  { %v4523_v38 = vpop.xlane.xlu0 %4522 }
0x1cd4   :  { %v4533_v56 = vsub.f32 %v4517_v6, %v4523_v38 }
0x1cd5   :  { %v4526_v39 = vpop.xlane.xlu1 %4525 }
0x1cd6   :  { %v4537_v3 = vmul.f32 1.442695, %v4533_v56  ;;  %v4534_v23 = vsub.f32 %v4518_v34, %v4526_v39 }
0x1cd7   :  { %v4529_v8 = vpop.xlane.xlu0 %4528 }
0x1cd8   :  { %6112 = vpow2.f32 %v4537_v3  ;;  %v4539_v10 = vmul.f32 1.442695, %v4534_v23  ;;  %v4535_v40 = vsub.f32 %v4519_v33, %v4529_v8 }
0x1cd9   :  { %v4532_v41 = vpop.xlane.xlu1 %4531 }
0x1cda   :  { %6114 = vpow2.f32 %v4539_v10  ;;  %v4541_v1 = vmul.f32 1.442695, %v4535_v40  ;;  %v4536_v42 = vsub.f32 %v4520_v11, %v4532_v41  ;;  %v4793_v40 = vld [vmem:[#allocation37 + $0x8] sm:$0xff] }
0x1cdc   :  { %6116 = vpow2.f32 %v4541_v1  ;;  %v4543_v59 = vmul.f32 1.442695, %v4536_v42 }
0x1cde   :  { %6118 = vpow2.f32 %v4543_v59 }
0x1ce2   :  { %v6113_v61 = vpop.eup %6112 }
0x1ce3   :  { %v4545_v0 = vsel %vm569_vm0, %v6113_v61, 0.0 }
0x1ce4   :  { %v6115_v43 = vpop.eup %6114  ;;  %4546 = vadd.xlane.f32.xlu0 %v4545_v0 }
0x1ce5   :  { %v4548_v44 = vsel %vm569_vm0, %v6115_v43, 0.0 }
0x1ce6   :  { %v6117_v45 = vpop.eup %6116  ;;  %4549 = vadd.xlane.f32.xlu1 %v4548_v44 }
0x1ce7   :  { %v4551_v46 = vsel %vm569_vm0, %v6117_v45, 0.0 }
0x1ce8   :  { %v6119_v47 = vpop.eup %6118  ;;  %4552 = vadd.xlane.f32.xlu0 %v4551_v46 }
0x1ce9   :  { %v4554_v48 = vsel %vm569_vm0, %v6119_v47, 0.0 }
0x1cea   :  { %4555 = vadd.xlane.f32.xlu1 %v4554_v48 }
0x1d71   :  { %v4547_v50 = vpop.xlane.xlu0 %4546 }
0x1d72   :  { %6120 = vrcp.f32 %v4547_v50 }
0x1d73   :  { %v4550_v51 = vpop.xlane.xlu1 %4549 }
0x1d74   :  { %6122 = vrcp.f32 %v4550_v51 }
0x1d75   :  { %v4553_v52 = vpop.xlane.xlu0 %4552 }
0x1d76   :  { %6124 = vrcp.f32 %v4553_v52 }
0x1d77   :  { %v4556_v53 = vpop.xlane.xlu1 %4555 }
0x1d78   :  { %6126 = vrcp.f32 %v4556_v53 }
0x1d7c   :  { %v6121_v54 = vpop.eup %6120 }
0x1d7d   :  { %v4561_v55 = vmul.f32 %v6121_v54, %v6113_v61 }
0x1d7e   :  { %v6123_v63 = vpop.eup %6122 }
0x1d7f   :  { %v4562_v19 = vmul.f32 %v6123_v63, %v6115_v43  ;;  %v4808_v63 = vld [vmem:[#allocation38] sm:$0xff] }
0x1d80   :  { %v6125_v21 = vpop.eup %6124 }
0x1d81   :  { %v4565_v22 = vpack.c.bf16 %v4562_v19, %v4561_v55  ;;  %v4563_v4 = vmul.f32 %v6125_v21, %v6117_v45  ;;  %v4809_v55 = vld [vmem:[#allocation38 + $0x8] sm:$0xff]  ;;  %v5989_v19 = vld [vmem:[#allocation40] sm:$0xff]  }
0x1d82   :  { %v6127_v35 = vpop.eup %6126  ;;  %5845 = vmatprep.subr.bf16.mxu1 %v5989_v19 }
0x1d83   :  { %v4564_v13 = vmul.f32 %v6127_v35, %v6119_v47  ;;  %5830 = vmatmul.mubr.msk.bf16.vlgmr.msra.gmra.mrb[120].mxu1 %vm569_vm0, %v4565_v22 }
0x1d84   :  { %5846 = vmatpush3.bf16.msra.mxu1 %v5989_v19 }
0x1d85   :  { %v4566_v12 = vpack.c.bf16 %v4564_v13, %v4563_v4 }
0x1d87   :  { %5836 = vmatmul.mubr.msk.bf16.vlgmr.msra.gmra.mrb[104].mxu0 %vm569_vm0, %v4566_v12 }
0x1d88   :  { %5840 = vmatpush3.bf16.msra.mxu0 %v4666_v15 }
0x1e56   :  { %v4604_v49 = vpop.f32.mrb[120].mxu1 }
0x1e57   :  { %v5831_v17 = vpop.f32.mrb[121].mxu1 }
0x1e58   :  { %v4607_v16 = vpop.f32.mrb[122].mxu1 }
0x1e59   :  { %v4655_v18 = vpack.c.bf16 %v4607_v16, %v4604_v49  ;;  %v5832_v20 = vpop.f32.mrb[123].mxu1 }
0x1e5a   :  { %v4648_v24 = vpop.f32.mrb[104].mxu0 }
0x1e5b   :  { %v5837_v25 = vpop.f32.mrb[105].mxu0  ;;  %5841 = vmatprep.mubr.msk.bf16.mxu0 %vm763_vm2, %v4655_v18 }
0x1e5c   :  { %v4651_v26 = vpop.f32.mrb[106].mxu0 }
0x1e5d   :  { %v4656_v27 = vpack.c.bf16 %v4651_v26, %v4648_v24  ;;  %v5838_v28 = vpop.f32.mrb[107].mxu0 }
0x1e5f   :  { %5842 = vmatmul.mubr.msk.bf16.vlgmr.msra.gmra.mrb[80].mxu0 %vm763_vm2, %v4656_v27 }
0x1f32   :  { %v5843_v6 = vpop.f32.mrb[80].mxu0 }
0x1f33   :  { %v4730_v9 = vadd.f32 %v5843_v6, %v5284_v29  ;;  %v4702_v30 = vpop.f32.mrb[81].mxu0 }
0x1f34   :  { %v4728_v31 = vadd.f32 %v5284_v29, %v4702_v30  ;;  %v5844_v2 = vpop.f32.mrb[82].mxu0 }
0x1f35   :  { %v4731_v32 = vadd.f32 %v5844_v2, %v5284_v29  ;;  %v4705_v33 = vpop.f32.mrb[83].mxu0  ;;  %v4734_v34 = vadd.f32 %v4730_v9, %v7591_v60 }
0x1f36   :  { %v4732_v5 = vadd.f32 %v4728_v31, %v7589_v58  ;;  %v4729_v36 = vadd.f32 %v5284_v29, %v4705_v33 }
0x1f37   :  { %v4735_v11 = vadd.f32 %v4731_v32, %v7585_v57  ;;  %v4738_v39 = vadd.f32 %v4734_v34, %v7591_v60 }
0x1f38   :  { %v4733_v7 = vadd.f32 %v4729_v36, %v7587_v62  ;;  %v4736_v37 = vadd.f32 %v4732_v5, %v7589_v58  ;;  %v4792_v58 = vld [vmem:[#allocation37] sm:$0xff] }
0x1f39   :  { %v4739_v23 = vadd.f32 %v4735_v11, %v7585_v57  ;;  %v4746_v8 = vsel %vm569_vm0, %v4738_v39, 0.0 }
0x1f3a   :  { %v4740_v38 = vsel %vm569_vm0, %v4736_v37, 0.0  ;;  %v4737_v56 = vadd.f32 %v4733_v7, %v7587_v62 }
0x1f3b   :  { %4741 = vadd.xlane.f32.xlu0 %v4740_v38  ;;  %v4749_v10 = vsel %vm569_vm0, %v4739_v23, 0.0 }
0x1f3c   :  { %v4743_v3 = vsel %vm569_vm0, %v4737_v56, 0.0 }
0x1f3d   :  { %4744 = vadd.xlane.f32.xlu1 %v4743_v3  ;;  %v5991_v3 = vld [vmem:[#allocation43 + $0x8] sm:$0xff]  }
0x1f3f   :  { %4747 = vadd.xlane.f32.xlu0 %v4746_v8 }
0x1f41   :  { %4750 = vadd.xlane.f32.xlu1 %v4749_v10 }
0x1f52   :  { %4801 = vperm.xlu1 %5964, %v4793_v40  }
0x1f55   :  { %4796 = vperm.xlu0 %5963, %v4792_v58  }
0x1fc8   :  { %v4742_v41 = vpop.xlane.xlu0 %4741 }
0x1fc9   :  { %v4752_v1 = vmul.f32 0.0625, %v4742_v41 }
0x1fca   :  { %v4745_v62 = vpop.xlane.xlu1 %4744 }
0x1fcb   :  { %v4753_v42 = vmul.f32 0.0625, %v4745_v62  ;;  %v4756_v0 = vsub.f32 %v4736_v37, %v4752_v1 }
0x1fcc   :  { %v4748_v60 = vpop.xlane.xlu0 %4747 }
0x1fcd   :  { %v4754_v59 = vmul.f32 0.0625, %v4748_v60  ;;  %v4757_v44 = vsub.f32 %v4737_v56, %v4753_v42  ;;  %v4760_v50 = vmul.f32 %v4756_v0, %v4756_v0 }
0x1fce   :  { %v4751_v61 = vpop.xlane.xlu1 %4750 }
0x1fcf   :  { %v4758_v57 = vsub.f32 %v4738_v39, %v4754_v59  ;;  %v4755_v43 = vmul.f32 0.0625, %v4751_v61  ;;  %v4761_v52 = vmul.f32 %v4757_v44, %v4757_v44  ;;  %v4764_v53 = vsel %vm569_vm0, %v4760_v50, 0.0  ;;  %v5990_v39 = vld [vmem:[#allocation43] sm:$0xff]  }
0x1fd0   :  { %5851 = vmatprep.subr.bf16.mxu1 %v5990_v39 }
0x1fd1   :  { %v4759_v45 = vsub.f32 %v4739_v23, %v4755_v43  ;;  %v4762_v46 = vmul.f32 %v4758_v57, %v4758_v57  ;;  %v4767_v54 = vsel %vm569_vm0, %v4761_v52, 0.0  ;;  %v5285_v23 = vld [vmem:[#allocation41] ss:$0 sm:$0xff] }
0x1fd2   :  { %v4802_v22 = vpop.permute.xlu1 %4801 }
0x1fd3   :  { %v4770_v47 = vsel %vm569_vm0, %v4762_v46, 0.0  ;;  %v4763_v48 = vmul.f32 %v4759_v45, %v4759_v45 }
0x1fd4   :  { %4771 = vadd.xlane.f32.xlu0 %v4770_v47  ;;  %v4797_v21 = vpop.permute.xlu0 %4796 }
0x1fd5   :  { %v4773_v51 = vsel %vm569_vm0, %v4763_v48, 0.0 }
0x1fd6   :  { %4774 = vadd.xlane.f32.xlu1 %v4773_v51 }
0x1fd8   :  { %4765 = vadd.xlane.f32.xlu0 %v4764_v53 }
0x1fda   :  { %4768 = vadd.xlane.f32.xlu1 %v4767_v54 }
0x1feb   :  { %4812 = vperm.xlu1 %5964, %v4808_v63  }
0x1fee   :  { %4817 = vperm.xlu0 %5963, %v4809_v55  }
0x2061   :  { %v4772_v35 = vpop.xlane.xlu0 %4771 }
0x2062   :  { %v4778_v4 = vmul.f32 0.0625, %v4772_v35 }
0x2063   :  { %v4775_v13 = vpop.xlane.xlu1 %4774 }
0x2064   :  { %v4782_v12 = vadd.f32 1e-06, %v4778_v4  ;;  %v4779_v14 = vmul.f32 0.0625, %v4775_v13 }
0x2065   :  { %v4766_v15 = vpop.xlane.xlu0 %4765 }
0x2066   :  { %v4783_v49 = vadd.f32 1e-06, %v4779_v14  ;;  %v4776_v17 = vmul.f32 0.0625, %v4766_v15  ;;  %6128 = vrsqrt.f32 %v4782_v12 }
0x2067   :  { %v4769_v16 = vpop.xlane.xlu1 %4768 }
0x2068   :  { %6130 = vrsqrt.f32 %v4783_v49  ;;  %v4780_v18 = vadd.f32 1e-06, %v4776_v17  ;;  %v4777_v20 = vmul.f32 0.0625, %v4769_v16  ;;  %v5042_v49 = vld [vmem:[#allocation46 + $0x8] sm:$0xff]  ;;  %v5041_v17 = vld [vmem:[#allocation46] sm:$0xff] }
0x206a   :  { %6132 = vrsqrt.f32 %v4780_v18  ;;  %v4781_v24 = vadd.f32 1e-06, %v4777_v20 }
0x206b   :  { %v4813_v5 = vpop.permute.xlu1 %4812 }
0x206c   :  { %6134 = vrsqrt.f32 %v4781_v24 }
0x206d   :  { %v4818_v33 = vpop.permute.xlu0 %4817 }
0x2070   :  { %v6129_v25 = vpop.eup %6128 }
0x2071   :  { %v4790_v29 = vmul.f32 %v6129_v25, %v4758_v57 }
0x2072   :  { %v6131_v26 = vpop.eup %6130 }
0x2073   :  { %v4791_v27 = vmul.f32 %v6131_v26, %v4759_v45  ;;  %v4806_v32 = vmul.f32 %v4797_v21, %v4790_v29 }
0x2074   :  { %v6133_v28 = vpop.eup %6132 }
0x2075   :  { %v4788_v6 = vmul.f32 %v6133_v28, %v4756_v0  ;;  %v4807_v30 = vmul.f32 %v4802_v22, %v4791_v27  ;;  %v4822_v37 = vadd.f32 %v4813_v5, %v4806_v32 }
0x2076   :  { %v6135_v9 = vpop.eup %6134 }
0x2077   :  { %v4804_v31 = vmul.f32 %v4797_v21, %v4788_v6  ;;  %v4789_v2 = vmul.f32 %v6135_v9, %v4757_v44  ;;  %v4823_v36 = vadd.f32 %v4818_v33, %v4807_v30  ;;  %v5289_v44 = vld [vmem:[#allocation44] ss:$0 sm:$0xff] }
0x2079   :  { %v4805_v34 = vmul.f32 %v4802_v22, %v4789_v2  ;;  %v4820_v11 = vadd.f32 %v4813_v5, %v4804_v31  ;;  %v4825_v56 = vpack.c.bf16 %v4823_v36, %v4822_v37 }
0x207b   :  { %v4821_v7 = vadd.f32 %v4818_v33, %v4805_v34 }
0x207d   :  { %v4824_v38 = vpack.c.bf16 %v4821_v7, %v4820_v11 }
0x207f   :  { %5847 = vmatprep.mubr.msk.bf16.mxu1 %vm569_vm0, %v4824_v38 }
0x2080   :  { %5848 = vmatmul.mubr.msk.bf16.vlgmr.msra.gmra.mrb[124].mxu1 %vm569_vm0, %v4825_v56 }
0x2081   :  { %5852 = vmatpush3.bf16.msra.mxu1 %v5990_v39 }
0x2082   :  { %5853 = vmatprep.subr.bf16.mxu1 %v5991_v3 }
0x2085   :  { %5854 = vmatpush3.bf16.msra.mxu1 %v5991_v3 }
0x2153   :  { %v5849_v8 = vpop.f32.mrb[124].mxu1 }
0x2154   :  { %v4890_v10 = vadd.f32 %v5849_v8, %v5285_v23  ;;  %v4881_v40 = vpop.f32.mrb[125].mxu1 }
0x2155   :  { %v4882_v58 = vadd.f32 %v5285_v23, %v4881_v40  ;;  %v5850_v41 = vpop.f32.mrb[126].mxu1 }
0x2156   :  { %v4893_v62 = vadd.f32 %v5850_v41, %v5285_v23  ;;  %v4884_v1 = vpop.f32.mrb[127].mxu1  ;;  %v4898_v42 = vmax.f32 %v4890_v10, 0.0 }
0x2157   :  { %v4885_v60 = vadd.f32 %v5285_v23, %v4884_v1  ;;  %v4896_v61 = vmax.f32 %v4882_v58, 0.0 }
0x2158   :  { %v4899_v59 = vmax.f32 %v4893_v62, 0.0 }
0x2159   :  { %v4897_v0 = vmax.f32 %v4885_v60, 0.0 }
0x215a   :  { %v4901_v57 = vpack.c.bf16 %v4899_v59, %v4898_v42 }
0x215b   :  { %v4900_v43 = vpack.c.bf16 %v4897_v0, %v4896_v61 }
0x215d   :  { %5855 = vmatprep.mubr.msk.bf16.mxu1 %vm4925_vm1, %v4900_v43 }
0x215e   :  { %5856 = vmatmul.mubr.msk.bf16.vlgmr.msra.gmra.mrb[128].mxu1 %vm4925_vm1, %v4901_v57 }
0x2231   :  { %v5857_v45 = vpop.f32.mrb[128].mxu1 }
0x2232   :  { %v4966_v46 = vpop.f32.mrb[129].mxu1  ;;  %v4975_v47 = vadd.f32 %v5857_v45, %v5289_v44 }
0x2233   :  { %v4967_v48 = vadd.f32 %v5289_v44, %v4966_v46  ;;  %v5858_v50 = vpop.f32.mrb[130].mxu1 }
0x2234   :  { %v4978_v51 = vadd.f32 %v5858_v50, %v5289_v44  ;;  %v4969_v52 = vpop.f32.mrb[131].mxu1  ;;  %v4983_v55 = vadd.f32 %v4975_v47, %v4822_v37 }
0x2235   :  { %v4981_v53 = vadd.f32 %v4967_v48, %v4820_v11  ;;  %v4970_v54 = vadd.f32 %v5289_v44, %v4969_v52 }
0x2236   :  { %v4984_v63 = vadd.f32 %v4978_v51, %v4823_v36  ;;  %v4987_v12 = vadd.f32 %v4983_v55, %v4822_v37  ;;  %v5058_v37 = vld [vmem:[#allocation47 + $0x8] sm:$0xff] }
0x2237   :  { %v4982_v19 = vadd.f32 %v4970_v54, %v4821_v7  ;;  %v4985_v21 = vadd.f32 %v4981_v53, %v4820_v11 }
0x2238   :  { %v4988_v4 = vadd.f32 %v4984_v63, %v4823_v36  ;;  %v4995_v15 = vsel %vm569_vm0, %v4987_v12, 0.0 }
0x2239   :  { %v4989_v22 = vsel %vm569_vm0, %v4985_v21, 0.0  ;;  %v4986_v35 = vadd.f32 %v4982_v19, %v4821_v7  ;;  %v5057_v7 = vld [vmem:[#allocation47] sm:$0xff] }
0x223a   :  { %4990 = vadd.xlane.f32.xlu1 %v4989_v22  ;;  %v4998_v14 = vsel %vm569_vm0, %v4988_v4, 0.0 }
0x223b   :  { %v4992_v13 = vsel %vm569_vm0, %v4986_v35, 0.0 }
0x223c   :  { %4993 = vadd.xlane.f32.xlu0 %v4992_v13 }
0x223e   :  { %4999 = vadd.xlane.f32.xlu1 %v4998_v14 }
0x2240   :  { %4996 = vadd.xlane.f32.xlu0 %v4995_v15 }
0x224f   :  { %5050 = vperm.xlu1 %5964, %v5042_v49  }
0x2256   :  { %5045 = vperm.xlu0 %5963, %v5041_v17  }
0x22c7   :  { %v4991_v16 = vpop.xlane.xlu1 %4990 }
0x22c8   :  { %v5001_v25 = vmul.f32 0.0625, %v4991_v16 }
0x22c9   :  { %v4994_v18 = vpop.xlane.xlu0 %4993 }
0x22ca   :  { %v5002_v20 = vmul.f32 0.0625, %v4994_v18  ;;  %v5005_v9 = vsub.f32 %v4985_v21, %v5001_v25 }
0x22cb   :  { %v5000_v24 = vpop.xlane.xlu1 %4999 }
0x22cc   :  { %v5004_v26 = vmul.f32 0.0625, %v5000_v24  ;;  %v5006_v28 = vsub.f32 %v4986_v35, %v5002_v20  ;;  %v5009_v5 = vmul.f32 %v5005_v9, %v5005_v9 }
0x22cd   :  { %v4997_v27 = vpop.xlane.xlu0 %4996 }
0x22ce   :  { %v5008_v29 = vsub.f32 %v4988_v4, %v5004_v26  ;;  %v5003_v6 = vmul.f32 0.0625, %v4997_v27  ;;  %v5010_v33 = vmul.f32 %v5006_v28, %v5006_v28  ;;  %v5013_v11 = vsel %vm569_vm0, %v5009_v5, 0.0 }
0x22cf   :  { %v5051_v38 = vpop.permute.xlu1 %5050 }
0x22d0   :  { %v5007_v30 = vsub.f32 %v4987_v12, %v5003_v6  ;;  %v5012_v31 = vmul.f32 %v5008_v29, %v5008_v29  ;;  %v5016_v36 = vsel %vm569_vm0, %v5010_v33, 0.0 }
0x22d2   :  { %v5022_v2 = vsel %vm569_vm0, %v5012_v31, 0.0  ;;  %v5011_v32 = vmul.f32 %v5007_v30, %v5007_v30 }
0x22d3   :  { %5023 = vadd.xlane.f32.xlu1 %v5022_v2 }
0x22d4   :  { %v5019_v34 = vsel %vm569_vm0, %v5011_v32, 0.0 }
0x22d5   :  { %5020 = vadd.xlane.f32.xlu0 %v5019_v34  ;;  %v5046_v56 = vpop.permute.xlu0 %5045 }
0x22d7   :  { %5017 = vadd.xlane.f32.xlu1 %v5016_v36 }
0x22d9   :  { %5014 = vadd.xlane.f32.xlu0 %v5013_v11 }
0x22e8   :  { %5061 = vperm.xlu1 %5964, %v5057_v7  }
0x22ef   :  { %5066 = vperm.xlu0 %5963, %v5058_v37  }
0x2360   :  { %v5024_v39 = vpop.xlane.xlu1 %5023 }
0x2361   :  { %v5028_v3 = vmul.f32 0.0625, %v5024_v39 }
0x2362   :  { %v5021_v23 = vpop.xlane.xlu0 %5020 }
0x2363   :  { %v5032_v8 = vadd.f32 1e-06, %v5028_v3  ;;  %v5027_v10 = vmul.f32 0.0625, %v5021_v23 }
0x2364   :  { %v5018_v40 = vpop.xlane.xlu1 %5017 }
0x2365   :  { %6136 = vrsqrt.f32 %v5032_v8  ;;  %v5031_v58 = vadd.f32 1e-06, %v5027_v10  ;;  %v5026_v41 = vmul.f32 0.0625, %v5018_v40 }
0x2366   :  { %v5015_v62 = vpop.xlane.xlu0 %5014 }
0x2367   :  { %6138 = vrsqrt.f32 %v5031_v58  ;;  %v5030_v1 = vadd.f32 1e-06, %v5026_v41  ;;  %v5025_v60 = vmul.f32 0.0625, %v5015_v62 }
0x2368   :  { %v5062_v51 = vpop.permute.xlu1 %5061 }
0x2369   :  { %6140 = vrsqrt.f32 %v5030_v1  ;;  %v5029_v42 = vadd.f32 1e-06, %v5025_v60 }
0x236b   :  { %6142 = vrsqrt.f32 %v5029_v42 }
0x236e   :  { %v5067_v45 = vpop.permute.xlu0 %5066 }
0x236f   :  { %v6137_v59 = vpop.eup %6136 }
0x2370   :  { %v5040_v61 = vmul.f32 %v6137_v59, %v5008_v29 }
0x2371   :  { %v6139_v0 = vpop.eup %6138 }
0x2372   :  { %v5039_v57 = vmul.f32 %v6139_v0, %v5007_v30  ;;  %v5056_v43 = vmul.f32 %v5051_v38, %v5040_v61 }
0x2373   :  { %v6141_v44 = vpop.eup %6140 }
0x2374   :  { %v5055_v46 = vmul.f32 %v5046_v56, %v5039_v57  ;;  %v5038_v47 = vmul.f32 %v6141_v44, %v5006_v28  ;;  %v5072_v48 = vadd.f32 %v5067_v45, %v5056_v43 }
0x2375   :  { %v6143_v50 = vpop.eup %6142 }
0x2376   :  { %v5037_v52 = vmul.f32 %v6143_v50, %v5005_v9  ;;  %v5071_v53 = vadd.f32 %v5062_v51, %v5055_v46  ;;  %v5054_v54 = vmul.f32 %v5051_v38, %v5038_v47  ;;  %5076 = vst.msk [vmem:[#allocation49 + $0x18] sm:$0xff] %vm569_vm0, %v5072_v48 }
0x2378   :  { %v5053_v63 = vmul.f32 %v5046_v56, %v5037_v52  ;;  %5075 = vst.msk [vmem:[#allocation49 + $0x10] sm:$0xff] %vm569_vm0, %v5071_v53  ;;  %v5070_v55 = vadd.f32 %v5067_v45, %v5054_v54 }
0x237a   :  { %v5069_v19 = vadd.f32 %v5062_v51, %v5053_v63  ;;  %5074 = vst.msk [vmem:[#allocation49 + $0x8] sm:$0xff] %vm569_vm0, %v5070_v55 }
0x237c   :  { %5073 = vst.msk [vmem:[#allocation49] sm:$0xff] %vm569_vm0, %v5069_v19 }
0x237d   :  { %6819 = shalt.err (!%p6816_p6)
}
0x237e   :  { %s6820_s24 = scalar_lea.hbm %s7094_s12, 512 }
0x237f   :  { %p6821_p7 = scmp.ne.s32.totalorder %s7094_s12, %s6820_s24  ;;  %p6824_p8 = scmp.lt.u32.totalorder %s6820_s24, %s7094_s12 }
0x2381   :  { %p6826_p9 = pnand %p6824_p8, %p6821_p7 }
0x2383   :  { %6829 = shalt.err (!%p6826_p9)
}
0x2384   :  { %5088 = dma.vmem_to_hbm [thread:$0]  %s5083_s27, 512, %s7094_s12, [#allocation4], %s6899_s11, %s6899_s11, %s6900_s9  }
0x2385   :  { %6862 = dma.done.wait [#allocation4], 512  }
0x2386   :  { %6863 = vsyncadd [#allocation4], 4294966784 }
0x2387   :  { %5092 = vsyncpa [#allocation3], 1 }
0x2388   :  { %5093 = vsyncpa [#allocation6], 1 }
0x2389   :  { %5094 = vsyncpa [#allocation9], 1 }
0x238a   :  { %5095 = vsyncpa [#allocation12], 1 }
0x238b   :  { %5096 = vsyncpa [#allocation15], 1 }
0x238c   :  { %5097 = vsyncpa [#allocation18], 1 }
0x238d   :  { %5098 = vsyncpa [#allocation21], 1 }
0x238e   :  { %5099 = vsyncpa [#allocation24], 1 }
0x238f   :  { %5100 = vsyncpa [#allocation27], 1 }
0x2390   :  { %5101 = vsyncpa [#allocation30], 1 }
0x2391   :  { %5102 = vsyncpa [#allocation33], 1 }
0x2392   :  { %5103 = vsyncpa [#allocation36], 1 }
0x2393   :  { %5104 = vsyncpa [#allocation39], 1 }
0x2394   :  { %5105 = vsyncpa [#allocation42], 1 }
0x2395   :  { %5106 = vsyncpa [#allocation45], 1 }
0x2396   :  { %5107 = vsyncpa [#allocation48], 1 }
0x2397   :  { %5108 = vsyncpa [#allocation4], 1 }

</bundles_post_ra>
